<compile_context>
chip_gen: v5e
topology: v5e:2x2
jax: 0.10.0
libtpu: 0.0.40
codegen_flags: <defaults>
</compile_context>

<pallas_src>
import functools

import jax
import jax.numpy as jnp
import numpy as np
from jax.experimental import pallas as pl
from jax.experimental.pallas import tpu as pltpu

IN_DIM = 22
HIDDEN = 720
Z_DIM = 16
BATCH = 8

HPAD = 768                      # 720 padded up to a multiple of 128
ZPAD = 128                      # latent width padded up to one lane tile
N_ENC = 8                       # encoder linears
N_DEC = 9                       # decoder linears
MU_LAYER = N_ENC                # layer index of fused fc_mu/fc_logvar + sampling
NUM_LAYERS = N_ENC + 1 + N_DEC  # 18
LAST_LAYER = NUM_LAYERS - 1     # 17

LAYERS_PER_STEP = 2             # layers folded into one grid step
assert NUM_LAYERS % LAYERS_PER_STEP == 0
NUM_STEPS = NUM_LAYERS // LAYERS_PER_STEP   # 9


# ---------------------------------------------------------------------------
# Fused Pallas kernel: grid over 2-layer weight blocks, activation ping-pong
# in a persistent VMEM scratch, resident bias table.
# ---------------------------------------------------------------------------
def _vae_fused_kernel(x_ref, eps_ref, w_ref, b_ref,
                      recon_ref, mu_ref, logvar_ref, act_ref):
    step = pl.program_id(0)

    # First step consumes the (padded) network input.
    @pl.when(step == 0)
    def _():
        act_ref[...] = x_ref[...]

    # Statically unrolled loop over the layers in this weight block.
    # `sub` is a Python int, `l` is the (traced) global layer index.
    for sub in range(LAYERS_PER_STEP):
        l = step * LAYERS_PER_STEP + sub

        a = act_ref[...]                                   # (B, HPAD) f32
        # Pre-transposed (in, out) bf16 weight; MXU bf16 matmul, f32 accum.
        # Bias table is resident: dynamic index along its leading axis.
        y = jnp.dot(a.astype(jnp.bfloat16), w_ref[sub],
                    preferred_element_type=jnp.float32) + b_ref[l]

        # Per-layer activation (static schedule, selected on layer id):
        #   ReLU  : encoder layers 0..6, decoder layers (grid 9..15)
        #   Tanh  : grid 16 (after the 8th decoder linear)
        #   none  : grid 7 (last encoder), grid 8 (mu/logvar), grid 17 (final)
        is_relu = jnp.logical_or(
            l < N_ENC - 1,
            jnp.logical_and(l > MU_LAYER, l < LAST_LAYER - 1))
        is_tanh = l == LAST_LAYER - 1

        @pl.when(is_relu)
        def _(y=y):
            act_ref[...] = jnp.maximum(y, 0.0)

        @pl.when(is_tanh)
        def _(y=y):
            act_ref[...] = jnp.tanh(y)

        @pl.when(jnp.logical_not(jnp.logical_or(is_relu, is_tanh)))
        def _(y=y):
            act_ref[...] = y

        # Fused fc_mu / fc_logvar + reparameterization: z = eps*exp(.5*lv)+mu.
        # Padded logvar columns are exact zeros -> exp(0.5*0)=1; correctness
        # relies on eps being zero-padded there (kept by the wrapper).
        if MU_LAYER % LAYERS_PER_STEP == sub:      # static reachability prune
            @pl.when(l == MU_LAYER)
            def _(y=y):
                mu = y[:, :ZPAD]                   # cols 0:16 real, rest zeros
                logvar = y[:, ZPAD:2 * ZPAD]
                mu_ref[...] = mu
                logvar_ref[...] = logvar
                z = eps_ref[...] * jnp.exp(0.5 * logvar) + mu
                act_ref[...] = jnp.zeros_like(act_ref)
                act_ref[:, :ZPAD] = z

        # Final layer writes the (padded) reconstruction.
        if LAST_LAYER % LAYERS_PER_STEP == sub:    # static reachability prune
            @pl.when(l == LAST_LAYER)
            def _(y=y):
                recon_ref[...] = y


# ---------------------------------------------------------------------------
# Wrapper: one pallas_call for the whole forward
# ---------------------------------------------------------------------------
def vae_forward(w_stack, b_stack, x, eps, *, weight_buffers=3):
    batch = x.shape[0]
    x_pad = jnp.zeros((batch, HPAD), jnp.float32).at[:, :IN_DIM].set(x)
    eps_pad = jnp.zeros((batch, ZPAD), jnp.float32).at[:, :Z_DIM].set(eps)

    weight_bytes = w_stack.size * w_stack.dtype.itemsize
    bias_bytes = b_stack.size * b_stack.dtype.itemsize
    io_bytes = 4 * (x_pad.size + eps_pad.size + batch * (HPAD + 2 * ZPAD))
    cost = pl.CostEstimate(
        flops=2 * batch * HPAD * HPAD * NUM_LAYERS,
        transcendentals=batch * (HPAD + ZPAD),
        bytes_accessed=weight_bytes + bias_bytes + io_bytes,
    )

    # Weight stream: LAYERS_PER_STEP layers per grid step; optionally deepen
    # the pipeline so HBM never idles across step boundaries.
    w_spec_kwargs = {}
    if weight_buffers is not None:
        w_spec_kwargs["pipeline_mode"] = pl.Buffered(weight_buffers)
    w_spec = pl.BlockSpec((LAYERS_PER_STEP, HPAD, HPAD),
                          lambda l: (l, 0, 0), **w_spec_kwargs)

    # Bias table (~55 KB) fully resident: constant block index -> one DMA.
    b_spec = pl.BlockSpec((NUM_LAYERS, 1, HPAD), lambda l: (0, 0, 0))

    recon_p, mu_p, logvar_p = pl.pallas_call(
        _vae_fused_kernel,
        out_shape=(
            jax.ShapeDtypeStruct((batch, HPAD), jnp.float32),   # recon (padded)
            jax.ShapeDtypeStruct((batch, ZPAD), jnp.float32),   # mu (padded)
            jax.ShapeDtypeStruct((batch, ZPAD), jnp.float32),   # logvar (padded)
        ),
        grid_spec=pltpu.PrefetchScalarGridSpec(
            num_scalar_prefetch=0,
            grid=(NUM_STEPS,),
            in_specs=[
                pl.BlockSpec((batch, HPAD), lambda l: (0, 0)),  # x (resident)
                pl.BlockSpec((batch, ZPAD), lambda l: (0, 0)),  # eps (resident)
                w_spec,                                         # streamed weights
                b_spec,                                         # resident biases
            ],
            out_specs=(
                pl.BlockSpec((batch, HPAD), lambda l: (0, 0)),
                pl.BlockSpec((batch, ZPAD), lambda l: (0, 0)),
                pl.BlockSpec((batch, ZPAD), lambda l: (0, 0)),
            ),
            scratch_shapes=[pltpu.VMEM((batch, HPAD), jnp.float32)],  # activation
        ),
        compiler_params=pltpu.CompilerParams(
            dimension_semantics=("arbitrary",),        # layer steps are sequential
            vmem_limit_bytes=32 * 1024 * 1024,         # <8 MiB actually needed
        ),
        cost_estimate=cost,
    )(x_pad, eps_pad, w_stack, b_stack)

    return recon_p[:, :IN_DIM], mu_p[:, :Z_DIM], logvar_p[:, :Z_DIM]


# ---------------------------------------------------------------------------
# Deterministic parameter init (kaiming-uniform weights like the PyTorch code)
# ---------------------------------------------------------------------------
def init_linear(key, in_features, out_features):
    kw, kb = jax.random.split(key)
    w_bound = (6.0 / in_features) ** 0.5          # kaiming_uniform_, a=0
    b_bound = 1.0 / (in_features ** 0.5)          # PyTorch default bias init
    w = jax.random.uniform(kw, (out_features, in_features), jnp.float32,
                           -w_bound, w_bound)
    b = jax.random.uniform(kb, (out_features,), jnp.float32, -b_bound, b_bound)
    return w, b


def init_vae_params(key, z_dim):
    enc_dims = [(IN_DIM, HIDDEN)] + [(HIDDEN, HIDDEN)] * 7              # 8
    dec_dims = ([(z_dim, HIDDEN)] + [(HIDDEN, HIDDEN)] * 7
                + [(HIDDEN, IN_DIM)])                                   # 9
    keys = jax.random.split(key, len(enc_dims) + len(dec_dims) + 2)
    k_iter = iter(keys)
    return {
        "encode": [init_linear(next(k_iter), i, o) for i, o in enc_dims],
        "fc_mu": init_linear(next(k_iter), HIDDEN, z_dim),
        "fc_logvar": init_linear(next(k_iter), HIDDEN, z_dim),
        "decode": [init_linear(next(k_iter), i, o) for i, o in dec_dims],
    }


def pack_params(params):
    """Stack all layers into (L, HPAD, HPAD) bf16 weights (pre-transposed to
    (in, out), zero-padded) and (L, 1, HPAD) f32 biases."""
    def pad_wt(w):                       # (out, in) f32 -> (HPAD, HPAD)
        wt = w.T
        return jnp.zeros((HPAD, HPAD), jnp.float32).at[
            :wt.shape[0], :wt.shape[1]].set(wt)

    def pad_b(b):
        return jnp.zeros((HPAD,), jnp.float32).at[:b.shape[0]].set(b)

    ws, bs = [], []
    for w, b in params["encode"]:
        ws.append(pad_wt(w)); bs.append(pad_b(b))

    # Fused fc_mu / fc_logvar layer: mu -> cols 0:16, logvar -> cols 128:144.
    wm, bm = params["fc_mu"]
    wl, bl = params["fc_logvar"]
    wc = jnp.zeros((HPAD, HPAD), jnp.float32)
    wc = wc.at[:HIDDEN, :Z_DIM].set(wm.T)
    wc = wc.at[:HIDDEN, ZPAD:ZPAD + Z_DIM].set(wl.T)
    bc = jnp.zeros((HPAD,), jnp.float32)
    bc = bc.at[:Z_DIM].set(bm)
    bc = bc.at[ZPAD:ZPAD + Z_DIM].set(bl)
    ws.append(wc); bs.append(bc)

    for w, b in params["decode"]:
        ws.append(pad_wt(w)); bs.append(pad_b(b))

    w_stack = jnp.stack(ws).astype(jnp.bfloat16)     # (18, 768, 768) bf16
    b_stack = jnp.stack(bs)[:, None, :]              # (18, 1, 768)  f32
    return w_stack, b_stack


# ---------------------------------------------------------------------------
# Pure-JAX mirror of the kernel arithmetic (same padded bf16 weights)
# ---------------------------------------------------------------------------
def vae_reference(w_stack, b_stack, x, eps):
    batch = x.shape[0]
    a = jnp.zeros((batch, HPAD), jnp.float32).at[:, :IN_DIM].set(x)
    eps_pad = jnp.zeros((batch, ZPAD), jnp.float32).at[:, :Z_DIM].set(eps)
    mu = logvar = recon = None
    for l in range(NUM_LAYERS):
        y = jnp.dot(a.astype(jnp.bfloat16), w_stack[l],
                    preferred_element_type=jnp.float32) + b_stack[l]
        if l < N_ENC - 1 or (MU_LAYER < l < LAST_LAYER - 1):
            a = jnp.maximum(y, 0.0)
        elif l == LAST_LAYER - 1:
            a = jnp.tanh(y)
        elif l == MU_LAYER:
            mu = y[:, :ZPAD]
            logvar = y[:, ZPAD:2 * ZPAD]
            z = eps_pad * jnp.exp(0.5 * logvar) + mu
            a = jnp.zeros((batch, HPAD), jnp.float32).at[:, :ZPAD].set(z)
        else:
            a = y
        if l == LAST_LAYER:
            recon = y
    return recon[:, :IN_DIM], mu[:, :Z_DIM], logvar[:, :Z_DIM]


# ---------------------------------------------------------------------------
if __name__ == "__main__":
    key = jax.random.PRNGKey(0)
    k_params, k_x, k_eps = jax.random.split(key, 3)

    params = init_vae_params(k_params, Z_DIM)
    w_stack, b_stack = pack_params(params)

    x = jax.random.normal(k_x, (BATCH, IN_DIM), jnp.float32)
    # eps ~ N(0,1): same role as torch.randn_like(std), drawn explicitly.
    eps = jax.random.normal(k_eps, (BATCH, Z_DIM), jnp.float32)

    def run_forward(weight_buffers):
        fn = jax.jit(functools.partial(vae_forward,
                                       weight_buffers=weight_buffers))
        out = fn(w_stack, b_stack, x, eps)
        jax.block_until_ready(out)
        return out

    try:
        recon, mu, logvar = run_forward(3)
    except Exception:
        # Fallback: default double-buffering if pl.Buffered(3) on a streamed
        # BlockSpec is rejected by this jax build.
        recon, mu, logvar = run_forward(None)

    assert recon.shape == (BATCH, IN_DIM)
    assert mu.shape == (BATCH, Z_DIM)
    assert logvar.shape == (BATCH, Z_DIM)
    assert all(bool(jnp.all(jnp.isfinite(t))) for t in (recon, mu, logvar))

    # Numerical check against a pure-JAX mirror of the same bf16 math.
    recon_r, mu_r, logvar_r = jax.jit(vae_reference)(w_stack, b_stack, x, eps)
    np.testing.assert_allclose(np.asarray(mu), np.asarray(mu_r),
                               atol=2e-2, rtol=2e-2)
    np.testing.assert_allclose(np.asarray(logvar), np.asarray(logvar_r),
                               atol=2e-2, rtol=2e-2)
    np.testing.assert_allclose(np.asarray(recon), np.asarray(recon_r),
                               atol=2e-2, rtol=2e-2)

    print("KERNEL_OK")
</pallas_src>

<mosaic_0001>
module attributes {stable_mosaic.version = 11 : i64} {
  func.func @_vae_fused_kernel(%arg0: i32, %arg1: memref<8x768xf32, #tpu.memory_space<vmem>>, %arg2: memref<8x128xf32, #tpu.memory_space<vmem>>, %arg3: memref<2x768x768xbf16, #tpu.memory_space<vmem>>, %arg4: memref<18x1x768xf32, #tpu.memory_space<vmem>>, %arg5: memref<8x768xf32, #tpu.memory_space<vmem>>, %arg6: memref<8x128xf32, #tpu.memory_space<vmem>>, %arg7: memref<8x128xf32, #tpu.memory_space<vmem>>, %arg8: memref<8x768xf32, #tpu.memory_space<vmem>>) attributes {dimension_semantics = [#tpu.dimension_semantics<arbitrary>], iteration_bounds = array<i64: 9>, scalar_prefetch = 0 : i64, scratch_operands = 1 : i64, tpu.core_type = #tpu.core_type<tc>, window_params = [{pipeline_mode = #tpu.pipeline_mode<synchronous>, transform_indices = @transform_0, window_bounds = array<i64: 8, 768>}, {pipeline_mode = #tpu.pipeline_mode<synchronous>, transform_indices = @transform_1, window_bounds = array<i64: 8, 128>}, {transform_indices = @transform_2, window_bounds = array<i64: 2, 768, 768>}, {pipeline_mode = #tpu.pipeline_mode<synchronous>, transform_indices = @transform_3, window_bounds = array<i64: 18, 1, 768>}, {pipeline_mode = #tpu.pipeline_mode<synchronous>, transform_indices = @transform_4, window_bounds = array<i64: 8, 768>}, {pipeline_mode = #tpu.pipeline_mode<synchronous>, transform_indices = @transform_5, window_bounds = array<i64: 8, 128>}, {pipeline_mode = #tpu.pipeline_mode<synchronous>, transform_indices = @transform_6, window_bounds = array<i64: 8, 128>}]} {
    %c0_i32 = arith.constant 0 : i32
    %0 = arith.cmpi eq, %arg0, %c0_i32 : i32
    %1 = arith.extui %0 : i1 to i32
    %c0_i32_0 = arith.constant 0 : i32
    %2 = arith.cmpi ne, %1, %c0_i32_0 : i32
    scf.if %2 {
      %c0_31 = arith.constant 0 : index
      %c0_32 = arith.constant 0 : index
      %61 = vector.load %arg1[%c0_31, %c0_32] : memref<8x768xf32, #tpu.memory_space<vmem>>, vector<8x768xf32>
      %c0_33 = arith.constant 0 : index
      %c0_34 = arith.constant 0 : index
      %62 = vector.load %arg8[%c0_33, %c0_34] : memref<8x768xf32, #tpu.memory_space<vmem>>, vector<8x768xf32>
      tpu.vector_store %arg8[%c0_33, %c0_34], %61 {strides = array<i32>} : memref<8x768xf32, #tpu.memory_space<vmem>>, vector<8x768xf32>,
    } else {
    }
    %c2_i32 = arith.constant 2 : i32
    %3 = arith.muli %arg0, %c2_i32 : i32
    %c0_i32_1 = arith.constant 0 : i32
    %4 = arith.addi %3, %c0_i32_1 : i32
    %c0 = arith.constant 0 : index
    %c0_2 = arith.constant 0 : index
    %5 = vector.load %arg8[%c0, %c0_2] : memref<8x768xf32, #tpu.memory_space<vmem>>, vector<8x768xf32>
    %6 = arith.truncf %5 : vector<8x768xf32> to vector<8x768xbf16>
    %c0_3 = arith.constant 0 : index
    %c0_4 = arith.constant 0 : index
    %c0_5 = arith.constant 0 : index
    %7 = vector.load %arg3[%c0_3, %c0_4, %c0_5] : memref<2x768x768xbf16, #tpu.memory_space<vmem>>, vector<1x768x768xbf16>
    %8 = vector.shape_cast %7 : vector<1x768x768xbf16> to vector<768x768xbf16>
    %cst = arith.constant dense<0.000000e+00> : vector<8x768xf32>
    %9 = tpu.matmul %6, %8, %cst {dimension_numbers = #tpu.dot_dimension_numbers<[1], [0], [0], [1], [0, 0, 1, 1], [], []>} : vector<8x768xbf16>, vector<768x768xbf16>, vector<8x768xf32> -> vector<8x768xf32>
    %10 = arith.index_cast %4 : i32 to index
    %c0_6 = arith.constant 0 : index
    %c0_7 = arith.constant 0 : index
    %11 = vector.load %arg4[%10, %c0_6, %c0_7] : memref<18x1x768xf32, #tpu.memory_space<vmem>>, vector<1x1x768xf32>
    %12 = vector.shape_cast %11 : vector<1x1x768xf32> to vector<1x768xf32>
    %13 = vector.broadcast %12 : vector<1x768xf32> to vector<8x768xf32>
    %14 = arith.addf %9, %13 : vector<8x768xf32>
    %c7_i32 = arith.constant 7 : i32
    %15 = arith.cmpi slt, %4, %c7_i32 : i32
    %c8_i32 = arith.constant 8 : i32
    %16 = arith.cmpi sgt, %4, %c8_i32 : i32
    %c16_i32 = arith.constant 16 : i32
    %17 = arith.cmpi slt, %4, %c16_i32 : i32
    %18 = arith.andi %16, %17 : i1
    %19 = arith.ori %15, %18 : i1
    %c16_i32_8 = arith.constant 16 : i32
    %20 = arith.cmpi eq, %4, %c16_i32_8 : i32
    %21 = arith.extui %19 : i1 to i32
    %c0_i32_9 = arith.constant 0 : i32
    %22 = arith.cmpi ne, %21, %c0_i32_9 : i32
    scf.if %22 {
      %cst_31 = arith.constant 0.000000e+00 : f32
      %61 = vector.broadcast %cst_31 : f32 to vector<8x768xf32>
      %62 = arith.maximumf %14, %61 : vector<8x768xf32>
      %c0_32 = arith.constant 0 : index
      %c0_33 = arith.constant 0 : index
      %63 = vector.load %arg8[%c0_32, %c0_33] : memref<8x768xf32, #tpu.memory_space<vmem>>, vector<8x768xf32>
      tpu.vector_store %arg8[%c0_32, %c0_33], %62 {strides = array<i32>} : memref<8x768xf32, #tpu.memory_space<vmem>>, vector<8x768xf32>,
    } else {
    }
    %23 = arith.extui %20 : i1 to i32
    %c0_i32_10 = arith.constant 0 : i32
    %24 = arith.cmpi ne, %23, %c0_i32_10 : i32
    scf.if %24 {
      %61 = math.tanh %14 : vector<8x768xf32>
      %c0_31 = arith.constant 0 : index
      %c0_32 = arith.constant 0 : index
      %62 = vector.load %arg8[%c0_31, %c0_32] : memref<8x768xf32, #tpu.memory_space<vmem>>, vector<8x768xf32>
      tpu.vector_store %arg8[%c0_31, %c0_32], %61 {strides = array<i32>} : memref<8x768xf32, #tpu.memory_space<vmem>>, vector<8x768xf32>,
    } else {
    }
    %25 = arith.ori %19, %20 : i1
    %true = arith.constant true
    %26 = arith.xori %25, %true : i1
    %27 = arith.extui %26 : i1 to i32
    %c0_i32_11 = arith.constant 0 : i32
    %28 = arith.cmpi ne, %27, %c0_i32_11 : i32
    scf.if %28 {
      %c0_31 = arith.constant 0 : index
      %c0_32 = arith.constant 0 : index
      %61 = vector.load %arg8[%c0_31, %c0_32] : memref<8x768xf32, #tpu.memory_space<vmem>>, vector<8x768xf32>
      tpu.vector_store %arg8[%c0_31, %c0_32], %14 {strides = array<i32>} : memref<8x768xf32, #tpu.memory_space<vmem>>, vector<8x768xf32>,
    } else {
    }
    %c8_i32_12 = arith.constant 8 : i32
    %29 = arith.cmpi eq, %4, %c8_i32_12 : i32
    %30 = arith.extui %29 : i1 to i32
    %c0_i32_13 = arith.constant 0 : i32
    %31 = arith.cmpi ne, %30, %c0_i32_13 : i32
    scf.if %31 {
      %61 = vector.extract_strided_slice %14 {offsets = [0, 0], sizes = [8, 128], strides = [1, 1]} : vector<8x768xf32> to vector<8x128xf32>
      %62 = vector.extract_strided_slice %14 {offsets = [0, 128], sizes = [8, 128], strides = [1, 1]} : vector<8x768xf32> to vector<8x128xf32>
      %c0_31 = arith.constant 0 : index
      %c0_32 = arith.constant 0 : index
      %63 = vector.load %arg6[%c0_31, %c0_32] : memref<8x128xf32, #tpu.memory_space<vmem>>, vector<8x128xf32>
      tpu.vector_store %arg6[%c0_31, %c0_32], %61 {strides = array<i32>} : memref<8x128xf32, #tpu.memory_space<vmem>>, vector<8x128xf32>,
      %c0_33 = arith.constant 0 : index
      %c0_34 = arith.constant 0 : index
      %64 = vector.load %arg7[%c0_33, %c0_34] : memref<8x128xf32, #tpu.memory_space<vmem>>, vector<8x128xf32>
      tpu.vector_store %arg7[%c0_33, %c0_34], %62 {strides = array<i32>} : memref<8x128xf32, #tpu.memory_space<vmem>>, vector<8x128xf32>,
      %c0_35 = arith.constant 0 : index
      %c0_36 = arith.constant 0 : index
      %65 = vector.load %arg2[%c0_35, %c0_36] : memref<8x128xf32, #tpu.memory_space<vmem>>, vector<8x128xf32>
      %cst_37 = arith.constant 5.000000e-01 : f32
      %66 = vector.broadcast %cst_37 : f32 to vector<8x128xf32>
      %67 = arith.mulf %66, %62 : vector<8x128xf32>
      %68 = math.exp %67 : vector<8x128xf32>
      %69 = arith.mulf %65, %68 : vector<8x128xf32>
      %70 = arith.addf %69, %61 : vector<8x128xf32>
      %cst_38 = arith.constant 0.000000e+00 : f32
      %71 = vector.broadcast %cst_38 : f32 to vector<8x768xf32>
      %c0_39 = arith.constant 0 : index
      %c0_40 = arith.constant 0 : index
      %72 = vector.load %arg8[%c0_39, %c0_40] : memref<8x768xf32, #tpu.memory_space<vmem>>, vector<8x768xf32>
      tpu.vector_store %arg8[%c0_39, %c0_40], %71 {strides = array<i32>} : memref<8x768xf32, #tpu.memory_space<vmem>>, vector<8x768xf32>,
      %c0_41 = arith.constant 0 : index
      %c0_42 = arith.constant 0 : index
      %73 = vector.load %arg8[%c0_41, %c0_42] : memref<8x768xf32, #tpu.memory_space<vmem>>, vector<8x128xf32>
      tpu.vector_store %arg8[%c0_41, %c0_42], %70 {strides = array<i32>} : memref<8x768xf32, #tpu.memory_space<vmem>>, vector<8x128xf32>,
    } else {
    }
    %c2_i32_14 = arith.constant 2 : i32
    %32 = arith.muli %arg0, %c2_i32_14 : i32
    %c1_i32 = arith.constant 1 : i32
    %33 = arith.addi %32, %c1_i32 : i32
    %c0_15 = arith.constant 0 : index
    %c0_16 = arith.constant 0 : index
    %34 = vector.load %arg8[%c0_15, %c0_16] : memref<8x768xf32, #tpu.memory_space<vmem>>, vector<8x768xf32>
    %35 = arith.truncf %34 : vector<8x768xf32> to vector<8x768xbf16>
    %c1 = arith.constant 1 : index
    %c0_17 = arith.constant 0 : index
    %c0_18 = arith.constant 0 : index
    %36 = vector.load %arg3[%c1, %c0_17, %c0_18] : memref<2x768x768xbf16, #tpu.memory_space<vmem>>, vector<1x768x768xbf16>
    %37 = vector.shape_cast %36 : vector<1x768x768xbf16> to vector<768x768xbf16>
    %cst_19 = arith.constant dense<0.000000e+00> : vector<8x768xf32>
    %38 = tpu.matmul %35, %37, %cst_19 {dimension_numbers = #tpu.dot_dimension_numbers<[1], [0], [0], [1], [0, 0, 1, 1], [], []>} : vector<8x768xbf16>, vector<768x768xbf16>, vector<8x768xf32> -> vector<8x768xf32>
    %39 = arith.index_cast %33 : i32 to index
    %c0_20 = arith.constant 0 : index
    %c0_21 = arith.constant 0 : index
    %40 = vector.load %arg4[%39, %c0_20, %c0_21] : memref<18x1x768xf32, #tpu.memory_space<vmem>>, vector<1x1x768xf32>
    %41 = vector.shape_cast %40 : vector<1x1x768xf32> to vector<1x768xf32>
    %42 = vector.broadcast %41 : vector<1x768xf32> to vector<8x768xf32>
    %43 = arith.addf %38, %42 : vector<8x768xf32>
    %c7_i32_22 = arith.constant 7 : i32
    %44 = arith.cmpi slt, %33, %c7_i32_22 : i32
    %c8_i32_23 = arith.constant 8 : i32
    %45 = arith.cmpi sgt, %33, %c8_i32_23 : i32
    %c16_i32_24 = arith.constant 16 : i32
    %46 = arith.cmpi slt, %33, %c16_i32_24 : i32
    %47 = arith.andi %45, %46 : i1
    %48 = arith.ori %44, %47 : i1
    %c16_i32_25 = arith.constant 16 : i32
    %49 = arith.cmpi eq, %33, %c16_i32_25 : i32
    %50 = arith.extui %48 : i1 to i32
    %c0_i32_26 = arith.constant 0 : i32
    %51 = arith.cmpi ne, %50, %c0_i32_26 : i32
    scf.if %51 {
      %cst_31 = arith.constant 0.000000e+00 : f32
      %61 = vector.broadcast %cst_31 : f32 to vector<8x768xf32>
      %62 = arith.maximumf %43, %61 : vector<8x768xf32>
      %c0_32 = arith.constant 0 : index
      %c0_33 = arith.constant 0 : index
      %63 = vector.load %arg8[%c0_32, %c0_33] : memref<8x768xf32, #tpu.memory_space<vmem>>, vector<8x768xf32>
      tpu.vector_store %arg8[%c0_32, %c0_33], %62 {strides = array<i32>} : memref<8x768xf32, #tpu.memory_space<vmem>>, vector<8x768xf32>,
    } else {
    }
    %52 = arith.extui %49 : i1 to i32
    %c0_i32_27 = arith.constant 0 : i32
    %53 = arith.cmpi ne, %52, %c0_i32_27 : i32
    scf.if %53 {
      %61 = math.tanh %43 : vector<8x768xf32>
      %c0_31 = arith.constant 0 : index
      %c0_32 = arith.constant 0 : index
      %62 = vector.load %arg8[%c0_31, %c0_32] : memref<8x768xf32, #tpu.memory_space<vmem>>, vector<8x768xf32>
      tpu.vector_store %arg8[%c0_31, %c0_32], %61 {strides = array<i32>} : memref<8x768xf32, #tpu.memory_space<vmem>>, vector<8x768xf32>,
    } else {
    }
    %54 = arith.ori %48, %49 : i1
    %true_28 = arith.constant true
    %55 = arith.xori %54, %true_28 : i1
    %56 = arith.extui %55 : i1 to i32
    %c0_i32_29 = arith.constant 0 : i32
    %57 = arith.cmpi ne, %56, %c0_i32_29 : i32
    scf.if %57 {
      %c0_31 = arith.constant 0 : index
      %c0_32 = arith.constant 0 : index
      %61 = vector.load %arg8[%c0_31, %c0_32] : memref<8x768xf32, #tpu.memory_space<vmem>>, vector<8x768xf32>
      tpu.vector_store %arg8[%c0_31, %c0_32], %43 {strides = array<i32>} : memref<8x768xf32, #tpu.memory_space<vmem>>, vector<8x768xf32>,
    } else {
    }
    %c17_i32 = arith.constant 17 : i32
    %58 = arith.cmpi eq, %33, %c17_i32 : i32
    %59 = arith.extui %58 : i1 to i32
    %c0_i32_30 = arith.constant 0 : i32
    %60 = arith.cmpi ne, %59, %c0_i32_30 : i32
    scf.if %60 {
      %c0_31 = arith.constant 0 : index
      %c0_32 = arith.constant 0 : index
      %61 = vector.load %arg5[%c0_31, %c0_32] : memref<8x768xf32, #tpu.memory_space<vmem>>, vector<8x768xf32>
      tpu.vector_store %arg5[%c0_31, %c0_32], %43 {strides = array<i32>} : memref<8x768xf32, #tpu.memory_space<vmem>>, vector<8x768xf32>,
    } else {
    }
    return
  }
  func.func @transform_0(%arg0: i32) -> (i32, i32) {
    %c0_i32 = arith.constant 0 : i32
    %c0_i32_0 = arith.constant 0 : i32
    %c0_i32_1 = arith.constant 0 : i32
    return %c0_i32, %c0_i32_0 : i32, i32
  }
  func.func @transform_1(%arg0: i32) -> (i32, i32) {
    %c0_i32 = arith.constant 0 : i32
    %c0_i32_0 = arith.constant 0 : i32
    %c0_i32_1 = arith.constant 0 : i32
    return %c0_i32, %c0_i32_0 : i32, i32
  }
  func.func @transform_2(%arg0: i32) -> (i32, i32, i32) {
    %c0_i32 = arith.constant 0 : i32
    %c0_i32_0 = arith.constant 0 : i32
    %c0_i32_1 = arith.constant 0 : i32
    return %arg0, %c0_i32, %c0_i32_0 : i32, i32, i32
  }
  func.func @transform_3(%arg0: i32) -> (i32, i32, i32) {
    %c0_i32 = arith.constant 0 : i32
    %c0_i32_0 = arith.constant 0 : i32
    %c0_i32_1 = arith.constant 0 : i32
    %c0_i32_2 = arith.constant 0 : i32
    return %c0_i32, %c0_i32_0, %c0_i32_1 : i32, i32, i32
  }
  func.func @transform_4(%arg0: i32) -> (i32, i32) {
    %c0_i32 = arith.constant 0 : i32
    %c0_i32_0 = arith.constant 0 : i32
    %c0_i32_1 = arith.constant 0 : i32
    return %c0_i32, %c0_i32_0 : i32, i32
  }
  func.func @transform_5(%arg0: i32) -> (i32, i32) {
    %c0_i32 = arith.constant 0 : i32
    %c0_i32_0 = arith.constant 0 : i32
    %c0_i32_1 = arith.constant 0 : i32
    return %c0_i32, %c0_i32_0 : i32, i32
  }
  func.func @transform_6(%arg0: i32) -> (i32, i32) {
    %c0_i32 = arith.constant 0 : i32
    %c0_i32_0 = arith.constant 0 : i32
    %c0_i32_1 = arith.constant 0 : i32
    return %c0_i32, %c0_i32_0 : i32, i32
  }
}

</mosaic_0001>

<bundles_post_ra>
// kernel: vae_forward.1
= control target key start
LH: loop header
LB: loop body
LE: loop exit
PB: predicated region body
PF: predicated region fallthrough
CT: control target
= control target key end

     0   :  { %12 = vsyncpa [#allocation4], 0  ;;  %s10002_s0 = inlined_call_operand.vmem [shape: f32[8,768], index: 0, kind: input, shape index: {}]   ;;  %s10003_s1 = inlined_call_operand.vmem [shape: f32[8,128], index: 1, kind: input, shape index: {}]   ;;  %s10004_s2 = inlined_call_operand.hbm [shape: bf16[18,768,768], index: 2, kind: input, shape index: {}]   ;;  %s10005_s3 = inlined_call_operand.hbm [shape: f32[18,1,768], index: 3, kind: input, shape index: {}]   ;;  %s10006_s4 = inlined_call_operand.vmem [shape: f32[8,768], index: 4, kind: output, shape index: {0}]   ;;  %s10007_s5 = inlined_call_operand.hbm [shape: f32[8,128], index: 5, kind: output, shape index: {1}]   ;;  %s10008_s6 = inlined_call_operand.hbm [shape: f32[8,128], index: 6, kind: output, shape index: {2}]  }
   0x1   :  { %14 = vsyncpa [#allocation4 + $0x1], 0 }
   0x2   :  { %15 = vsyncpa [#allocation7], 0 }
   0x3   :  { %16 = vsyncpa [#allocation5], 0 }
   0x4   :  { %17 = vsyncpa [#allocation10], 0  ;;  %s8470_s21 = smov 0   ;;  %s8472_s22 = smov 0  }
   0x5   :  { %s8474_s23 = smov 0   ;;  %s8476_s24 = smov 0  }
   0x6 LB: > { %s8489_s25 = sadd.s32 4294967295, %s8425_s24   ;;  %p85_p0 = scmp.ne.s32.totalorder %s8417_s22, %s8413_s21  ;;  %s8425_s24 = sphi %s8476_s24, %s10017_s24   ;;  %s8421_s23 = sphi %s8474_s23, %s10016_s23   ;;  %s8417_s22 = sphi %s8472_s22, %s10015_s22   ;;  %s8413_s21 = sphi %s8470_s21, %s10014_s21  }
   0x7   : > { %p86_p1 = scmp.eq.s32.totalorder %s8489_s25, 0  ;;  %p4971_p2 = scmp.ge.s32.totalorder %s8425_s24, 1 }
   0x8   : > { %p180_p3 = scmp.lt.s32.totalorder %s8425_s24, 10  ;;  %p4972_p4 = scmp.ne.s32.totalorder %s8489_s25, 0 }
   0x9   : > { %p8498_p5 = por %p86_p1, %p85_p0  ;;  %s197_s29 = sshll.u32 %s10005_s3, 4  ;;  %s198_s29 = int_to_ptr.hbm [resolvable:$true] %s197_s29 }
   0xa   : > { %p8505_p6 = pnand %p4971_p2, %p180_p3  ;;  %s8427_s7 = smov [#allocation6]  }
   0xb   : > { %s199_s8 = sshll.u32 %s8427_s7, 4  ;;  %s8514_s9 = sadd.s32 1, %s8425_s24   ;;  %s200_s8 = int_to_ptr.vmem [resolvable:$true] %s199_s8 }
   0xc   : > { %p8180_p7 = pneg %p8505_p6  ;;  %s8428_s10 = smov 96  }
   0xd   : > { %s8429_s11 = smov 6   ;;  %s69_s12 = ssub.s32 %s8425_s24, %s8514_s9 }
   0xe   : > { %p8181_p8 = pnand %p8180_p7, %p86_p1  ;;  %s72_s13 = sadd.s32 1, %s8421_s23 }
   0xf   : > { %p70_p9 = scmp.eq.s32.totalorder %s69_s12, 0  ;;  %p79_p10 = scmp.ne.s32.totalorder %s8421_s23, %s8417_s22 }
  0x10   : > { %8183 = dma.hbm_to_vmem [thread:$0]  (!%p8181_p8), %s198_s29, 1728, %s200_s8, [#allocation7], %s8428_s10, %s8428_s10, %s8429_s11  }
  0x11   : > { %p80_p11 = scmp.eq.s32.totalorder %s8425_s24, 0  ;;  %p8189_p12 = scmp.lt.s32.totalorder %s8425_s24, 9 }
  0x12   : > { %s8524_s14 = scalar_select %p70_p9, %s8421_s23, %s72_s13  }
  0x13   : > { %p81_p13 = por %p80_p11, %p79_p10  ;;  %s213_s15 = sand.u32 1, %s8421_s23  }
  0x14   : > { %s8163_s16 = smul.u32 4608, %s213_s15  ;;  %s214_s7 = scalar_lea.sflag [#allocation4], %s213_s15 }
  0x15   : > { %s8164_s17 = smul.u32 4608, %s8425_s24  ;;  %p8528_p0 = pnand %p8189_p12, %p81_p13 }
  0x16   : > { %s217_s27 = scalar_lea.vmem [#allocation3], %s8163_s16  ;;  %s8300_s12 = scalar_lea.hbm %s10004_s2, 41472 }
  0x17   : > { %s223_s21 = scalar_lea.hbm %s10004_s2, %s8164_s17  ;;  %s226_s28 = sshll.u32 %s217_s27, 4  ;;  %s227_s28 = int_to_ptr.vmem [resolvable:$true] %s226_s28 }
  0x18   : > { %s224_s29 = sshll.u32 %s223_s21, 4  ;;  %p8297_p3 = pneg %p8528_p0  ;;  %s225_s29 = int_to_ptr.hbm [resolvable:$true] %s224_s29 }
  0x19   : > { %s8293_s8 = sshra.s32 %s225_s29, 4  ;;  %s8294_s8 = int_to_ptr.hbm [resolvable:$true] %s8293_s8 }
  0x1a   : > { %s8295_s10 = scalar_lea.hbm %s8294_s8, 4608  ;;  %p8301_p9 = scmp.lt.s32.totalorder %s8294_s8, %s10004_s2 }
  0x1b   : > { %p8296_p2 = scmp.ne.s32.totalorder %s8294_s8, %s8295_s10  ;;  %p8302_p10 = scmp.lt.s32.totalorder %s8300_s12, %s8295_s10 }
  0x1d   : > { %p8298_p7 = pnand %p8297_p3, %p8296_p2  ;;  %p8303_p11 = por %p8302_p10, %p8301_p9 }
  0x1f   : > { %p8299_p8 = pneg %p8298_p7 }
  0x21   : > { %p8304_p12 = pnand %p8303_p11, %p8299_p8 }
  0x23   : > { %8307 = shalt.err (!%p8304_p12)
}
  0x24   : > { %s8430_s15 = smov 384   ;;  %s8431_s16 = smov 24  }
  0x25   : > { %8187 = dma.hbm_to_vmem [thread:$0]  (!%p8528_p0), %s225_s29, 73728, %s227_s28, %s214_s7, %s8430_s15, %s8430_s15, %s8431_s16  }
  0x26   : > { %238 = sbr.rel (%p8505_p6) target bundleno = 1036 (0x40c), region = 36  ;;  %s240_s19 = sand.u32 (!%p8505_p6), 1, %s8417_s22  }
  0x27   : > { %s8165_s20 = smul.u32 (!%p8505_p6), 4608, %s240_s19  ;;  %s241_s21 = scalar_lea.sflag (!%p8505_p6), [#allocation4], %s240_s19 }
  0x29   : > { %s8548_s27 = scalar_lea.vmem (!%p8505_p6), [#allocation3], %s8165_s20 }
  0x2b   : > { %8396 = dma.done.wait (%p8498_p5), %s241_s21, 73728  }
  0x2c   : > { %8398 = vsyncadd (%p8498_p5), %s241_s21, 4294893568 }
  0x2d   : > { %8400 = dma.done.wait (%p86_p1), [#allocation7], 1728  }
  0x2e   : > { %8402 = vsyncadd (%p86_p1), [#allocation7], 4294965568  ;;  %278 = sbr.rel (%p4972_p4) target bundleno = 58 (0x3a), region = 48 }
  0x33   : > { %v279_v0 = vld [vmem:[%s10002_s0] sm:$0xff]  ;;  %v280_v1 = vld [vmem:[%s10002_s0 + $0x8] sm:$0xff]  ;;  %v281_v2 = vld [vmem:[%s10002_s0 + $0x10] sm:$0xff] }
  0x34   : > { %285 = vst [vmem:[#allocation2 + $0x28] sm:$0xff] %v279_v0  ;;  %v282_v3 = vld [vmem:[%s10002_s0 + $0x18] sm:$0xff]  ;;  %v283_v4 = vld [vmem:[%s10002_s0 + $0x20] sm:$0xff]  ;;  %v284_v5 = vld [vmem:[%s10002_s0 + $0x28] sm:$0xff] }
  0x35   : > { %286 = vst [vmem:[#allocation2 + $0x10] sm:$0xff] %v280_v1 }
  0x36   : > { %287 = vst [vmem:[#allocation2 + $0x8] sm:$0xff] %v281_v2 }
  0x37   : > { %288 = vst [vmem:[#allocation2] sm:$0xff] %v282_v3 }
  0x38   : > { %289 = vst [vmem:[#allocation2 + $0x18] sm:$0xff] %v283_v4 }
  0x39   : > { %290 = vst [vmem:[#allocation2 + $0x20] sm:$0xff] %v284_v5 }
  0x3a PF: > { %v5152_v6 = vld [vmem:[%s8548_s27 + $0x150] sm:$0xf]  ;;  %v7632_v7 = vld [vmem:[%s8548_s27 + $0x164] sm:$0xf0]  ;;  %v5128_v18 = vld [vmem:[%s8548_s27 + $0x120] sm:$0xf] }
  0x3b   : > { %v5153_v8 = vor.u32 %v7632_v7, %v5152_v6  ;;  %v5344_v9 = vld [vmem:[%s8548_s27 + $0x2d0] sm:$0xf]  ;;  %v7680_v10 = vld [vmem:[%s8548_s27 + $0x2e4] sm:$0xf0]  ;;  %v7626_v19 = vld [vmem:[%s8548_s27 + $0x134] sm:$0xf0] }
  0x3c   : > { %v5536_v11 = vld [vmem:[%s8548_s27 + $0x450] sm:$0xf]  ;;  %v5345_v12 = vor.u32 %v7680_v10, %v5344_v9  ;;  %v7728_v13 = vld [vmem:[%s8548_s27 + $0x464] sm:$0xf0]  ;;  %v5320_v20 = vld [vmem:[%s8548_s27 + $0x2a0] sm:$0xf]  ;;  %v5129_v21 = vor.u32 %v7626_v19, %v5128_v18 }
  0x3d   : > { %v5728_v14 = vld [vmem:[%s8548_s27 + $0x5d0] sm:$0xf]  ;;  %v7776_v15 = vld [vmem:[%s8548_s27 + $0x5e4] sm:$0xf0]  ;;  %2048 = vmatpush.bf16.msra.mxu0 %v5153_v8  ;;  %v5537_v16 = vor.u32 %v7728_v13, %v5536_v11  ;;  %v7674_v22 = vld [vmem:[%s8548_s27 + $0x2b4] sm:$0xf0] }
  0x3e   : > { %v5729_v17 = vor.u32 %v7776_v15, %v5728_v14  ;;  %2061 = vmatpush.bf16.msra.mxu1 %v5345_v12  ;;  %v5512_v23 = vld [vmem:[%s8548_s27 + $0x420] sm:$0xf]  ;;  %v7722_v24 = vld [vmem:[%s8548_s27 + $0x434] sm:$0xf0]  ;;  %v5321_v25 = vor.u32 %v7674_v22, %v5320_v20  ;;  %v5104_v29 = vld [vmem:[%s8548_s27 + $0xf0] sm:$0xf] }
  0x3f   : > { %2074 = vmatpush.bf16.msra.mxu2 %v5537_v16  ;;  %v5513_v26 = vor.u32 %v7722_v24, %v5512_v23  ;;  %v5704_v27 = vld [vmem:[%s8548_s27 + $0x5a0] sm:$0xf]  ;;  %v7770_v28 = vld [vmem:[%s8548_s27 + $0x5b4] sm:$0xf0]  ;;  %v7620_v31 = vld [vmem:[%s8548_s27 + $0x104] sm:$0xf0] }
  0x40   : > { %2087 = vmatpush.bf16.msra.mxu3 %v5729_v17  ;;  %v5705_v30 = vor.u32 %v7770_v28, %v5704_v27  ;;  %v5296_v32 = vld [vmem:[%s8548_s27 + $0x270] sm:$0xf]  ;;  %v7668_v33 = vld [vmem:[%s8548_s27 + $0x284] sm:$0xf0]  ;;  %v5105_v34 = vor.u32 %v7620_v31, %v5104_v29  ;;  %v5080_v40 = vld [vmem:[%s8548_s27 + $0xc0] sm:$0xf] }
  0x41   : > { %2049 = vmatpush.bf16.msra.mxu0 %v5129_v21  ;;  %v5488_v35 = vld [vmem:[%s8548_s27 + $0x3f0] sm:$0xf]  ;;  %v7716_v36 = vld [vmem:[%s8548_s27 + $0x404] sm:$0xf0]  ;;  %v5297_v38 = vor.u32 %v7668_v33, %v5296_v32  ;;  %v7614_v41 = vld [vmem:[%s8548_s27 + $0xd4] sm:$0xf0] }
  0x42   : > { %v5680_v37 = vld [vmem:[%s8548_s27 + $0x570] sm:$0xf]  ;;  %2062 = vmatpush.bf16.msra.mxu1 %v5321_v25  ;;  %v7764_v39 = vld [vmem:[%s8548_s27 + $0x584] sm:$0xf0]  ;;  %v5489_v42 = vor.u32 %v7716_v36, %v5488_v35  ;;  %v5272_v44 = vld [vmem:[%s8548_s27 + $0x240] sm:$0xf]  ;;  %v5081_v50 = vor.u32 %v7614_v41, %v5080_v40 }
  0x43   : > { %2075 = vmatpush.bf16.msra.mxu2 %v5513_v26  ;;  %v5681_v43 = vor.u32 %v7764_v39, %v5680_v37  ;;  %v7662_v45 = vld [vmem:[%s8548_s27 + $0x254] sm:$0xf0]  ;;  %v5464_v46 = vld [vmem:[%s8548_s27 + $0x3c0] sm:$0xf]  ;;  %v5056_v52 = vld [vmem:[%s8548_s27 + $0x90] sm:$0xf] }
  0x44   : > { %2088 = vmatpush.bf16.msra.mxu3 %v5705_v30  ;;  %v7710_v47 = vld [vmem:[%s8548_s27 + $0x3d4] sm:$0xf0]  ;;  %v5656_v48 = vld [vmem:[%s8548_s27 + $0x540] sm:$0xf]  ;;  %v5273_v51 = vor.u32 %v7662_v45, %v5272_v44  ;;  %v7608_v53 = vld [vmem:[%s8548_s27 + $0xa4] sm:$0xf0] }
  0x45   : > { %v7758_v49 = vld [vmem:[%s8548_s27 + $0x554] sm:$0xf0]  ;;  %2050 = vmatpush.bf16.msra.mxu0 %v5105_v34  ;;  %v5465_v54 = vor.u32 %v7710_v47, %v5464_v46  ;;  %v5248_v56 = vld [vmem:[%s8548_s27 + $0x210] sm:$0xf]  ;;  %v7656_v57 = vld [vmem:[%s8548_s27 + $0x224] sm:$0xf0]  ;;  %v5057_v62 = vor.u32 %v7608_v53, %v5056_v52 }
  0x46   : > { %2063 = vmatpush.bf16.msra.mxu1 %v5297_v38  ;;  %v5657_v55 = vor.u32 %v7758_v49, %v5656_v48  ;;  %v5440_v58 = vld [vmem:[%s8548_s27 + $0x390] sm:$0xf]  ;;  %v7704_v59 = vld [vmem:[%s8548_s27 + $0x3a4] sm:$0xf0]  ;;  %v5249_v63 = vor.u32 %v7656_v57, %v5248_v56  ;;  %v5032_v0 = vld [vmem:[%s8548_s27 + $0x60] sm:$0xf] }
  0x47   : > { %2076 = vmatpush.bf16.msra.mxu2 %v5489_v42  ;;  %v5632_v60 = vld [vmem:[%s8548_s27 + $0x510] sm:$0xf]  ;;  %v7752_v61 = vld [vmem:[%s8548_s27 + $0x524] sm:$0xf0]  ;;  %v7602_v1 = vld [vmem:[%s8548_s27 + $0x74] sm:$0xf0]  ;;  %v5441_v2 = vor.u32 %v7704_v59, %v5440_v58 }
  0x48   : > { %2089 = vmatpush.bf16.msra.mxu3 %v5681_v43  ;;  %v5633_v3 = vor.u32 %v7752_v61, %v5632_v60  ;;  %v5224_v4 = vld [vmem:[%s8548_s27 + $0x1e0] sm:$0xf]  ;;  %v7650_v5 = vld [vmem:[%s8548_s27 + $0x1f4] sm:$0xf0]  ;;  %v5033_v10 = vor.u32 %v7602_v1, %v5032_v0  ;;  %v5008_v12 = vld [vmem:[%s8548_s27 + $0x30] sm:$0xf] }
  0x49   : > { %2051 = vmatpush.bf16.msra.mxu0 %v5081_v50  ;;  %v5416_v6 = vld [vmem:[%s8548_s27 + $0x360] sm:$0xf]  ;;  %v7698_v7 = vld [vmem:[%s8548_s27 + $0x374] sm:$0xf0]  ;;  %v5225_v11 = vor.u32 %v7650_v5, %v5224_v4  ;;  %v7596_v13 = vld [vmem:[%s8548_s27 + $0x44] sm:$0xf0] }
  0x4a   : > { %2064 = vmatpush.bf16.msra.mxu1 %v5273_v51  ;;  %v5608_v8 = vld [vmem:[%s8548_s27 + $0x4e0] sm:$0xf]  ;;  %v7746_v9 = vld [vmem:[%s8548_s27 + $0x4f4] sm:$0xf0]  ;;  %v5417_v14 = vor.u32 %v7698_v7, %v5416_v6  ;;  %v5200_v16 = vld [vmem:[%s8548_s27 + $0x1b0] sm:$0xf]  ;;  %v5009_v22 = vor.u32 %v7596_v13, %v5008_v12 }
  0x4b   : > { %2077 = vmatpush.bf16.msra.mxu2 %v5465_v54  ;;  %v5609_v15 = vor.u32 %v7746_v9, %v5608_v8  ;;  %v7644_v17 = vld [vmem:[%s8548_s27 + $0x1c4] sm:$0xf0]  ;;  %v5392_v18 = vld [vmem:[%s8548_s27 + $0x330] sm:$0xf]  ;;  %v4984_v23 = vld [vmem:[%s8548_s27] sm:$0xf] }
  0x4c   : > { %2090 = vmatpush.bf16.msra.mxu3 %v5657_v55  ;;  %v7692_v19 = vld [vmem:[%s8548_s27 + $0x344] sm:$0xf0]  ;;  %v5584_v20 = vld [vmem:[%s8548_s27 + $0x4b0] sm:$0xf]  ;;  %v7590_v24 = vld [vmem:[%s8548_s27 + $0x14] sm:$0xf0]  ;;  %v5201_v25 = vor.u32 %v7644_v17, %v5200_v16 }
  0x4d   : > { %2052 = vmatpush.bf16.msra.mxu0 %v5057_v62  ;;  %v7740_v21 = vld [vmem:[%s8548_s27 + $0x4c4] sm:$0xf0]  ;;  %v5176_v26 = vld [vmem:[%s8548_s27 + $0x180] sm:$0xf]  ;;  %v7638_v27 = vld [vmem:[%s8548_s27 + $0x194] sm:$0xf0]  ;;  %v5393_v29 = vor.u32 %v7692_v19, %v5392_v18  ;;  %v4985_v37 = vor.u32 %v7590_v24, %v4984_v23 }
  0x4e   : > { %2065 = vmatpush.bf16.msra.mxu1 %v5249_v63  ;;  %v5368_v28 = vld [vmem:[%s8548_s27 + $0x300] sm:$0xf]  ;;  %v5585_v30 = vor.u32 %v7740_v21, %v5584_v20  ;;  %v7686_v31 = vld [vmem:[%s8548_s27 + $0x314] sm:$0xf0]  ;;  %v5920_v32 = vld [vmem:[%s8548_s27 + $0x750] sm:$0xf]  ;;  %v5177_v41 = vor.u32 %v7638_v27, %v5176_v26 }
  0x4f   : > { %2078 = vmatpush.bf16.msra.mxu2 %v5441_v2  ;;  %v7824_v33 = vld [vmem:[%s8548_s27 + $0x764] sm:$0xf0]  ;;  %v5560_v34 = vld [vmem:[%s8548_s27 + $0x480] sm:$0xf]  ;;  %v7734_v35 = vld [vmem:[%s8548_s27 + $0x494] sm:$0xf0]  ;;  %v5369_v45 = vor.u32 %v7686_v31, %v5368_v28 }
  0x50   : > { %2091 = vmatpush.bf16.msra.mxu3 %v5633_v3  ;;  %v6112_v36 = vld [vmem:[%s8548_s27 + $0x8d0] sm:$0xf]  ;;  %v7872_v38 = vld [vmem:[%s8548_s27 + $0x8e4] sm:$0xf0]  ;;  %v7629_v39 = vld [vmem:[%s8548_s27 + $0x154] sm:$0xf]  ;;  %v5921_v42 = vor.u32 %v7824_v33, %v5920_v32  ;;  %v5561_v46 = vor.u32 %v7734_v35, %v5560_v34 }
  0x51   : > { %2053 = vmatpush.bf16.msra.mxu0 %v5033_v10  ;;  %v5154_v40 = vld [vmem:[%s8548_s27 + $0x168] sm:$0xf0]  ;;  %v7677_v43 = vld [vmem:[%s8548_s27 + $0x2d4] sm:$0xf]  ;;  %v5896_v47 = vld [vmem:[%s8548_s27 + $0x720] sm:$0xf]  ;;  %v6113_v49 = vor.u32 %v7872_v38, %v6112_v36 }
  0x52   : > { %2066 = vmatpush.bf16.msra.mxu1 %v5225_v11  ;;  %v5346_v44 = vld [vmem:[%s8548_s27 + $0x2e8] sm:$0xf0]  ;;  %v7818_v48 = vld [vmem:[%s8548_s27 + $0x734] sm:$0xf0]  ;;  %v5157_v50 = vor.u32 %v7629_v39, %v5154_v40  ;;  %v6088_v51 = vld [vmem:[%s8548_s27 + $0x8a0] sm:$0xf] }
  0x53   : > { %2079 = vmatpush.bf16.msra.mxu2 %v5417_v14  ;;  %v5349_v52 = vor.u32 %v7677_v43, %v5346_v44  ;;  %v7866_v53 = vld [vmem:[%s8548_s27 + $0x8b4] sm:$0xf0]  ;;  %v7623_v54 = vld [vmem:[%s8548_s27 + $0x124] sm:$0xf]  ;;  %v5130_v55 = vld [vmem:[%s8548_s27 + $0x138] sm:$0xf0]  ;;  %v5897_v56 = vor.u32 %v7818_v48, %v5896_v47 }
  0x54   : > { %2092 = vmatpush.bf16.msra.mxu3 %v5609_v15  ;;  %v7671_v57 = vld [vmem:[%s8548_s27 + $0x2a4] sm:$0xf]  ;;  %v5322_v58 = vld [vmem:[%s8548_s27 + $0x2b8] sm:$0xf0]  ;;  %v5872_v59 = vld [vmem:[%s8548_s27 + $0x6f0] sm:$0xf]  ;;  %v6089_v61 = vor.u32 %v7866_v53, %v6088_v51  ;;  %v5133_v62 = vor.u32 %v7623_v54, %v5130_v55 }
  0x55   : > { %2054 = vmatpush.bf16.msra.mxu0 %v5009_v22  ;;  %v7812_v60 = vld [vmem:[%s8548_s27 + $0x704] sm:$0xf0]  ;;  %v6064_v63 = vld [vmem:[%s8548_s27 + $0x870] sm:$0xf]  ;;  %v5325_v0 = vor.u32 %v7671_v57, %v5322_v58  ;;  %v7617_v2 = vld [vmem:[%s8548_s27 + $0xf4] sm:$0xf] }
  0x56   : > { %2067 = vmatpush.bf16.msra.mxu1 %v5201_v25  ;;  %v7860_v1 = vld [vmem:[%s8548_s27 + $0x884] sm:$0xf0]  ;;  %v5106_v3 = vld [vmem:[%s8548_s27 + $0x108] sm:$0xf0]  ;;  %v5873_v4 = vor.u32 %v7812_v60, %v5872_v59  ;;  %v7665_v5 = vld [vmem:[%s8548_s27 + $0x274] sm:$0xf] }
  0x57   : > { %2080 = vmatpush.bf16.msra.mxu2 %v5393_v29  ;;  %v5298_v6 = vld [vmem:[%s8548_s27 + $0x288] sm:$0xf0]  ;;  %v5848_v7 = vld [vmem:[%s8548_s27 + $0x6c0] sm:$0xf]  ;;  %v7806_v8 = vld [vmem:[%s8548_s27 + $0x6d4] sm:$0xf0]  ;;  %v6065_v11 = vor.u32 %v7860_v1, %v6064_v63  ;;  %v5109_v12 = vor.u32 %v7617_v2, %v5106_v3 }
  0x58   : > { %2093 = vmatpush.bf16.msra.mxu3 %v5585_v30  ;;  %v6040_v9 = vld [vmem:[%s8548_s27 + $0x840] sm:$0xf]  ;;  %v292_v10 = vld [vmem:[#allocation2 + $0x28] sm:$0xff]  ;;  %v295_v15 = vld [vmem:[#allocation2] sm:$0xff]  ;;  %v5301_v17 = vor.u32 %v7665_v5, %v5298_v6  ;;  %v5849_v23 = vor.u32 %v7806_v8, %v5848_v7  ;;  %s4981_s17 = smul.u32 12, %s8489_s25  ;;  %s9224_s16 = sshll.u32 %s8489_s25, 1 }
  0x59   : > { %2055 = vmatpush.bf16.msra.mxu0 %v4985_v37  ;;  %v8669_v13 = vpack.c.bf16 %v292_v10, %v292_v10  ;;  %v294_v14 = vld [vmem:[#allocation2 + $0x8] sm:$0xff]  ;;  %v293_v16 = vld [vmem:[#allocation2 + $0x10] sm:$0xff]  ;;  %v8680_v26 = vpack.c.bf16 %v295_v15, %v295_v15  ;;  %v5824_v27 = vld [vmem:[%s8548_s27 + $0x690] sm:$0xf]  ;;  %p2517_p1 = scmp.gt.s32.totalorder %s9224_s16, 8  ;;  %p2518_p4 = scmp.lt.s32.totalorder %s9224_s16, 16 }
  0x5a   : > { %2068 = vmatpush.bf16.msra.mxu1 %v5177_v41  ;;  %v7854_v18 = vld [vmem:[%s8548_s27 + $0x854] sm:$0xf0]  ;;  %v7611_v19 = vld [vmem:[%s8548_s27 + $0xc4] sm:$0xf]  ;;  %v5082_v20 = vld [vmem:[%s8548_s27 + $0xd8] sm:$0xf0]  ;;  %v8674_v21 = vpack.c.bf16 %v294_v14, %v294_v14  ;;  %v8676_v22 = vpack.c.bf16 %v293_v16, %v293_v16 }
  0x5b   : > { %2081 = vmatpush.bf16.msra.mxu2 %v5369_v45  ;;  %v7659_v24 = vld [vmem:[%s8548_s27 + $0x244] sm:$0xf]  ;;  %v5274_v25 = vld [vmem:[%s8548_s27 + $0x258] sm:$0xf0]  ;;  %v7800_v28 = vld [vmem:[%s8548_s27 + $0x6a4] sm:$0xf0]  ;;  %v6041_v29 = vor.u32 %v7854_v18, %v6040_v9  ;;  %v5085_v30 = vor.u32 %v7611_v19, %v5082_v20  ;;  %p2519_p5 = pnand %p2518_p4, %p2517_p1 }
  0x5c   : > { %2094 = vmatpush.bf16.msra.mxu3 %v5561_v46  ;;  %2056 = vmatmul.bf16.vlgmr.msra.gmra.mxu0 %v8669_v13  ;;  %v6016_v31 = vld [vmem:[%s8548_s27 + $0x810] sm:$0xf]  ;;  %v5277_v32 = vor.u32 %v7659_v24, %v5274_v25  ;;  %v7848_v33 = vld [vmem:[%s8548_s27 + $0x824] sm:$0xf0]  ;;  %v7605_v34 = vld [vmem:[%s8548_s27 + $0x94] sm:$0xf]  ;;  %v5825_v36 = vor.u32 %v7800_v28, %v5824_v27 }
  0x5d   : > { %2100 = vmatpush.bf16.msrb.mxu0 %v5921_v42  ;;  %v5058_v35 = vld [vmem:[%s8548_s27 + $0xa8] sm:$0xf0]  ;;  %2069 = vmatmul.bf16.vlgmr.msra.gmra.mxu1 %v8676_v22  ;;  %v7653_v37 = vld [vmem:[%s8548_s27 + $0x214] sm:$0xf]  ;;  %v5800_v39 = vld [vmem:[%s8548_s27 + $0x660] sm:$0xf]  ;;  %v6017_v41 = vor.u32 %v7848_v33, %v6016_v31  ;;  %p2520_p13 = pneg %p2519_p5 }
  0x5e   : > { %2113 = vmatpush.bf16.msrb.mxu1 %v6113_v49  ;;  %2082 = vmatmul.bf16.vlgmr.msra.gmra.mxu2 %v8674_v21  ;;  %v5250_v38 = vld [vmem:[%s8548_s27 + $0x228] sm:$0xf0]  ;;  %v7794_v40 = vld [vmem:[%s8548_s27 + $0x674] sm:$0xf0]  ;;  %v5061_v42 = vor.u32 %v7605_v34, %v5058_v35  ;;  %v5992_v43 = vld [vmem:[%s8548_s27 + $0x7e0] sm:$0xf] }
  0x5f   : > { %2126 = vmatpush.bf16.msrb.mxu2 %v5157_v50  ;;  %2095 = vmatmul.bf16.vlgmr.msra.gmra.mxu3 %v8680_v26  ;;  %v5253_v44 = vor.u32 %v7653_v37, %v5250_v38  ;;  %v7842_v45 = vld [vmem:[%s8548_s27 + $0x7f4] sm:$0xf0]  ;;  %v7599_v46 = vld [vmem:[%s8548_s27 + $0x64] sm:$0xf]  ;;  %v5034_v47 = vld [vmem:[%s8548_s27 + $0x78] sm:$0xf0]  ;;  %v5801_v48 = vor.u32 %v7794_v40, %v5800_v39 }
  0x60   : > { %2139 = vmatpush.bf16.msrb.mxu3 %v5349_v52  ;;  %v7647_v49 = vld [vmem:[%s8548_s27 + $0x1e4] sm:$0xf]  ;;  %v5226_v50 = vld [vmem:[%s8548_s27 + $0x1f8] sm:$0xf0]  ;;  %v5776_v51 = vld [vmem:[%s8548_s27 + $0x630] sm:$0xf]  ;;  %v5993_v53 = vor.u32 %v7842_v45, %v5992_v43  ;;  %v5037_v54 = vor.u32 %v7599_v46, %v5034_v47 }
  0x61   : > { %2101 = vmatpush.bf16.msrb.mxu0 %v5897_v56  ;;  %v7788_v52 = vld [vmem:[%s8548_s27 + $0x644] sm:$0xf0]  ;;  %v5968_v55 = vld [vmem:[%s8548_s27 + $0x7b0] sm:$0xf]  ;;  %v5229_v56 = vor.u32 %v7647_v49, %v5226_v50  ;;  %v7593_v58 = vld [vmem:[%s8548_s27 + $0x34] sm:$0xf] }
  0x62   : > { %2114 = vmatpush.bf16.msrb.mxu1 %v6089_v61  ;;  %v7836_v57 = vld [vmem:[%s8548_s27 + $0x7c4] sm:$0xf0]  ;;  %v5010_v59 = vld [vmem:[%s8548_s27 + $0x48] sm:$0xf0]  ;;  %v5777_v60 = vor.u32 %v7788_v52, %v5776_v51  ;;  %v7641_v61 = vld [vmem:[%s8548_s27 + $0x1b4] sm:$0xf] }
  0x63   : > { %2127 = vmatpush.bf16.msrb.mxu2 %v5133_v62  ;;  %v5202_v62 = vld [vmem:[%s8548_s27 + $0x1c8] sm:$0xf0]  ;;  %v5752_v63 = vld [vmem:[%s8548_s27 + $0x600] sm:$0xf]  ;;  %v7830_v2 = vld [vmem:[%s8548_s27 + $0x794] sm:$0xf0]  ;;  %v5969_v3 = vor.u32 %v7836_v57, %v5968_v55 }
  0x64   : > { %2140 = vmatpush.bf16.msrb.mxu3 %v5325_v0  ;;  %v7782_v0 = vld [vmem:[%s8548_s27 + $0x614] sm:$0xf0]  ;;  %v5944_v1 = vld [vmem:[%s8548_s27 + $0x780] sm:$0xf]  ;;  %v7587_v5 = vld [vmem:[%s8548_s27 + $0x4] sm:$0xf]  ;;  %v5205_v8 = vor.u32 %v7641_v61, %v5202_v62 }
  0x65   : > { %2102 = vmatpush.bf16.msrb.mxu0 %v5873_v4  ;;  %v5013_v4 = vor.u32 %v7593_v58, %v5010_v59  ;;  %v7725_v6 = vld [vmem:[%s8548_s27 + $0x454] sm:$0xf]  ;;  %v5538_v7 = vld [vmem:[%s8548_s27 + $0x468] sm:$0xf0]  ;;  %v4986_v9 = vld [vmem:[%s8548_s27 + $0x18] sm:$0xf0] }
  0x66   : > { %2115 = vmatpush.bf16.msrb.mxu1 %v6065_v11  ;;  %v7635_v10 = vld [vmem:[%s8548_s27 + $0x184] sm:$0xf]  ;;  %v5178_v11 = vld [vmem:[%s8548_s27 + $0x198] sm:$0xf0]  ;;  %v7773_v14 = vld [vmem:[%s8548_s27 + $0x5d4] sm:$0xf]  ;;  %v4989_v24 = vor.u32 %v7587_v5, %v4986_v9 }
  0x67   : > { %2128 = vmatpush.bf16.msrb.mxu2 %v5109_v12  ;;  %v5753_v12 = vor.u32 %v7782_v0, %v5752_v63  ;;  %v5730_v15 = vld [vmem:[%s8548_s27 + $0x5e8] sm:$0xf0]  ;;  %v7821_v16 = vld [vmem:[%s8548_s27 + $0x754] sm:$0xf]  ;;  %v7719_v25 = vld [vmem:[%s8548_s27 + $0x424] sm:$0xf] }
  0x68   : > { %2141 = vmatpush.bf16.msrb.mxu3 %v5301_v17  ;;  %v5541_v17 = vor.u32 %v7725_v6, %v5538_v7  ;;  %v5922_v18 = vld [vmem:[%s8548_s27 + $0x768] sm:$0xf0]  ;;  %v7869_v19 = vld [vmem:[%s8548_s27 + $0x8d4] sm:$0xf]  ;;  %v5514_v27 = vld [vmem:[%s8548_s27 + $0x438] sm:$0xf0] }
  0x69   : > { %2103 = vmatpush.bf16.msrb.mxu0 %v5849_v23  ;;  %v6114_v20 = vld [vmem:[%s8548_s27 + $0x8e8] sm:$0xf0]  ;;  %v5945_v23 = vor.u32 %v7830_v2, %v5944_v1  ;;  %v297_v28 = vld [vmem:[#allocation2 + $0x20] sm:$0xff]  ;;  %v7767_v34 = vld [vmem:[%s8548_s27 + $0x5a4] sm:$0xf]  ;;  %v5517_v37 = vor.u32 %v7719_v25, %v5514_v27  ;;  %s8969_s15 = scalar_lea.vmem [#allocation6], %s4981_s17 }
  0x6a   : > { %2116 = vmatpush.bf16.msrb.mxu1 %v6041_v29  ;;  %v5181_v29 = vor.u32 %v7635_v10, %v5178_v11  ;;  %v296_v31 = vld [vmem:[#allocation2 + $0x18] sm:$0xff]  ;;  %v6117_v33 = vor.u32 %v7869_v19, %v6114_v20  ;;  %v5706_v35 = vld [vmem:[%s8548_s27 + $0x5b8] sm:$0xf0]  ;;  %v7863_v39 = vld [vmem:[%s8548_s27 + $0x8a4] sm:$0xf]  ;;  %p2516_p6 = scmp.lt.s32.totalorder %s9224_s16, 7 }
  0x6b   : > { %2129 = vmatpush.bf16.msrb.mxu2 %v5085_v30  ;;  %v5733_v30 = vor.u32 %v7773_v14, %v5730_v15  ;;  %v5898_v38 = vld [vmem:[%s8548_s27 + $0x738] sm:$0xf0]  ;;  %v7713_v43 = vld [vmem:[%s8548_s27 + $0x3f4] sm:$0xf]  ;;  %v5709_v45 = vor.u32 %v7767_v34, %v5706_v35  ;;  %v5682_v49 = vld [vmem:[%s8548_s27 + $0x588] sm:$0xf0] }
  0x6c   : > { %2142 = vmatpush.bf16.msrb.mxu3 %v5277_v32  ;;  %v5925_v32 = vor.u32 %v7821_v16, %v5922_v18  ;;  %v6090_v40 = vld [vmem:[%s8548_s27 + $0x8b8] sm:$0xf0]  ;;  %v7809_v50 = vld [vmem:[%s8548_s27 + $0x6f4] sm:$0xf]  ;;  %v5874_v52 = vld [vmem:[%s8548_s27 + $0x708] sm:$0xf0]  ;;  %p9232_p0 = por %p2520_p13, %p2516_p6 }
  0x6d   : > { %2104 = vmatpush.bf16.msrb.mxu0 %v5825_v36  ;;  %v7815_v36 = vld [vmem:[%s8548_s27 + $0x724] sm:$0xf]  ;;  %v6093_v47 = vor.u32 %v7863_v39, %v6090_v40  ;;  %v5877_v58 = vor.u32 %v7809_v50, %v5874_v52  ;;  %v5658_v61 = vld [vmem:[%s8548_s27 + $0x558] sm:$0xf0]  ;;  %v5634_v9 = vld [vmem:[%s8548_s27 + $0x528] sm:$0xf0] }
  0x6e   : > { %2117 = vmatpush.bf16.msrb.mxu1 %v6017_v41  ;;  %v8734_v41 = vpack.c.bf16 %v297_v28, %v297_v28  ;;  %v5901_v46 = vor.u32 %v7815_v36, %v5898_v38  ;;  %v7707_v55 = vld [vmem:[%s8548_s27 + $0x3c4] sm:$0xf]  ;;  %v5850_v0 = vld [vmem:[%s8548_s27 + $0x6d8] sm:$0xf0]  ;;  %v7797_v10 = vld [vmem:[%s8548_s27 + $0x694] sm:$0xf] }
  0x6f   : > { %2130 = vmatpush.bf16.msrb.mxu2 %v5061_v42  ;;  %v8736_v42 = vpack.c.bf16 %v296_v31, %v296_v31  ;;  %v7803_v62 = vld [vmem:[%s8548_s27 + $0x6c4] sm:$0xf]  ;;  %v6042_v2 = vld [vmem:[%s8548_s27 + $0x858] sm:$0xf0]  ;;  %v7845_v14 = vld [vmem:[%s8548_s27 + $0x814] sm:$0xf] }
  0x70   : > { %2143 = vmatpush.bf16.msrb.mxu3 %v5253_v44  ;;  %v5490_v44 = vld [vmem:[%s8548_s27 + $0x408] sm:$0xf0]  ;;  %v7851_v1 = vld [vmem:[%s8548_s27 + $0x844] sm:$0xf]  ;;  %v5853_v6 = vor.u32 %v7803_v62, %v5850_v0  ;;  %v5802_v28 = vld [vmem:[%s8548_s27 + $0x678] sm:$0xf0] }
  0x71   : > { %2105 = vmatpush.bf16.msrb.mxu0 %v5801_v48  ;;  %v7761_v48 = vld [vmem:[%s8548_s27 + $0x574] sm:$0xf]  ;;  %v5493_v51 = vor.u32 %v7713_v43, %v5490_v44  ;;  %v6045_v7 = vor.u32 %v7851_v1, %v6042_v2  ;;  %v6018_v15 = vld [vmem:[%s8548_s27 + $0x828] sm:$0xf0]  ;;  %v7695_v16 = vld [vmem:[%s8548_s27 + $0x364] sm:$0xf] }
  0x72   : > { %2118 = vmatpush.bf16.msrb.mxu1 %v5993_v53  ;;  %v7857_v53 = vld [vmem:[%s8548_s27 + $0x874] sm:$0xf]  ;;  %v5685_v57 = vor.u32 %v7761_v48, %v5682_v49  ;;  %v6021_v20 = vor.u32 %v7845_v14, %v6018_v15  ;;  %v7791_v25 = vld [vmem:[%s8548_s27 + $0x664] sm:$0xf]  ;;  %v5778_v40 = vld [vmem:[%s8548_s27 + $0x648] sm:$0xf0] }
  0x73   : > { %2131 = vmatpush.bf16.msrb.mxu2 %v5037_v54  ;;  %v6066_v54 = vld [vmem:[%s8548_s27 + $0x888] sm:$0xf0]  ;;  %v7689_v31 = vld [vmem:[%s8548_s27 + $0x334] sm:$0xf]  ;;  %v5805_v34 = vor.u32 %v7791_v25, %v5802_v28  ;;  %v5562_v49 = vld [vmem:[%s8548_s27 + $0x498] sm:$0xf0] }
  0x74   : > { %2144 = vmatpush.bf16.msrb.mxu3 %v5229_v56  ;;  %v5466_v56 = vld [vmem:[%s8548_s27 + $0x3d8] sm:$0xf0]  ;;  %v6069_v59 = vor.u32 %v7857_v53, %v6066_v54  ;;  %v7737_v36 = vld [vmem:[%s8548_s27 + $0x4b4] sm:$0xf]  ;;  %v5970_v44 = vld [vmem:[%s8548_s27 + $0x7c8] sm:$0xf0] }
  0x75   : > { %2106 = vmatpush.bf16.msrb.mxu0 %v5777_v60  ;;  %v7755_v60 = vld [vmem:[%s8548_s27 + $0x544] sm:$0xf]  ;;  %v5469_v63 = vor.u32 %v7707_v55, %v5466_v56  ;;  %v7785_v38 = vld [vmem:[%s8548_s27 + $0x634] sm:$0xf]  ;;  %v5160_v50 = vld [vmem:[%s8548_s27 + $0x158] sm:$0xf] }
  0x76   : > { %2119 = vmatpush.bf16.msrb.mxu1 %v5969_v3  ;;  %v7701_v3 = vld [vmem:[%s8548_s27 + $0x394] sm:$0xf]  ;;  %v5661_v5 = vor.u32 %v7755_v60, %v5658_v61  ;;  %v5781_v52 = vor.u32 %v7785_v38, %v5778_v40  ;;  %v7779_v54 = vld [vmem:[%s8548_s27 + $0x604] sm:$0xf]  ;;  %v5754_v55 = vld [vmem:[%s8548_s27 + $0x618] sm:$0xf0] }
  0x77   : > { %2132 = vmatpush.bf16.msrb.mxu2 %v5013_v4  ;;  %v5442_v4 = vld [vmem:[%s8548_s27 + $0x3a8] sm:$0xf0]  ;;  %v7833_v43 = vld [vmem:[%s8548_s27 + $0x7b4] sm:$0xf]  ;;  %v7827_v56 = vld [vmem:[%s8548_s27 + $0x784] sm:$0xf] }
  0x78   : > { %2145 = vmatpush.bf16.msrb.mxu3 %v5205_v8  ;;  %v7749_v8 = vld [vmem:[%s8548_s27 + $0x514] sm:$0xf]  ;;  %v5445_v11 = vor.u32 %v7701_v3, %v5442_v4  ;;  %v5973_v53 = vor.u32 %v7833_v43, %v5970_v44  ;;  %v7681_v60 = vld [vmem:[%s8548_s27 + $0x2ec] sm:$0xf0]  ;;  %v5544_v62 = vld [vmem:[%s8548_s27 + $0x458] sm:$0xf] }
  0x79   : > { %2107 = vmatpush.bf16.msrb.mxu0 %v5753_v12  ;;  %v5826_v12 = vld [vmem:[%s8548_s27 + $0x6a8] sm:$0xf0]  ;;  %v5637_v18 = vor.u32 %v7749_v8, %v5634_v9  ;;  %v5736_v0 = vld [vmem:[%s8548_s27 + $0x5d8] sm:$0xf]  ;;  %v7777_v2 = vld [vmem:[%s8548_s27 + $0x5ec] sm:$0xf0] }
  0x7a   : > { %2120 = vmatpush.bf16.msrb.mxu1 %v5945_v23  ;;  %v5829_v19 = vor.u32 %v7797_v10, %v5826_v12  ;;  %v7743_v23 = vld [vmem:[%s8548_s27 + $0x4e4] sm:$0xf]  ;;  %v5136_v3 = vld [vmem:[%s8548_s27 + $0x128] sm:$0xf]  ;;  %v7627_v4 = vld [vmem:[%s8548_s27 + $0x13c] sm:$0xf0] }
  0x7b   : > { %2133 = vmatpush.bf16.msrb.mxu2 %v4989_v24  ;;  %v5610_v24 = vld [vmem:[%s8548_s27 + $0x4f8] sm:$0xf0]  ;;  %v5328_v9 = vld [vmem:[%s8548_s27 + $0x2a8] sm:$0xf]  ;;  %v7675_v10 = vld [vmem:[%s8548_s27 + $0x2bc] sm:$0xf0]  ;;  %v5137_v12 = vor.u32 %v7627_v4, %v5136_v3 }
  0x7c   : > { %2146 = vmatpush.bf16.msrb.mxu3 %v5181_v29  ;;  %2108 = vmatmul.bf16.vlgmr.msrb.gmra.mxu0 %v8736_v42  ;;  %v7839_v29 = vld [vmem:[%s8548_s27 + $0x7e4] sm:$0xf]  ;;  %v5520_v14 = vld [vmem:[%s8548_s27 + $0x428] sm:$0xf]  ;;  %v7723_v15 = vld [vmem:[%s8548_s27 + $0x43c] sm:$0xf0] }
  0x7d   : > { %2152 = vmatpush.bf16.msra.mxu0 %v5541_v17  ;;  %2121 = vmatmul.bf16.vlgmr.msrb.gmra.mxu1 %v8734_v41  ;;  %v5418_v17 = vld [vmem:[%s8548_s27 + $0x378] sm:$0xf0]  ;;  %v7669_v25 = vld [vmem:[%s8548_s27 + $0x28c] sm:$0xf0]  ;;  %v7663_v38 = vld [vmem:[%s8548_s27 + $0x25c] sm:$0xf0] }
  0x7e   : > { %2165 = vmatpush.bf16.msra.mxu1 %v5733_v30  ;;  %2134 = vmatmul.bf16.vlgmr.msrb.gmra.mxu2 %v8669_v13  ;;  %v5421_v27 = vor.u32 %v7695_v16, %v5418_v17  ;;  %v5994_v30 = vld [vmem:[%s8548_s27 + $0x7f8] sm:$0xf0]  ;;  %v5712_v16 = vld [vmem:[%s8548_s27 + $0x5a8] sm:$0xf]  ;;  %v7771_v17 = vld [vmem:[%s8548_s27 + $0x5bc] sm:$0xf0] }
  0x7f   : > { %2178 = vmatpush.bf16.msra.mxu2 %v5925_v32  ;;  %2147 = vmatmul.bf16.vlgmr.msrb.gmra.mxu3 %v8676_v22  ;;  %v5394_v32 = vld [vmem:[%s8548_s27 + $0x348] sm:$0xf0]  ;;  %v5997_v35 = vor.u32 %v7839_v29, %v5994_v30  ;;  %v5496_v29 = vld [vmem:[%s8548_s27 + $0x3f8] sm:$0xf]  ;;  %v7717_v30 = vld [vmem:[%s8548_s27 + $0x40c] sm:$0xf0] }
  0x80   : > { %2191 = vmatpush.bf16.msra.mxu3 %v6117_v33  ;;  %v5613_v33 = vor.u32 %v7743_v23, %v5610_v24  ;;  %v5397_v39 = vor.u32 %v7689_v31, %v5394_v32  ;;  %v5521_v23 = vor.u32 %v7723_v15, %v5520_v14  ;;  %v5304_v24 = vld [vmem:[%s8548_s27 + $0x278] sm:$0xf]  ;;  %v7765_v32 = vld [vmem:[%s8548_s27 + $0x58c] sm:$0xf0]  ;;  %v5472_v43 = vld [vmem:[%s8548_s27 + $0x3c8] sm:$0xf] }
  0x81   : > { %2153 = vmatpush.bf16.msra.mxu0 %v5517_v37  ;;  %v5586_v37 = vld [vmem:[%s8548_s27 + $0x4c8] sm:$0xf0]  ;;  %v5688_v31 = vld [vmem:[%s8548_s27 + $0x578] sm:$0xf]  ;;  %v7711_v44 = vld [vmem:[%s8548_s27 + $0x3dc] sm:$0xf0] }
  0x82   : > { %2166 = vmatpush.bf16.msra.mxu1 %v5709_v45  ;;  %v7683_v45 = vld [vmem:[%s8548_s27 + $0x304] sm:$0xf]  ;;  %v5589_v48 = vor.u32 %v7737_v36, %v5586_v37  ;;  %v5497_v36 = vor.u32 %v7717_v30, %v5496_v29  ;;  %v5280_v37 = vld [vmem:[%s8548_s27 + $0x248] sm:$0xf]  ;;  %v7699_v4 = vld [vmem:[%s8548_s27 + $0x37c] sm:$0xf0] }
  0x83   : > { %2179 = vmatpush.bf16.msra.mxu2 %v5901_v46  ;;  %v5370_v46 = vld [vmem:[%s8548_s27 + $0x318] sm:$0xf0]  ;;  %v5424_v3 = vld [vmem:[%s8548_s27 + $0x368] sm:$0xf]  ;;  %v7639_v30 = vld [vmem:[%s8548_s27 + $0x19c] sm:$0xf0] }
  0x84   : > { %2192 = vmatpush.bf16.msra.mxu3 %v6093_v47  ;;  %v7731_v47 = vld [vmem:[%s8548_s27 + $0x484] sm:$0xf]  ;;  %v5184_v29 = vld [vmem:[%s8548_s27 + $0x188] sm:$0xf]  ;;  %p2522_p2 = scmp.eq.s32.totalorder %s9224_s16, 16 }
  0x85   : > { %2154 = vmatpush.bf16.msra.mxu0 %v5493_v51  ;;  %v7633_v51 = vld [vmem:[%s8548_s27 + $0x16c] sm:$0xf0]  ;;  %v5565_v1 = vor.u32 %v7731_v47, %v5562_v49  ;;  %v5064_v47 = vld [vmem:[%s8548_s27 + $0x98] sm:$0xf]  ;;  %v5281_v49 = vor.u32 %v7663_v38, %v5280_v37 }
  0x86   : > { %2167 = vmatpush.bf16.msra.mxu1 %v5685_v57  ;;  %v5373_v57 = vor.u32 %v7683_v45, %v5370_v46  ;;  %v5161_v61 = vor.u32 %v7633_v51, %v5160_v50  ;;  %v5664_v45 = vld [vmem:[%s8548_s27 + $0x548] sm:$0xf]  ;;  %v7759_v46 = vld [vmem:[%s8548_s27 + $0x55c] sm:$0xf0]  ;;  %v5473_v50 = vor.u32 %v7711_v44, %v5472_v43  ;;  %v5256_v51 = vld [vmem:[%s8548_s27 + $0x218] sm:$0xf] }
  0x87   : > { %2180 = vmatpush.bf16.msra.mxu2 %v5877_v58  ;;  %v5946_v58 = vld [vmem:[%s8548_s27 + $0x798] sm:$0xf0]  ;;  %v6120_v38 = vld [vmem:[%s8548_s27 + $0x8d8] sm:$0xf]  ;;  %v5162_v43 = vld [vmem:[%s8548_s27 + $0x170] sm:$0xf0] }
  0x88   : > { %2193 = vmatpush.bf16.msra.mxu3 %v6069_v59  ;;  %v5352_v59 = vld [vmem:[%s8548_s27 + $0x2d8] sm:$0xf]  ;;  %v7678_v44 = vld [vmem:[%s8548_s27 + $0x2dc] sm:$0xf] }
  0x89   : > { %2155 = vmatpush.bf16.msra.mxu0 %v5469_v63  ;;  %v7729_v63 = vld [vmem:[%s8548_s27 + $0x46c] sm:$0xf0] }
  0x8a   : > { %2168 = vmatpush.bf16.msra.mxu1 %v5661_v5  ;;  %v5757_v5 = vor.u32 %v7779_v54, %v5754_v55  ;;  %v5545_v8 = vor.u32 %v7729_v63, %v5544_v62  ;;  %v5448_v55 = vld [vmem:[%s8548_s27 + $0x398] sm:$0xf]  ;;  %v5232_v63 = vld [vmem:[%s8548_s27 + $0x1e8] sm:$0xf] }
  0x8b   : > { %2181 = vmatpush.bf16.msra.mxu2 %v5853_v6  ;;  %v5949_v6 = vor.u32 %v7827_v56, %v5946_v58  ;;  %v7705_v56 = vld [vmem:[%s8548_s27 + $0x3ac] sm:$0xf0] }
  0x8c   : > { %2194 = vmatpush.bf16.msra.mxu3 %v6045_v7  ;;  %v5353_v7 = vor.u32 %v7681_v60, %v5352_v59  ;;  %v7753_v58 = vld [vmem:[%s8548_s27 + $0x52c] sm:$0xf0]  ;;  %v5040_v59 = vld [vmem:[%s8548_s27 + $0x68] sm:$0xf]  ;;  %v7603_v60 = vld [vmem:[%s8548_s27 + $0x7c] sm:$0xf0]  ;;  %v5449_v62 = vor.u32 %v7705_v56, %v5448_v55 }
  0x8d   : > { %2156 = vmatpush.bf16.msra.mxu0 %v5445_v11  ;;  %v5737_v11 = vor.u32 %v7777_v2, %v5736_v0  ;;  %v7651_v0 = vld [vmem:[%s8548_s27 + $0x1fc] sm:$0xf0]  ;;  %v5041_v2 = vor.u32 %v7603_v60, %v5040_v59  ;;  %v7624_v56 = vld [vmem:[%s8548_s27 + $0x12c] sm:$0xf]  ;;  %v5330_v60 = vld [vmem:[%s8548_s27 + $0x2c0] sm:$0xf0] }
  0x8e   : > { %2169 = vmatpush.bf16.msra.mxu1 %v5637_v18  ;;  %v5112_v18 = vld [vmem:[%s8548_s27 + $0xf8] sm:$0xf]  ;;  %v7867_v55 = vld [vmem:[%s8548_s27 + $0x8bc] sm:$0xf0]  ;;  %v7672_v59 = vld [vmem:[%s8548_s27 + $0x2ac] sm:$0xf] }
  0x8f   : > { %2182 = vmatpush.bf16.msra.mxu2 %v5829_v19  ;;  %v7621_v19 = vld [vmem:[%s8548_s27 + $0x10c] sm:$0xf0] }
  0x90   : > { %2195 = vmatpush.bf16.msra.mxu3 %v6021_v20  ;;  %v5329_v20 = vor.u32 %v7675_v10, %v5328_v9  ;;  %v5113_v28 = vor.u32 %v7621_v19, %v5112_v18  ;;  %v5233_v9 = vor.u32 %v7651_v0, %v5232_v63  ;;  %v5425_v10 = vor.u32 %v7699_v4, %v5424_v3  ;;  %v5592_v18 = vld [vmem:[%s8548_s27 + $0x4b8] sm:$0xf]  ;;  %v7741_v19 = vld [vmem:[%s8548_s27 + $0x4cc] sm:$0xf0]  ;;  %v7618_v4 = vld [vmem:[%s8548_s27 + $0xfc] sm:$0xf] }
  0x91   : > { %2157 = vmatpush.bf16.msra.mxu0 %v5421_v27  ;;  %v5713_v27 = vor.u32 %v7771_v17, %v5712_v16  ;;  %v5400_v16 = vld [vmem:[%s8548_s27 + $0x338] sm:$0xf]  ;;  %v7693_v17 = vld [vmem:[%s8548_s27 + $0x34c] sm:$0xf0] }
  0x92   : > { %2170 = vmatpush.bf16.msra.mxu1 %v5613_v33  ;;  %v5088_v33 = vld [vmem:[%s8548_s27 + $0xc8] sm:$0xf]  ;;  %v7861_v3 = vld [vmem:[%s8548_s27 + $0x88c] sm:$0xf0] }
  0x93   : > { %2183 = vmatpush.bf16.msra.mxu2 %v5805_v34  ;;  %v7615_v34 = vld [vmem:[%s8548_s27 + $0xdc] sm:$0xf0] }
  0x94   : > { %2196 = vmatpush.bf16.msra.mxu3 %v5997_v35  ;;  %v5305_v35 = vor.u32 %v7669_v25, %v5304_v24  ;;  %v5089_v40 = vor.u32 %v7615_v34, %v5088_v33  ;;  %v5928_v24 = vld [vmem:[%s8548_s27 + $0x758] sm:$0xf]  ;;  %v7825_v25 = vld [vmem:[%s8548_s27 + $0x76c] sm:$0xf0]  ;;  %v7687_v34 = vld [vmem:[%s8548_s27 + $0x31c] sm:$0xf0] }
  0x95   : > { %2158 = vmatpush.bf16.msra.mxu0 %v5397_v39  ;;  %v5689_v39 = vor.u32 %v7765_v32, %v5688_v31  ;;  %v5376_v31 = vld [vmem:[%s8548_s27 + $0x308] sm:$0xf]  ;;  %v5593_v32 = vor.u32 %v7741_v19, %v5592_v18  ;;  %v5929_v37 = vor.u32 %v7825_v25, %v5928_v24  ;;  %v5090_v19 = vld [vmem:[%s8548_s27 + $0xe0] sm:$0xf0]  ;;  %v5832_v24 = vld [vmem:[%s8548_s27 + $0x698] sm:$0xf] }
  0x96   : > { %2171 = vmatpush.bf16.msra.mxu1 %v5589_v48  ;;  %v7609_v48 = vld [vmem:[%s8548_s27 + $0xac] sm:$0xf0] }
  0x97   : > { %2184 = vmatpush.bf16.msra.mxu2 %v5781_v52  ;;  %v7657_v52 = vld [vmem:[%s8548_s27 + $0x22c] sm:$0xf0]  ;;  %v5065_v54 = vor.u32 %v7609_v48, %v5064_v47  ;;  %v5377_v47 = vor.u32 %v7687_v34, %v5376_v31  ;;  %v5904_v48 = vld [vmem:[%s8548_s27 + $0x728] sm:$0xf]  ;;  %v5066_v34 = vld [vmem:[%s8548_s27 + $0xb0] sm:$0xf0] }
  0x98   : > { %2197 = vmatpush.bf16.msra.mxu3 %v5973_v53  ;;  %v5665_v53 = vor.u32 %v7759_v46, %v5664_v45  ;;  %v5354_v45 = vld [vmem:[%s8548_s27 + $0x2f0] sm:$0xf0]  ;;  %v5185_v46 = vor.u32 %v7639_v30, %v5184_v29  ;;  %v7801_v25 = vld [vmem:[%s8548_s27 + $0x6ac] sm:$0xf0]  ;;  %v6024_v30 = vld [vmem:[%s8548_s27 + $0x818] sm:$0xf] }
  0x99   : > { %2159 = vmatpush.bf16.msra.mxu0 %v5373_v57  ;;  %v5640_v57 = vld [vmem:[%s8548_s27 + $0x518] sm:$0xf]  ;;  %v7849_v31 = vld [vmem:[%s8548_s27 + $0x82c] sm:$0xf0] }
  0x9a   : > { %2172 = vmatpush.bf16.msra.mxu1 %v5565_v1  ;;  %v5641_v1 = vor.u32 %v7753_v58, %v5640_v57  ;;  %v5138_v58 = vld [vmem:[%s8548_s27 + $0x140] sm:$0xf0] }
  0x9b   : > { %2185 = vmatpush.bf16.msra.mxu2 %v5757_v5  ;;  %v5616_v5 = vld [vmem:[%s8548_s27 + $0x4e8] sm:$0xf]  ;;  %v5141_v0 = vor.u32 %v7624_v56, %v5138_v58  ;;  %v5976_v56 = vld [vmem:[%s8548_s27 + $0x7b8] sm:$0xf]  ;;  %v7594_v58 = vld [vmem:[%s8548_s27 + $0x3c] sm:$0xf] }
  0x9c   : > { %2198 = vmatpush.bf16.msra.mxu3 %v5949_v6  ;;  %2160 = vmatmul.bf16.vlgmr.msra.gmra.mxu0 %v8674_v21  ;;  %v7747_v6 = vld [vmem:[%s8548_s27 + $0x4fc] sm:$0xf0] }
  0x9d   : > { %2204 = vmatpush.bf16.msrb.mxu0 %v5161_v61  ;;  %2173 = vmatmul.bf16.vlgmr.msra.gmra.mxu1 %v8680_v26  ;;  %v5257_v61 = vor.u32 %v7657_v52, %v5256_v51  ;;  %v5617_v14 = vor.u32 %v7747_v6, %v5616_v5  ;;  %v5114_v6 = vld [vmem:[%s8548_s27 + $0x110] sm:$0xf0] }
  0x9e   : > { %2217 = vmatpush.bf16.msrb.mxu1 %v5353_v7  ;;  %2186 = vmatmul.bf16.vlgmr.msra.gmra.mxu2 %v8736_v42  ;;  %v5016_v7 = vld [vmem:[%s8548_s27 + $0x38] sm:$0xf] }
  0x9f   : > { %2230 = vmatpush.bf16.msrb.mxu2 %v5545_v8  ;;  %2199 = vmatmul.bf16.vlgmr.msra.gmra.mxu3 %v8734_v41  ;;  %v7597_v8 = vld [vmem:[%s8548_s27 + $0x4c] sm:$0xf0] }
  0xa0   : > { %2243 = vmatpush.bf16.msrb.mxu3 %v5737_v11  ;;  %v5208_v11 = vld [vmem:[%s8548_s27 + $0x1b8] sm:$0xf]  ;;  %v5017_v15 = vor.u32 %v7597_v8, %v5016_v7  ;;  %v7666_v7 = vld [vmem:[%s8548_s27 + $0x27c] sm:$0xf]  ;;  %v5306_v8 = vld [vmem:[%s8548_s27 + $0x290] sm:$0xf0] }
  0xa1   : > { %2205 = vmatpush.bf16.msrb.mxu0 %v5137_v12  ;;  %v7645_v12 = vld [vmem:[%s8548_s27 + $0x1cc] sm:$0xf0] }
  0xa2   : > { %2218 = vmatpush.bf16.msrb.mxu1 %v5329_v20  ;;  %v4992_v20 = vld [vmem:[%s8548_s27 + $0x8] sm:$0xf] }
  0xa3   : > { %2231 = vmatpush.bf16.msrb.mxu2 %v5521_v23  ;;  %v7591_v23 = vld [vmem:[%s8548_s27 + $0x1c] sm:$0xf0] }
  0xa4   : > { %2244 = vmatpush.bf16.msrb.mxu3 %v5713_v27  ;;  %v5209_v27 = vor.u32 %v7645_v12, %v5208_v11  ;;  %v4993_v33 = vor.u32 %v7591_v23, %v4992_v20  ;;  %v5117_v12 = vor.u32 %v7618_v4, %v5114_v6  ;;  %v7660_v20 = vld [vmem:[%s8548_s27 + $0x24c] sm:$0xf]  ;;  %v5282_v23 = vld [vmem:[%s8548_s27 + $0x260] sm:$0xf0]  ;;  %v7726_v4 = vld [vmem:[%s8548_s27 + $0x45c] sm:$0xf] }
  0xa5   : > { %2206 = vmatpush.bf16.msrb.mxu0 %v5113_v28  ;;  %v5401_v28 = vor.u32 %v7693_v17, %v5400_v16  ;;  %v7855_v16 = vld [vmem:[%s8548_s27 + $0x85c] sm:$0xf0]  ;;  %v7612_v17 = vld [vmem:[%s8548_s27 + $0xcc] sm:$0xf]  ;;  %v5285_v29 = vor.u32 %v7660_v20, %v5282_v23  ;;  %v6122_v23 = vld [vmem:[%s8548_s27 + $0x8f0] sm:$0xf0] }
  0xa6   : > { %2219 = vmatpush.bf16.msrb.mxu1 %v5305_v35  ;;  %v5568_v35 = vld [vmem:[%s8548_s27 + $0x488] sm:$0xf] }
  0xa7   : > { %2232 = vmatpush.bf16.msrb.mxu2 %v5497_v36  ;;  %v7735_v36 = vld [vmem:[%s8548_s27 + $0x49c] sm:$0xf0] }
  0xa8   : > { %2245 = vmatpush.bf16.msrb.mxu3 %v5689_v39  ;;  %v7873_v39 = vld [vmem:[%s8548_s27 + $0x8ec] sm:$0xf0] }
  0xa9   : > { %2207 = vmatpush.bf16.msrb.mxu0 %v5089_v40  ;;  %v7630_v40 = vld [vmem:[%s8548_s27 + $0x15c] sm:$0xf]  ;;  %v6121_v51 = vor.u32 %v7873_v39, %v6120_v38  ;;  %v7795_v38 = vld [vmem:[%s8548_s27 + $0x67c] sm:$0xf0]  ;;  %v6025_v39 = vor.u32 %v7849_v31, %v6024_v30  ;;  %v7768_v31 = vld [vmem:[%s8548_s27 + $0x5ac] sm:$0xf] }
  0xaa   : > { %2220 = vmatpush.bf16.msrb.mxu1 %v5281_v49  ;;  %v7819_v49 = vld [vmem:[%s8548_s27 + $0x73c] sm:$0xf0]  ;;  %v5165_v52 = vor.u32 %v7630_v40, %v5162_v43 }
  0xab   : > { %2233 = vmatpush.bf16.msrb.mxu2 %v5473_v50  ;;  %v5569_v50 = vor.u32 %v7735_v36, %v5568_v35  ;;  %v5905_v57 = vor.u32 %v7819_v49, %v5904_v48  ;;  %v7654_v35 = vld [vmem:[%s8548_s27 + $0x21c] sm:$0xf]  ;;  %v5258_v36 = vld [vmem:[%s8548_s27 + $0x230] sm:$0xf0]  ;;  %v5042_v48 = vld [vmem:[%s8548_s27 + $0x80] sm:$0xf0] }
  0xac   : > { %2246 = vmatpush.bf16.msrb.mxu3 %v5665_v53  ;;  %v5357_v53 = vor.u32 %v7678_v44, %v5354_v45  ;;  %v5261_v43 = vor.u32 %v7654_v35, %v5258_v36  ;;  %v6000_v44 = vld [vmem:[%s8548_s27 + $0x7e8] sm:$0xf]  ;;  %v7843_v45 = vld [vmem:[%s8548_s27 + $0x7fc] sm:$0xf0]  ;;  %v7648_v49 = vld [vmem:[%s8548_s27 + $0x1ec] sm:$0xf] }
  0xad   : > { %2208 = vmatpush.bf16.msrb.mxu0 %v5065_v54  ;;  %v6096_v54 = vld [vmem:[%s8548_s27 + $0x8a8] sm:$0xf]  ;;  %v7816_v35 = vld [vmem:[%s8548_s27 + $0x72c] sm:$0xf]  ;;  %v5906_v36 = vld [vmem:[%s8548_s27 + $0x740] sm:$0xf0] }
  0xae   : > { %2221 = vmatpush.bf16.msrb.mxu1 %v5257_v61  ;;  %v5880_v61 = vld [vmem:[%s8548_s27 + $0x6f8] sm:$0xf]  ;;  %v6097_v63 = vor.u32 %v7867_v55, %v6096_v54 }
  0xaf   : > { %2234 = vmatpush.bf16.msrb.mxu2 %v5449_v62  ;;  %v7813_v62 = vld [vmem:[%s8548_s27 + $0x70c] sm:$0xf0] }
  0xb0   : > { %2247 = vmatpush.bf16.msrb.mxu3 %v5641_v1  ;;  %v5333_v1 = vor.u32 %v7672_v59, %v5330_v60  ;;  %v5881_v5 = vor.u32 %v7813_v62, %v5880_v61  ;;  %v5018_v60 = vld [vmem:[%s8548_s27 + $0x50] sm:$0xf0]  ;;  %v7642_v61 = vld [vmem:[%s8548_s27 + $0x1bc] sm:$0xf] }
  0xb1   : > { %2209 = vmatpush.bf16.msrb.mxu0 %v5041_v2  ;;  %v6072_v2 = vld [vmem:[%s8548_s27 + $0x878] sm:$0xf]  ;;  %v5210_v62 = vld [vmem:[%s8548_s27 + $0x1d0] sm:$0xf0]  ;;  %v5021_v6 = vor.u32 %v7594_v58, %v5018_v60  ;;  %v5666_v58 = vld [vmem:[%s8548_s27 + $0x560] sm:$0xf0] }
  0xb2   : > { %2222 = vmatpush.bf16.msrb.mxu1 %v5233_v9  ;;  %v5856_v9 = vld [vmem:[%s8548_s27 + $0x6c8] sm:$0xf]  ;;  %v6073_v11 = vor.u32 %v7861_v3, %v6072_v2  ;;  %v7831_v3 = vld [vmem:[%s8548_s27 + $0x79c] sm:$0xf0] }
  0xb3   : > { %2235 = vmatpush.bf16.msrb.mxu2 %v5425_v10  ;;  %v7807_v10 = vld [vmem:[%s8548_s27 + $0x6dc] sm:$0xf0] }
  0xb4   : > { %2248 = vmatpush.bf16.msrb.mxu3 %v5617_v14  ;;  %v5309_v14 = vor.u32 %v7666_v7, %v5306_v8  ;;  %v5857_v18 = vor.u32 %v7807_v10, %v5856_v9  ;;  %v5213_v7 = vor.u32 %v7642_v61, %v5210_v62  ;;  %v7588_v8 = vld [vmem:[%s8548_s27 + $0xc] sm:$0xf]  ;;  %v4994_v9 = vld [vmem:[%s8548_s27 + $0x20] sm:$0xf0] }
  0xb5   : > { %2210 = vmatpush.bf16.msrb.mxu0 %v5017_v15  ;;  %v6048_v15 = vld [vmem:[%s8548_s27 + $0x848] sm:$0xf]  ;;  %v7636_v10 = vld [vmem:[%s8548_s27 + $0x18c] sm:$0xf]  ;;  %v5858_v62 = vld [vmem:[%s8548_s27 + $0x6e0] sm:$0xf0] }
  0xb6   : > { %2223 = vmatpush.bf16.msrb.mxu1 %v5209_v27  ;;  %v6049_v27 = vor.u32 %v7855_v16, %v6048_v15  ;;  %v5738_v15 = vld [vmem:[%s8548_s27 + $0x5f0] sm:$0xf0]  ;;  %v7804_v61 = vld [vmem:[%s8548_s27 + $0x6cc] sm:$0xf] }
  0xb7   : > { %2236 = vmatpush.bf16.msrb.mxu2 %v5401_v28  ;;  %v5093_v28 = vor.u32 %v7612_v17, %v5090_v19  ;;  %v7822_v17 = vld [vmem:[%s8548_s27 + $0x75c] sm:$0xf] }
  0xb8   : > { %2249 = vmatpush.bf16.msrb.mxu3 %v5593_v32  ;;  %v7606_v32 = vld [vmem:[%s8548_s27 + $0x9c] sm:$0xf] }
  0xb9   : > { %2211 = vmatpush.bf16.msrb.mxu0 %v4993_v33  ;;  %v5833_v33 = vor.u32 %v7801_v25, %v5832_v24  ;;  %v5069_v40 = vor.u32 %v7606_v32, %v5066_v34  ;;  %v7870_v19 = vld [vmem:[%s8548_s27 + $0x8dc] sm:$0xf]  ;;  %v7720_v24 = vld [vmem:[%s8548_s27 + $0x42c] sm:$0xf]  ;;  %v5522_v25 = vld [vmem:[%s8548_s27 + $0x440] sm:$0xf0] }
  0xba   : > { %2224 = vmatpush.bf16.msrb.mxu1 %v5185_v46  ;;  %v7600_v46 = vld [vmem:[%s8548_s27 + $0x6c] sm:$0xf]  ;;  %v5714_v32 = vld [vmem:[%s8548_s27 + $0x5c0] sm:$0xf0]  ;;  %v5525_v34 = vor.u32 %v7720_v24, %v5522_v25 }
  0xbb   : > { %2237 = vmatpush.bf16.msrb.mxu2 %v5377_v47  ;;  %v5045_v54 = vor.u32 %v7600_v46, %v5042_v48  ;;  %v5690_v46 = vld [vmem:[%s8548_s27 + $0x590] sm:$0xf0] }
  0xbc   : > { %2250 = vmatpush.bf16.msrb.mxu3 %v5569_v50  ;;  %2212 = vmatmul.bf16.vlgmr.msrb.gmra.mxu0 %v8669_v13  ;;  %v5234_v50 = vld [vmem:[%s8548_s27 + $0x200] sm:$0xf0] }
  0xbd   : > { %2256 = vmatpush.bf16.msra.mxu0 %v5929_v37  ;;  %2225 = vmatmul.bf16.vlgmr.msrb.gmra.mxu1 %v8676_v22  ;;  %v5808_v37 = vld [vmem:[%s8548_s27 + $0x668] sm:$0xf]  ;;  %v5237_v55 = vor.u32 %v7648_v49, %v5234_v50  ;;  %v7810_v49 = vld [vmem:[%s8548_s27 + $0x6fc] sm:$0xf]  ;;  %v5882_v50 = vld [vmem:[%s8548_s27 + $0x710] sm:$0xf0] }
  0xbe   : > { %2269 = vmatpush.bf16.msra.mxu1 %v6121_v51  ;;  %2238 = vmatmul.bf16.vlgmr.msrb.gmra.mxu2 %v8674_v21  ;;  %v5809_v47 = vor.u32 %v7795_v38, %v5808_v37  ;;  %v5784_v51 = vld [vmem:[%s8548_s27 + $0x638] sm:$0xf]  ;;  %v7864_v37 = vld [vmem:[%s8548_s27 + $0x8ac] sm:$0xf]  ;;  %v6098_v38 = vld [vmem:[%s8548_s27 + $0x8c0] sm:$0xf0] }
  0xbf   : > { %2282 = vmatpush.bf16.msra.mxu2 %v5165_v52  ;;  %2251 = vmatmul.bf16.vlgmr.msrb.gmra.mxu3 %v8680_v26  ;;  %v7789_v52 = vld [vmem:[%s8548_s27 + $0x64c] sm:$0xf0] }
  0xc0   : > { %2295 = vmatpush.bf16.msra.mxu3 %v5357_v53  ;;  %v6001_v53 = vor.u32 %v7843_v45, %v6000_v44  ;;  %v5785_v59 = vor.u32 %v7789_v52, %v5784_v51  ;;  %v5909_v44 = vor.u32 %v7816_v35, %v5906_v36  ;;  %v7762_v45 = vld [vmem:[%s8548_s27 + $0x57c] sm:$0xf]  ;;  %v6074_v52 = vld [vmem:[%s8548_s27 + $0x890] sm:$0xf0] }
  0xc1   : > { %2257 = vmatpush.bf16.msra.mxu0 %v5905_v57  ;;  %v7837_v57 = vld [vmem:[%s8548_s27 + $0x7cc] sm:$0xf0]  ;;  %v7858_v51 = vld [vmem:[%s8548_s27 + $0x87c] sm:$0xf] }
  0xc2   : > { %2270 = vmatpush.bf16.msra.mxu1 %v6097_v63  ;;  %v5760_v63 = vld [vmem:[%s8548_s27 + $0x608] sm:$0xf]  ;;  %v5977_v2 = vor.u32 %v7837_v57, %v5976_v56  ;;  %v5885_v56 = vor.u32 %v7810_v49, %v5882_v50  ;;  %v7756_v57 = vld [vmem:[%s8548_s27 + $0x54c] sm:$0xf]  ;;  %v5378_v50 = vld [vmem:[%s8548_s27 + $0x320] sm:$0xf0] }
  0xc3   : > { %2283 = vmatpush.bf16.msra.mxu2 %v5141_v0  ;;  %v7783_v0 = vld [vmem:[%s8548_s27 + $0x61c] sm:$0xf0]  ;;  %v7684_v49 = vld [vmem:[%s8548_s27 + $0x30c] sm:$0xf] }
  0xc4   : > { %2296 = vmatpush.bf16.msra.mxu3 %v5333_v1  ;;  %v5952_v1 = vld [vmem:[%s8548_s27 + $0x788] sm:$0xf] }
  0xc5   : > { %2258 = vmatpush.bf16.msra.mxu0 %v5881_v5  ;;  %v5546_v5 = vld [vmem:[%s8548_s27 + $0x470] sm:$0xf0]  ;;  %v5953_v20 = vor.u32 %v7831_v3, %v5952_v1  ;;  %v7702_v1 = vld [vmem:[%s8548_s27 + $0x39c] sm:$0xf]  ;;  %v5669_v3 = vor.u32 %v7756_v57, %v5666_v58  ;;  %v7780_v57 = vld [vmem:[%s8548_s27 + $0x60c] sm:$0xf] }
  0xc6   : > { %2271 = vmatpush.bf16.msra.mxu1 %v6073_v11  ;;  %v5761_v11 = vor.u32 %v7783_v0, %v5760_v63  ;;  %v5549_v16 = vor.u32 %v7726_v4, %v5546_v5  ;;  %v7852_v63 = vld [vmem:[%s8548_s27 + $0x84c] sm:$0xf]  ;;  %v6050_v0 = vld [vmem:[%s8548_s27 + $0x860] sm:$0xf0]  ;;  %v5861_v4 = vor.u32 %v7804_v61, %v5858_v62  ;;  %v7750_v5 = vld [vmem:[%s8548_s27 + $0x51c] sm:$0xf] }
  0xc7   : > { %2284 = vmatpush.bf16.msra.mxu2 %v5117_v12  ;;  %v5186_v12 = vld [vmem:[%s8548_s27 + $0x1a0] sm:$0xf0]  ;;  %v7828_v62 = vld [vmem:[%s8548_s27 + $0x78c] sm:$0xf] }
  0xc8   : > { %2297 = vmatpush.bf16.msra.mxu3 %v5309_v14  ;;  %v7774_v14 = vld [vmem:[%s8548_s27 + $0x5dc] sm:$0xf]  ;;  %v5762_v61 = vld [vmem:[%s8548_s27 + $0x620] sm:$0xf0] }
  0xc9   : > { %2259 = vmatpush.bf16.msra.mxu0 %v5857_v18  ;;  %v5930_v18 = vld [vmem:[%s8548_s27 + $0x770] sm:$0xf0] }
  0xca   : > { %2272 = vmatpush.bf16.msra.mxu1 %v6049_v27  ;;  %v4997_v27 = vor.u32 %v7588_v8, %v4994_v9  ;;  %v5933_v30 = vor.u32 %v7822_v17, %v5930_v18  ;;  %v6053_v8 = vor.u32 %v7852_v63, %v6050_v0  ;;  %v5954_v63 = vld [vmem:[%s8548_s27 + $0x7a0] sm:$0xf0] }
  0xcb   : > { %2285 = vmatpush.bf16.msra.mxu2 %v5093_v28  ;;  %v5189_v28 = vor.u32 %v7636_v10, %v5186_v12  ;;  %v7798_v10 = vld [vmem:[%s8548_s27 + $0x69c] sm:$0xf] }
  0xcc   : > { %2298 = vmatpush.bf16.msra.mxu3 %v5285_v29  ;;  %v5741_v29 = vor.u32 %v7774_v14, %v5738_v15  ;;  %v7846_v12 = vld [vmem:[%s8548_s27 + $0x81c] sm:$0xf]  ;;  %v6026_v14 = vld [vmem:[%s8548_s27 + $0x830] sm:$0xf0]  ;;  %v7696_v15 = vld [vmem:[%s8548_s27 + $0x36c] sm:$0xf] }
  0xcd   : > { %2260 = vmatpush.bf16.msra.mxu0 %v5833_v33  ;;  %v6125_v33 = vor.u32 %v7870_v19, %v6122_v23  ;;  %v5618_v23 = vld [vmem:[%s8548_s27 + $0x500] sm:$0xf0]  ;;  %v6029_v24 = vor.u32 %v7846_v12, %v6026_v14  ;;  %v5765_v12 = vor.u32 %v7780_v57, %v5762_v61  ;;  %v5144_v14 = vld [vmem:[%s8548_s27 + $0x130] sm:$0xf]  ;;  %v7712_v57 = vld [vmem:[%s8548_s27 + $0x3e4] sm:$0xf0] }
  0xce   : > { %2273 = vmatpush.bf16.msra.mxu1 %v6025_v39  ;;  %v7714_v39 = vld [vmem:[%s8548_s27 + $0x3fc] sm:$0xf]  ;;  %v7610_v61 = vld [vmem:[%s8548_s27 + $0xb4] sm:$0xf0] }
  0xcf   : > { %2286 = vmatpush.bf16.msra.mxu2 %v5069_v40  ;;  %v5498_v40 = vld [vmem:[%s8548_s27 + $0x410] sm:$0xf0] }
  0xd0   : > { %2299 = vmatpush.bf16.msra.mxu3 %v5261_v43  ;;  %v5717_v43 = vor.u32 %v7768_v31, %v5714_v32  ;;  %v5501_v48 = vor.u32 %v7714_v39, %v5498_v40  ;;  %v7690_v31 = vld [vmem:[%s8548_s27 + $0x33c] sm:$0xf]  ;;  %v5402_v32 = vld [vmem:[%s8548_s27 + $0x350] sm:$0xf0] }
  0xd1   : > { %2261 = vmatpush.bf16.msra.mxu0 %v5809_v47  ;;  %v6101_v47 = vor.u32 %v7864_v37, %v6098_v38  ;;  %v7738_v37 = vld [vmem:[%s8548_s27 + $0x4bc] sm:$0xf]  ;;  %v5594_v38 = vld [vmem:[%s8548_s27 + $0x4d0] sm:$0xf0] }
  0xd2   : > { %2274 = vmatpush.bf16.msra.mxu1 %v6001_v53  ;;  %v7708_v53 = vld [vmem:[%s8548_s27 + $0x3cc] sm:$0xf] }
  0xd3   : > { %2287 = vmatpush.bf16.msra.mxu2 %v5045_v54  ;;  %v5474_v54 = vld [vmem:[%s8548_s27 + $0x3e0] sm:$0xf0] }
  0xd4   : > { %2300 = vmatpush.bf16.msra.mxu3 %v5237_v55  ;;  %v5693_v55 = vor.u32 %v7762_v45, %v5690_v46  ;;  %v5477_v60 = vor.u32 %v7708_v53, %v5474_v54  ;;  %v5786_v45 = vld [vmem:[%s8548_s27 + $0x650] sm:$0xf0]  ;;  %v7834_v46 = vld [vmem:[%s8548_s27 + $0x7bc] sm:$0xf]  ;;  %v5597_v53 = vor.u32 %v7738_v37, %v5594_v38  ;;  %v5312_v38 = vld [vmem:[%s8548_s27 + $0x280] sm:$0xf] }
  0xd5   : > { %2262 = vmatpush.bf16.msra.mxu0 %v5785_v59  ;;  %v6077_v59 = vor.u32 %v7858_v51, %v6074_v52  ;;  %v5168_v51 = vld [vmem:[%s8548_s27 + $0x160] sm:$0xf]  ;;  %v7634_v52 = vld [vmem:[%s8548_s27 + $0x174] sm:$0xf0] }
  0xd6   : > { %2275 = vmatpush.bf16.msra.mxu1 %v5977_v2  ;;  %v5450_v2 = vld [vmem:[%s8548_s27 + $0x3b0] sm:$0xf0] }
  0xd7   : > { %2288 = vmatpush.bf16.msra.mxu2 %v5021_v6  ;;  %v5642_v6 = vld [vmem:[%s8548_s27 + $0x530] sm:$0xf0]  ;;  %v5453_v9 = vor.u32 %v7702_v1, %v5450_v2  ;;  %v5169_v1 = vor.u32 %v7634_v52, %v5168_v51  ;;  %v5360_v2 = vld [vmem:[%s8548_s27 + $0x2e0] sm:$0xf] }
  0xd8   : > { %2301 = vmatpush.bf16.msra.mxu3 %v5213_v7  ;;  %v8972_v7 = vld [vmem:[%s8969_s15] sm:$0x3f]  ;;  %v5645_v18 = vor.u32 %v7750_v5, %v5642_v6  ;;  %v7730_v6 = vld [vmem:[%s8548_s27 + $0x474] sm:$0xf0] }
  0xd9   : > { %2263 = vmatpush.bf16.msra.mxu0 %v5761_v11  ;;  %v5834_v11 = vld [vmem:[%s8548_s27 + $0x6b0] sm:$0xf0]  ;;  %v596_v17 = vperm.slane %v8972_v7, 0 }
  0xda   : > { %2276 = vmatpush.bf16.msra.mxu1 %v5953_v20  ;;  %v5837_v19 = vor.u32 %v7798_v10, %v5834_v11  ;;  %v7744_v20 = vld [vmem:[%s8548_s27 + $0x4ec] sm:$0xf]  ;;  %v2070_v39 = vpop.f32.mrf.mxu1 }
  0xdb   : > { %2289 = vmatpush.bf16.msra.mxu2 %v4997_v27  ;;  %v7792_v27 = vld [vmem:[%s8548_s27 + $0x66c] sm:$0xf]  ;;  %v5621_v35 = vor.u32 %v7744_v20, %v5618_v23 }
  0xdc   : > { %2302 = vmatpush.bf16.msra.mxu3 %v5189_v28  ;;  %2264 = vmatmul.bf16.vlgmr.msra.gmra.mxu0 %v8736_v42  ;;  %v5810_v28 = vld [vmem:[%s8548_s27 + $0x680] sm:$0xf0] }
  0xdd   : > { %2308 = vmatpush.bf16.msrb.mxu0 %v5549_v16  ;;  %2277 = vmatmul.bf16.vlgmr.msra.gmra.mxu1 %v8734_v41  ;;  %v5426_v16 = vld [vmem:[%s8548_s27 + $0x380] sm:$0xf0]  ;;  %v5813_v36 = vor.u32 %v7792_v27, %v5810_v28  ;;  %v5528_v27 = vld [vmem:[%s8548_s27 + $0x430] sm:$0xf] }
  0xde   : > { %2321 = vmatpush.bf16.msrb.mxu1 %v5741_v29  ;;  %2290 = vmatmul.bf16.vlgmr.msra.gmra.mxu2 %v8669_v13  ;;  %v5429_v25 = vor.u32 %v7696_v15, %v5426_v16  ;;  %v7840_v29 = vld [vmem:[%s8548_s27 + $0x7ec] sm:$0xf]  ;;  %v7628_v15 = vld [vmem:[%s8548_s27 + $0x144] sm:$0xf0] }
  0xdf   : > { %2334 = vmatpush.bf16.msrb.mxu2 %v5933_v30  ;;  %2303 = vmatmul.bf16.vlgmr.msra.gmra.mxu3 %v8676_v22  ;;  %v6002_v30 = vld [vmem:[%s8548_s27 + $0x800] sm:$0xf0]  ;;  %v5145_v28 = vor.u32 %v7628_v15, %v5144_v14  ;;  %v7604_v14 = vld [vmem:[%s8548_s27 + $0x84] sm:$0xf0] }
  0xe0   : > { %2347 = vmatpush.bf16.msrb.mxu3 %v6125_v33  ;;  %v2057_v33 = vpop.f32.mrf.mxu0  ;;  %v6005_v40 = vor.u32 %v7840_v29, %v6002_v30  ;;  %v7724_v29 = vld [vmem:[%s8548_s27 + $0x444] sm:$0xf0]  ;;  %v5720_v30 = vld [vmem:[%s8548_s27 + $0x5b0] sm:$0xf] }
  0xe1   : > { %2309 = vmatpush.bf16.msrb.mxu0 %v5525_v34  ;;  %v2058_v34 = vadd.f32 %v2057_v33, %v596_v17  ;;  %v2083_v58 = vpop.f32.mrf.mxu2  ;;  %v7622_v33 = vld [vmem:[%s8548_s27 + $0x114] sm:$0xf0] }
  0xe2   : > { %2322 = vmatpush.bf16.msrb.mxu1 %v5717_v43  ;;  %v5405_v43 = vor.u32 %v7690_v31, %v5402_v32  ;;  %v2096_v10 = vpop.f32.mrf.mxu3  ;;  %v2072_v17 = vpop.f32.mrf.mxu1  ;;  %v7772_v31 = vld [vmem:[%s8548_s27 + $0x5c4] sm:$0xf0]  ;;  %v5120_v32 = vld [vmem:[%s8548_s27 + $0x100] sm:$0xf] }
  0xe3   : > { %2335 = vmatpush.bf16.msrb.mxu2 %v5909_v44  ;;  %v7786_v44 = vld [vmem:[%s8548_s27 + $0x63c] sm:$0xf]  ;;  %v5721_v37 = vor.u32 %v7772_v31, %v5720_v30  ;;  %v5240_v17 = vld [vmem:[%s8548_s27 + $0x1f0] sm:$0xf]  ;;  %v5024_v30 = vld [vmem:[%s8548_s27 + $0x40] sm:$0xf] }
  0xe4   : > { %2348 = vmatpush.bf16.msrb.mxu3 %v6101_v47  ;;  %v2071_v47 = vadd.f32 %v2070_v39, %v2058_v34  ;;  %v5789_v54 = vor.u32 %v7786_v44, %v5786_v45  ;;  %v7670_v39 = vld [vmem:[%s8548_s27 + $0x294] sm:$0xf0]  ;;  %v5696_v45 = vld [vmem:[%s8548_s27 + $0x580] sm:$0xf] }
  0xe5   : > { %2310 = vmatpush.bf16.msrb.mxu0 %v5501_v48  ;;  %v5978_v48 = vld [vmem:[%s8548_s27 + $0x7d0] sm:$0xf0]  ;;  %v7718_v44 = vld [vmem:[%s8548_s27 + $0x414] sm:$0xf0] }
  0xe6   : > { %2323 = vmatpush.bf16.msrb.mxu1 %v5693_v55  ;;  %v7732_v55 = vld [vmem:[%s8548_s27 + $0x48c] sm:$0xf]  ;;  %v2084_v0 = vadd.f32 %v2083_v58, %v2071_v47  ;;  %v5672_v58 = vld [vmem:[%s8548_s27 + $0x550] sm:$0xf]  ;;  %v7598_v31 = vld [vmem:[%s8548_s27 + $0x54] sm:$0xf0] }
  0xe7   : > { %2336 = vmatpush.bf16.msrb.mxu2 %v5885_v56  ;;  %v5570_v56 = vld [vmem:[%s8548_s27 + $0x4a0] sm:$0xf0] }
  0xe8   : > { %2349 = vmatpush.bf16.msrb.mxu3 %v6077_v59  ;;  %v5981_v59 = vor.u32 %v7834_v46, %v5978_v48  ;;  %v2059_v5 = vpop.f32.mrf.mxu0  ;;  %v5573_v11 = vor.u32 %v7732_v55, %v5570_v56  ;;  %v9013_v16 = vadd.f32 %v2096_v10, %v2084_v0  ;;  %v7766_v46 = vld [vmem:[%s8548_s27 + $0x594] sm:$0xf0]  ;;  %v5096_v48 = vld [vmem:[%s8548_s27 + $0xd0] sm:$0xf] }
  0xe9   : > { %2311 = vmatpush.bf16.msrb.mxu0 %v5477_v60  ;;  %v5381_v60 = vor.u32 %v7684_v49, %v5378_v50  ;;  %v2085_v34 = vpop.f32.mrf.mxu2  ;;  %v7616_v49 = vld [vmem:[%s8548_s27 + $0xe4] sm:$0xf0]  ;;  %v5313_v50 = vor.u32 %v7670_v39, %v5312_v38  ;;  %v5697_v52 = vor.u32 %v7766_v46, %v5696_v45  ;;  %v5480_v55 = vld [vmem:[%s8548_s27 + $0x3d0] sm:$0xf]  ;;  %v5408_v38 = vld [vmem:[%s8548_s27 + $0x340] sm:$0xf] }
  0xea   : > { %2324 = vmatpush.bf16.msrb.mxu1 %v5669_v3  ;;  %v7682_v3 = vld [vmem:[%s8548_s27 + $0x2f4] sm:$0xf0]  ;;  %v2098_v47 = vpop.f32.mrf.mxu3  ;;  %v5097_v56 = vor.u32 %v7616_v49, %v5096_v48  ;;  %v5600_v46 = vld [vmem:[%s8548_s27 + $0x4c0] sm:$0xf]  ;;  %v5000_v49 = vld [vmem:[%s8548_s27 + $0x10] sm:$0xf] }
  0xeb   : > { %2337 = vmatpush.bf16.msrb.mxu2 %v5861_v4  ;;  %v5552_v4 = vld [vmem:[%s8548_s27 + $0x460] sm:$0xf]  ;;  %v7694_v45 = vld [vmem:[%s8548_s27 + $0x354] sm:$0xf0] }
  0xec   : > { %2350 = vmatpush.bf16.msrb.mxu3 %v6053_v8  ;;  %v5744_v8 = vld [vmem:[%s8548_s27 + $0x5e0] sm:$0xf]  ;;  %v5553_v20 = vor.u32 %v7730_v6, %v5552_v4  ;;  %v7706_v6 = vld [vmem:[%s8548_s27 + $0x3b4] sm:$0xf0] }
  0xed   : > { %2312 = vmatpush.bf16.msrb.mxu0 %v5453_v9  ;;  %v7778_v9 = vld [vmem:[%s8548_s27 + $0x5f4] sm:$0xf0] }
  0xee   : > { %2325 = vmatpush.bf16.msrb.mxu1 %v5645_v18  ;;  %v5957_v18 = vor.u32 %v7828_v62, %v5954_v63  ;;  %v5745_v23 = vor.u32 %v7778_v9, %v5744_v8  ;;  %v5481_v63 = vor.u32 %v7712_v57, %v5480_v55  ;;  %v5648_v8 = vld [vmem:[%s8548_s27 + $0x520] sm:$0xf]  ;;  %v7754_v9 = vld [vmem:[%s8548_s27 + $0x534] sm:$0xf0]  ;;  %v5409_v57 = vor.u32 %v7694_v45, %v5408_v38  ;;  %v7619_v38 = vld [vmem:[%s8548_s27 + $0x104] sm:$0xf] }
  0xef   : > { %2338 = vmatpush.bf16.msrb.mxu2 %v5837_v19  ;;  %v5361_v19 = vor.u32 %v7682_v3, %v5360_v2  ;;  %v7658_v2 = vld [vmem:[%s8548_s27 + $0x234] sm:$0xf0]  ;;  %v5456_v3 = vld [vmem:[%s8548_s27 + $0x3a0] sm:$0xf]  ;;  %v7808_v45 = vld [vmem:[%s8548_s27 + $0x6e4] sm:$0xf0] }
  0xf0   : > { %2351 = vmatpush.bf16.msrb.mxu3 %v6029_v24  ;;  %v5336_v24 = vld [vmem:[%s8548_s27 + $0x2b0] sm:$0xf]  ;;  %v7742_v47 = vld [vmem:[%s8548_s27 + $0x4d4] sm:$0xf0]  ;;  %v5936_v55 = vld [vmem:[%s8548_s27 + $0x760] sm:$0xf] }
  0xf1   : > { %2313 = vmatpush.bf16.msrb.mxu0 %v5429_v25  ;;  %v7676_v25 = vld [vmem:[%s8548_s27 + $0x2c4] sm:$0xf0] }
  0xf2   : > { %2326 = vmatpush.bf16.msrb.mxu1 %v5621_v35  ;;  %v5337_v35 = vor.u32 %v7676_v25, %v5336_v24  ;;  %v5432_v24 = vld [vmem:[%s8548_s27 + $0x370] sm:$0xf] }
  0xf3   : > { %2339 = vmatpush.bf16.msrb.mxu2 %v5813_v36  ;;  %v5529_v36 = vor.u32 %v7724_v29, %v5528_v27  ;;  %v7700_v27 = vld [vmem:[%s8548_s27 + $0x384] sm:$0xf0] }
  0xf4   : > { %2352 = vmatpush.bf16.msrb.mxu3 %v6005_v40  ;;  %v5504_v40 = vld [vmem:[%s8548_s27 + $0x400] sm:$0xf]  ;;  %v7748_v29 = vld [vmem:[%s8548_s27 + $0x504] sm:$0xf0]  ;;  %v5433_v34 = vor.u32 %v7700_v27, %v5432_v24  ;;  %v5146_v27 = vld [vmem:[%s8548_s27 + $0x148] sm:$0xf0] }
  0xf5   : > { %2314 = vmatpush.bf16.msrb.mxu0 %v5405_v43  ;;  %v5121_v43 = vor.u32 %v7622_v33, %v5120_v32  ;;  %v5505_v51 = vor.u32 %v7718_v44, %v5504_v40  ;;  %v5025_v44 = vor.u32 %v7598_v31, %v5024_v30  ;;  %v5888_v30 = vld [vmem:[%s8548_s27 + $0x700] sm:$0xf]  ;;  %v7814_v31 = vld [vmem:[%s8548_s27 + $0x714] sm:$0xf0] }
  0xf6   : > { %2327 = vmatpush.bf16.msrb.mxu1 %v5597_v53  ;;  %v5288_v53 = vld [vmem:[%s8548_s27 + $0x250] sm:$0xf] }
  0xf7   : > { %2340 = vmatpush.bf16.msrb.mxu2 %v5789_v54  ;;  %v7664_v54 = vld [vmem:[%s8548_s27 + $0x264] sm:$0xf0] }
  0xf8   : > { %2353 = vmatpush.bf16.msrb.mxu3 %v5981_v59  ;;  %v7760_v59 = vld [vmem:[%s8548_s27 + $0x564] sm:$0xf0]  ;;  %v5289_v62 = vor.u32 %v7664_v54, %v5288_v53 }
  0xf9   : > { %2315 = vmatpush.bf16.msrb.mxu0 %v5381_v60  ;;  %v5072_v60 = vld [vmem:[%s8548_s27 + $0xa0] sm:$0xf]  ;;  %v5673_v0 = vor.u32 %v7760_v59, %v5672_v58  ;;  %v2109_v10 = vpop.f32.mrf.mxu0  ;;  %v7640_v54 = vld [vmem:[%s8548_s27 + $0x1a4] sm:$0xf0]  ;;  %v5601_v58 = vor.u32 %v7742_v47, %v5600_v46  ;;  %v5384_v59 = vld [vmem:[%s8548_s27 + $0x310] sm:$0xf] }
  0xfa   : > { %2328 = vmatpush.bf16.msrb.mxu1 %v5573_v11  ;;  %v2122_v4 = vpop.f32.mrf.mxu1  ;;  %v5073_v5 = vor.u32 %v7610_v61, %v5072_v60  ;;  %v2110_v11 = vadd.f32 %v2109_v10, %v9013_v16  ;;  %v597_v16 = vperm.slane %v8972_v7, 1  ;;  %v7688_v60 = vld [vmem:[%s8548_s27 + $0x324] sm:$0xf0]  ;;  %v5576_v61 = vld [vmem:[%s8548_s27 + $0x490] sm:$0xf] }
  0xfb   : > { %2341 = vmatpush.bf16.msrb.mxu2 %v5765_v12  ;;  %v5048_v12 = vld [vmem:[%s8548_s27 + $0x70] sm:$0xf]  ;;  %v7820_v10 = vld [vmem:[%s8548_s27 + $0x744] sm:$0xf0] }
  0xfc   : > { %2354 = vmatpush.bf16.msrb.mxu3 %v5957_v18  ;;  %2316 = vmatmul.bf16.vlgmr.msrb.gmra.mxu0 %v8674_v21  ;;  %v5457_v18 = vor.u32 %v7706_v6, %v5456_v3  ;;  %v5049_v25 = vor.u32 %v7604_v14, %v5048_v12  ;;  %v7631_v3 = vld [vmem:[%s8548_s27 + $0x164] sm:$0xf]  ;;  %v5385_v12 = vor.u32 %v7688_v60, %v5384_v59 }
  0xfd   : > { %2360 = vmatpush.bf16.msra.mxu0 %v5169_v1  ;;  %2329 = vmatmul.bf16.vlgmr.msrb.gmra.mxu1 %v8680_v26  ;;  %v5264_v1 = vld [vmem:[%s8548_s27 + $0x220] sm:$0xf] }
  0xfe   : > { %2373 = vmatpush.bf16.msra.mxu1 %v5361_v19  ;;  %2342 = vmatmul.bf16.vlgmr.msrb.gmra.mxu2 %v8736_v42  ;;  %v5265_v15 = vor.u32 %v7658_v2, %v5264_v1  ;;  %v5649_v19 = vor.u32 %v7754_v9, %v5648_v8  ;;  %v7874_v1 = vld [vmem:[%s8548_s27 + $0x8f4] sm:$0xf0]  ;;  %v5362_v8 = vld [vmem:[%s8548_s27 + $0x2f8] sm:$0xf0]  ;;  %v5912_v9 = vld [vmem:[%s8548_s27 + $0x730] sm:$0xf] }
  0xff   : > { %2386 = vmatpush.bf16.msra.mxu2 %v5553_v20  ;;  %2355 = vmatmul.bf16.vlgmr.msrb.gmra.mxu3 %v8734_v41  ;;  %v9053_v20 = vadd.f32 %v2122_v4, %v2110_v11  ;;  %v5170_v4 = vld [vmem:[%s8548_s27 + $0x178] sm:$0xf0] }
 0x100   : > { %2399 = vmatpush.bf16.msra.mxu3 %v5745_v23  ;;  %v7652_v23 = vld [vmem:[%s8548_s27 + $0x204] sm:$0xf0] }
 0x101   : > { %2361 = vmatpush.bf16.msra.mxu0 %v5145_v28  ;;  %v5624_v28 = vld [vmem:[%s8548_s27 + $0x4f0] sm:$0xf]  ;;  %v5241_v32 = vor.u32 %v7652_v23, %v5240_v17  ;;  %v2135_v33 = vpop.f32.mrf.mxu2  ;;  %v2111_v48 = vpop.f32.mrf.mxu0  ;;  %v7868_v23 = vld [vmem:[%s8548_s27 + $0x8c4] sm:$0xf0] }
 0x102   : > { %2374 = vmatpush.bf16.msra.mxu1 %v5337_v35  ;;  %v5625_v35 = vor.u32 %v7748_v29, %v5624_v28  ;;  %v2136_v39 = vadd.f32 %v2135_v33, %v597_v16  ;;  %v2148_v40 = vpop.f32.mrf.mxu3  ;;  %v5913_v16 = vor.u32 %v7820_v10, %v5912_v9  ;;  %v7673_v28 = vld [vmem:[%s8548_s27 + $0x2b4] sm:$0xf]  ;;  %v5338_v29 = vld [vmem:[%s8548_s27 + $0x2c8] sm:$0xf0]  ;;  %v6056_v48 = vld [vmem:[%s8548_s27 + $0x850] sm:$0xf] }
 0x103   : > { %2387 = vmatpush.bf16.msra.mxu2 %v5529_v36  ;;  %v5216_v36 = vld [vmem:[%s8548_s27 + $0x1c0] sm:$0xf]  ;;  %v5816_v9 = vld [vmem:[%s8548_s27 + $0x670] sm:$0xf]  ;;  %v7796_v10 = vld [vmem:[%s8548_s27 + $0x684] sm:$0xf0] }
 0x104   : > { %2400 = vmatpush.bf16.msra.mxu3 %v5721_v37  ;;  %v7646_v37 = vld [vmem:[%s8548_s27 + $0x1d4] sm:$0xf0] }
 0x105   : > { %2362 = vmatpush.bf16.msra.mxu0 %v5121_v43  ;;  %v2124_v43 = vpop.f32.mrf.mxu1  ;;  %v5217_v53 = vor.u32 %v7646_v37, %v5216_v36  ;;  %v5341_v36 = vor.u32 %v7673_v28, %v5338_v29  ;;  %v5889_v37 = vor.u32 %v7814_v31, %v5888_v30 }
 0x106   : > { %2375 = vmatpush.bf16.msra.mxu1 %v5313_v50  ;;  %v7592_v50 = vld [vmem:[%s8548_s27 + $0x24] sm:$0xf0]  ;;  %v5314_v43 = vld [vmem:[%s8548_s27 + $0x298] sm:$0xf0] }
 0x107   : > { %2388 = vmatpush.bf16.msra.mxu2 %v5505_v51  ;;  %v5192_v51 = vld [vmem:[%s8548_s27 + $0x190] sm:$0xf] }
 0x108   : > { %2401 = vmatpush.bf16.msra.mxu3 %v5697_v52  ;;  %v9072_v52 = vadd.f32 %v2148_v40, %v2136_v39  ;;  %v5193_v6 = vor.u32 %v7640_v54, %v5192_v51  ;;  %v5122_v39 = vld [vmem:[%s8548_s27 + $0x118] sm:$0xf0]  ;;  %v7667_v40 = vld [vmem:[%s8548_s27 + $0x284] sm:$0xf]  ;;  %v5098_v54 = vld [vmem:[%s8548_s27 + $0xe8] sm:$0xf0] }
 0x109   : > { %2363 = vmatpush.bf16.msra.mxu0 %v5097_v56  ;;  %v7826_v56 = vld [vmem:[%s8548_s27 + $0x774] sm:$0xf0]  ;;  %v2137_v11 = vpop.f32.mrf.mxu2  ;;  %v5125_v47 = vor.u32 %v7619_v38, %v5122_v39  ;;  %v5026_v38 = vld [vmem:[%s8548_s27 + $0x58] sm:$0xf0]  ;;  %v7643_v39 = vld [vmem:[%s8548_s27 + $0x1c4] sm:$0xf] }
 0x10a   : > { %2376 = vmatpush.bf16.msra.mxu1 %v5289_v62  ;;  %v5001_v62 = vor.u32 %v7592_v50, %v5000_v49  ;;  %v5937_v2 = vor.u32 %v7826_v56, %v5936_v55  ;;  %v7856_v49 = vld [vmem:[%s8548_s27 + $0x864] sm:$0xf0]  ;;  %v5317_v50 = vor.u32 %v7667_v40, %v5314_v43  ;;  %v7661_v55 = vld [vmem:[%s8548_s27 + $0x254] sm:$0xf]  ;;  %v5290_v56 = vld [vmem:[%s8548_s27 + $0x268] sm:$0xf0] }
 0x10b   : > { %2389 = vmatpush.bf16.msra.mxu2 %v5481_v63  ;;  %v7736_v63 = vld [vmem:[%s8548_s27 + $0x4a4] sm:$0xf0]  ;;  %v6057_v59 = vor.u32 %v7856_v49, %v6056_v48  ;;  %v7727_v48 = vld [vmem:[%s8548_s27 + $0x464] sm:$0xf]  ;;  %v5554_v49 = vld [vmem:[%s8548_s27 + $0x478] sm:$0xf0] }
 0x10c   : > { %2402 = vmatpush.bf16.msra.mxu3 %v5673_v0  ;;  %v6128_v0 = vld [vmem:[%s8548_s27 + $0x8e0] sm:$0xf]  ;;  %v5577_v14 = vor.u32 %v7736_v63, %v5576_v61  ;;  %v5293_v63 = vor.u32 %v7661_v55, %v5290_v56  ;;  %v7589_v55 = vld [vmem:[%s8548_s27 + $0x14] sm:$0xf] }
 0x10d   : > { %2364 = vmatpush.bf16.msra.mxu0 %v5073_v5  ;;  %v7679_v5 = vld [vmem:[%s8548_s27 + $0x2e4] sm:$0xf]  ;;  %v6129_v17 = vor.u32 %v7874_v1, %v6128_v0  ;;  %v6032_v61 = vld [vmem:[%s8548_s27 + $0x820] sm:$0xf] }
 0x10e   : > { %2377 = vmatpush.bf16.msra.mxu1 %v5265_v15  ;;  %v2150_v15 = vpop.f32.mrf.mxu3  ;;  %v5365_v24 = vor.u32 %v7679_v5, %v5362_v8  ;;  %v7607_v1 = vld [vmem:[%s8548_s27 + $0xa4] sm:$0xf]  ;;  %v5266_v5 = vld [vmem:[%s8548_s27 + $0x238] sm:$0xf0] }
 0x10f   : > { %2390 = vmatpush.bf16.msra.mxu2 %v5457_v18  ;;  %v5173_v18 = vor.u32 %v7631_v3, %v5170_v4  ;;  %v7655_v3 = vld [vmem:[%s8548_s27 + $0x224] sm:$0xf]  ;;  %v6008_v15 = vld [vmem:[%s8548_s27 + $0x7f0] sm:$0xf] }
 0x110   : > { %2403 = vmatpush.bf16.msra.mxu3 %v5649_v19  ;;  %v6104_v19 = vld [vmem:[%s8548_s27 + $0x8b0] sm:$0xf] }
 0x111   : > { %2365 = vmatpush.bf16.msra.mxu0 %v5049_v25  ;;  %v7625_v25 = vld [vmem:[%s8548_s27 + $0x134] sm:$0xf] }
 0x112   : > { %2378 = vmatpush.bf16.msra.mxu1 %v5241_v32  ;;  %v6105_v32 = vor.u32 %v7868_v23, %v6104_v19  ;;  %v5149_v33 = vor.u32 %v7625_v25, %v5146_v27  ;;  %v7601_v19 = vld [vmem:[%s8548_s27 + $0x74] sm:$0xf]  ;;  %v5050_v23 = vld [vmem:[%s8548_s27 + $0x88] sm:$0xf0]  ;;  %v5792_v25 = vld [vmem:[%s8548_s27 + $0x640] sm:$0xf] }
 0x113   : > { %2391 = vmatpush.bf16.msra.mxu2 %v5433_v34  ;;  %v6080_v34 = vld [vmem:[%s8548_s27 + $0x880] sm:$0xf]  ;;  %v7790_v27 = vld [vmem:[%s8548_s27 + $0x654] sm:$0xf0]  ;;  %v5053_v30 = vor.u32 %v7601_v19, %v5050_v23  ;;  %v5914_v23 = vld [vmem:[%s8548_s27 + $0x748] sm:$0xf0] }
 0x114   : > { %2404 = vmatpush.bf16.msra.mxu3 %v5625_v35  ;;  %v7862_v35 = vld [vmem:[%s8548_s27 + $0x894] sm:$0xf0] }
 0x115   : > { %2366 = vmatpush.bf16.msra.mxu0 %v5025_v44  ;;  %v5864_v44 = vld [vmem:[%s8548_s27 + $0x6d0] sm:$0xf]  ;;  %v6081_v46 = vor.u32 %v7862_v35, %v6080_v34  ;;  %v7838_v34 = vld [vmem:[%s8548_s27 + $0x7d4] sm:$0xf0] }
 0x116   : > { %2379 = vmatpush.bf16.msra.mxu1 %v5217_v53  ;;  %v5865_v51 = vor.u32 %v7808_v45, %v5864_v44  ;;  %v7613_v53 = vld [vmem:[%s8548_s27 + $0xd4] sm:$0xf]  ;;  %v5218_v44 = vld [vmem:[%s8548_s27 + $0x1d8] sm:$0xf0]  ;;  %v5768_v45 = vld [vmem:[%s8548_s27 + $0x610] sm:$0xf] }
 0x117   : > { %2392 = vmatpush.bf16.msra.mxu2 %v5409_v57  ;;  %v5840_v57 = vld [vmem:[%s8548_s27 + $0x6a0] sm:$0xf]  ;;  %v5101_v60 = vor.u32 %v7613_v53, %v5098_v54  ;;  %v5960_v53 = vld [vmem:[%s8548_s27 + $0x790] sm:$0xf]  ;;  %v7832_v54 = vld [vmem:[%s8548_s27 + $0x7a4] sm:$0xf0]  ;;  %v5221_v56 = vor.u32 %v7643_v39, %v5218_v44 }
 0x118   : > { %2405 = vmatpush.bf16.msra.mxu3 %v5601_v58  ;;  %v7802_v58 = vld [vmem:[%s8548_s27 + $0x6b4] sm:$0xf0]  ;;  %v5482_v39 = vld [vmem:[%s8548_s27 + $0x3e8] sm:$0xf0] }
 0x119   : > { %2367 = vmatpush.bf16.msra.mxu0 %v5001_v62  ;;  %v7850_v62 = vld [vmem:[%s8548_s27 + $0x834] sm:$0xf0]  ;;  %v5841_v0 = vor.u32 %v7802_v58, %v5840_v57  ;;  %v2161_v4 = vpop.f32.mrf.mxu0  ;;  %v5002_v58 = vld [vmem:[%s8548_s27 + $0x28] sm:$0xf0] }
 0x11a   : > { %2380 = vmatpush.bf16.msra.mxu1 %v5193_v6  ;;  %v2162_v6 = vadd.f32 %v2161_v4, %v9072_v52  ;;  %v2174_v8 = vpop.f32.mrf.mxu1  ;;  %v6033_v11 = vor.u32 %v7850_v62, %v6032_v61  ;;  %v5817_v52 = vor.u32 %v7796_v10, %v5816_v9  ;;  %v5557_v61 = vor.u32 %v7727_v48, %v5554_v49  ;;  %v7775_v62 = vld [vmem:[%s8548_s27 + $0x5e4] sm:$0xf]  ;;  %v5530_v9 = vld [vmem:[%s8548_s27 + $0x448] sm:$0xf0]  ;;  %v7853_v49 = vld [vmem:[%s8548_s27 + $0x854] sm:$0xf] }
 0x11b   : > { %2393 = vmatpush.bf16.msra.mxu2 %v5385_v12  ;;  %v5866_v48 = vld [vmem:[%s8548_s27 + $0x6e8] sm:$0xf0] }
 0x11c   : > { %2406 = vmatpush.bf16.msra.mxu3 %v5577_v14  ;;  %2368 = vmatmul.bf16.vlgmr.msra.gmra.mxu0 %v8669_v13  ;;  %v2175_v14 = vadd.f32 %v2174_v8, %v2162_v6  ;;  %v5005_v6 = vor.u32 %v7589_v55, %v5002_v58  ;;  %v7721_v8 = vld [vmem:[%s8548_s27 + $0x434] sm:$0xf]  ;;  %v7751_v58 = vld [vmem:[%s8548_s27 + $0x524] sm:$0xf] }
 0x11d   : > { %2412 = vmatpush.bf16.msrb.mxu0 %v5937_v2  ;;  %2381 = vmatmul.bf16.vlgmr.msra.gmra.mxu1 %v8676_v22  ;;  %v5074_v2 = vld [vmem:[%s8548_s27 + $0xb8] sm:$0xf0]  ;;  %v5533_v19 = vor.u32 %v7721_v8, %v5530_v9  ;;  %v7745_v8 = vld [vmem:[%s8548_s27 + $0x4f4] sm:$0xf]  ;;  %v5626_v9 = vld [vmem:[%s8548_s27 + $0x508] sm:$0xf0] }
 0x11e   : > { %2425 = vmatpush.bf16.msrb.mxu1 %v6129_v17  ;;  %2394 = vmatmul.bf16.vlgmr.msra.gmra.mxu2 %v8674_v21  ;;  %v5077_v12 = vor.u32 %v7607_v1, %v5074_v2  ;;  %v7844_v17 = vld [vmem:[%s8548_s27 + $0x804] sm:$0xf0]  ;;  %v5938_v1 = vld [vmem:[%s8548_s27 + $0x778] sm:$0xf0]  ;;  %v7871_v2 = vld [vmem:[%s8548_s27 + $0x8e4] sm:$0xf] }
 0x11f   : > { %2438 = vmatpush.bf16.msrb.mxu2 %v5173_v18  ;;  %2407 = vmatmul.bf16.vlgmr.msra.gmra.mxu3 %v8680_v26  ;;  %v5269_v18 = vor.u32 %v7655_v3, %v5266_v5  ;;  %v6009_v29 = vor.u32 %v7844_v17, %v6008_v15  ;;  %v6130_v3 = vld [vmem:[%s8548_s27 + $0x8f8] sm:$0xf0]  ;;  %v5961_v5 = vor.u32 %v7832_v54, %v5960_v53  ;;  %v7769_v17 = vld [vmem:[%s8548_s27 + $0x5b4] sm:$0xf]  ;;  %v598_v54 = vperm.slane %v8972_v7, 2 }
 0x120   : > { %2451 = vmatpush.bf16.msrb.mxu3 %v5365_v24  ;;  %v7649_v24 = vld [vmem:[%s8548_s27 + $0x1f4] sm:$0xf]  ;;  %v6133_v15 = vor.u32 %v7871_v2, %v6130_v3  ;;  %v5458_v53 = vld [vmem:[%s8548_s27 + $0x3b8] sm:$0xf0]  ;;  %v5434_v2 = vld [vmem:[%s8548_s27 + $0x388] sm:$0xf0] }
 0x121   : > { %2413 = vmatpush.bf16.msrb.mxu0 %v5913_v16  ;;  %v5242_v16 = vld [vmem:[%s8548_s27 + $0x208] sm:$0xf0]  ;;  %v2187_v28 = vpop.f32.mrf.mxu2  ;;  %v2163_v40 = vpop.f32.mrf.mxu0 }
 0x122   : > { %2426 = vmatpush.bf16.msrb.mxu1 %v6105_v32  ;;  %v2188_v31 = vadd.f32 %v2187_v28, %v2175_v14  ;;  %v2200_v32 = vpop.f32.mrf.mxu3  ;;  %v5245_v35 = vor.u32 %v7649_v24, %v5242_v16  ;;  %v7865_v24 = vld [vmem:[%s8548_s27 + $0x8b4] sm:$0xf]  ;;  %v6106_v16 = vld [vmem:[%s8548_s27 + $0x8c8] sm:$0xf0] }
 0x123   : > { %2439 = vmatpush.bf16.msrb.mxu2 %v5149_v33  ;;  %v5984_v33 = vld [vmem:[%s8548_s27 + $0x7c0] sm:$0xf] }
 0x124   : > { %2452 = vmatpush.bf16.msrb.mxu3 %v5341_v36  ;;  %v5793_v36 = vor.u32 %v7790_v27, %v5792_v25  ;;  %v9139_v43 = vadd.f32 %v2200_v32, %v2188_v31  ;;  %v7715_v25 = vld [vmem:[%s8548_s27 + $0x404] sm:$0xf]  ;;  %v5506_v27 = vld [vmem:[%s8548_s27 + $0x418] sm:$0xf0] }
 0x125   : > { %2414 = vmatpush.bf16.msrb.mxu0 %v5889_v37  ;;  %v7595_v37 = vld [vmem:[%s8548_s27 + $0x44] sm:$0xf]  ;;  %v5698_v32 = vld [vmem:[%s8548_s27 + $0x598] sm:$0xf0] }
 0x126   : > { %2427 = vmatpush.bf16.msrb.mxu1 %v6081_v46  ;;  %v7784_v46 = vld [vmem:[%s8548_s27 + $0x624] sm:$0xf0]  ;;  %v7763_v31 = vld [vmem:[%s8548_s27 + $0x584] sm:$0xf] }
 0x127   : > { %2440 = vmatpush.bf16.msrb.mxu2 %v5125_v47  ;;  %v2176_v47 = vpop.f32.mrf.mxu1  ;;  %v5769_v57 = vor.u32 %v7784_v46, %v5768_v45  ;;  %v5701_v40 = vor.u32 %v7763_v31, %v5698_v32  ;;  %v7757_v45 = vld [vmem:[%s8548_s27 + $0x554] sm:$0xf]  ;;  %v5674_v46 = vld [vmem:[%s8548_s27 + $0x568] sm:$0xf0]  ;;  %v7787_v31 = vld [vmem:[%s8548_s27 + $0x644] sm:$0xf] }
 0x128   : > { %2453 = vmatpush.bf16.msrb.mxu3 %v5317_v50  ;;  %v5985_v50 = vor.u32 %v7838_v34, %v5984_v33  ;;  %v7811_v33 = vld [vmem:[%s8548_s27 + $0x704] sm:$0xf]  ;;  %v5509_v34 = vor.u32 %v7715_v25, %v5506_v27  ;;  %v7805_v47 = vld [vmem:[%s8548_s27 + $0x6d4] sm:$0xf]  ;;  %v5677_v55 = vor.u32 %v7757_v45, %v5674_v46  ;;  %v5578_v46 = vld [vmem:[%s8548_s27 + $0x4a8] sm:$0xf0] }
 0x129   : > { %2415 = vmatpush.bf16.msrb.mxu0 %v5865_v51  ;;  %v5029_v51 = vor.u32 %v7595_v37, %v5026_v38  ;;  %v2189_v4 = vpop.f32.mrf.mxu2  ;;  %v6082_v37 = vld [vmem:[%s8548_s27 + $0x898] sm:$0xf0]  ;;  %v7709_v38 = vld [vmem:[%s8548_s27 + $0x3d4] sm:$0xf] }
 0x12a   : > { %2428 = vmatpush.bf16.msrb.mxu1 %v6057_v59  ;;  %v7637_v59 = vld [vmem:[%s8548_s27 + $0x194] sm:$0xf]  ;;  %v2202_v10 = vpop.f32.mrf.mxu3 }
 0x12b   : > { %2441 = vmatpush.bf16.msrb.mxu2 %v5101_v60  ;;  %v5194_v60 = vld [vmem:[%s8548_s27 + $0x1a8] sm:$0xf0]  ;;  %v7793_v10 = vld [vmem:[%s8548_s27 + $0x674] sm:$0xf] }
 0x12c   : > { %2454 = vmatpush.bf16.msrb.mxu3 %v5293_v63  ;;  %v5746_v63 = vld [vmem:[%s8548_s27 + $0x5f8] sm:$0xf0]  ;;  %v7733_v45 = vld [vmem:[%s8548_s27 + $0x494] sm:$0xf] }
 0x12d   : > { %2416 = vmatpush.bf16.msrb.mxu0 %v5841_v0  ;;  %v7823_v0 = vld [vmem:[%s8548_s27 + $0x764] sm:$0xf] }
 0x12e   : > { %2429 = vmatpush.bf16.msrb.mxu1 %v6033_v11  ;;  %v5197_v11 = vor.u32 %v7637_v59, %v5194_v60  ;;  %v5941_v14 = vor.u32 %v7823_v0, %v5938_v1  ;;  %v5650_v59 = vld [vmem:[%s8548_s27 + $0x538] sm:$0xf0]  ;;  %v7799_v60 = vld [vmem:[%s8548_s27 + $0x6a4] sm:$0xf]  ;;  %v7697_v1 = vld [vmem:[%s8548_s27 + $0x374] sm:$0xf] }
 0x12f   : > { %2442 = vmatpush.bf16.msrb.mxu2 %v5077_v12  ;;  %v5749_v12 = vor.u32 %v7775_v62, %v5746_v63  ;;  %v5842_v62 = vld [vmem:[%s8548_s27 + $0x6b8] sm:$0xf0]  ;;  %v7847_v63 = vld [vmem:[%s8548_s27 + $0x824] sm:$0xf]  ;;  %v5653_v4 = vor.u32 %v7751_v58, %v5650_v59 }
 0x130   : > { %2455 = vmatpush.bf16.msrb.mxu3 %v5269_v18  ;;  %v5722_v18 = vld [vmem:[%s8548_s27 + $0x5c8] sm:$0xf0]  ;;  %v6034_v0 = vld [vmem:[%s8548_s27 + $0x838] sm:$0xf0] }
 0x131   : > { %2417 = vmatpush.bf16.msrb.mxu0 %v5817_v52  ;;  %v7817_v52 = vld [vmem:[%s8548_s27 + $0x734] sm:$0xf]  ;;  %v5725_v28 = vor.u32 %v7769_v17, %v5722_v18  ;;  %v6010_v17 = vld [vmem:[%s8548_s27 + $0x808] sm:$0xf0] }
 0x132   : > { %2430 = vmatpush.bf16.msrb.mxu1 %v6009_v29  ;;  %v5917_v29 = vor.u32 %v7817_v52, %v5914_v23  ;;  %v7691_v52 = vld [vmem:[%s8548_s27 + $0x344] sm:$0xf] }
 0x133   : > { %2443 = vmatpush.bf16.msrb.mxu2 %v5053_v30  ;;  %v6109_v30 = vor.u32 %v7865_v24, %v6106_v16  ;;  %v5629_v24 = vor.u32 %v7745_v8, %v5626_v9 }
 0x134   : > { %2456 = vmatpush.bf16.msrb.mxu3 %v5245_v35  ;;  %v5890_v35 = vld [vmem:[%s8548_s27 + $0x718] sm:$0xf0] }
 0x135   : > { %2418 = vmatpush.bf16.msrb.mxu0 %v5793_v36  ;;  %v7859_v36 = vld [vmem:[%s8548_s27 + $0x884] sm:$0xf] }
 0x136   : > { %2431 = vmatpush.bf16.msrb.mxu1 %v5985_v50  ;;  %v6085_v44 = vor.u32 %v7859_v36, %v6082_v37  ;;  %v6058_v50 = vld [vmem:[%s8548_s27 + $0x868] sm:$0xf0] }
 0x137   : > { %2444 = vmatpush.bf16.msrb.mxu2 %v5029_v51  ;;  %v7703_v51 = vld [vmem:[%s8548_s27 + $0x3a4] sm:$0xf] }
 0x138   : > { %2457 = vmatpush.bf16.msrb.mxu3 %v5221_v56  ;;  %v5869_v56 = vor.u32 %v7805_v47, %v5866_v48  ;;  %v7781_v47 = vld [vmem:[%s8548_s27 + $0x614] sm:$0xf] }
 0x139   : > { %2419 = vmatpush.bf16.msrb.mxu0 %v5769_v57  ;;  %v6061_v57 = vor.u32 %v7853_v49, %v6058_v50  ;;  %v2213_v7 = vpop.f32.mrf.mxu0  ;;  %v5770_v49 = vld [vmem:[%s8548_s27 + $0x628] sm:$0xf0]  ;;  %v7829_v50 = vld [vmem:[%s8548_s27 + $0x794] sm:$0xf] }
 0x13a   : > { %2432 = vmatpush.bf16.msrb.mxu1 %v5961_v5  ;;  %v2214_v3 = vadd.f32 %v2213_v7, %v598_v54  ;;  %v5845_v5 = vor.u32 %v7799_v60, %v5842_v62  ;;  %v5581_v54 = vor.u32 %v7733_v45, %v5578_v46 }
 0x13b   : > { %2445 = vmatpush.bf16.msrb.mxu2 %v5005_v6  ;;  %v6037_v6 = vor.u32 %v7847_v63, %v6034_v0 }
 0x13c   : > { %2458 = vmatpush.bf16.msrb.mxu3 %v5197_v11  ;;  %2420 = vmatmul.bf16.vlgmr.msrb.gmra.mxu0 %v8736_v42  ;;  %v2226_v11 = vpop.f32.mrf.mxu1 }
 0x13d   : > { %2464 = vmatpush.bf16.msra.mxu0 %v5557_v61  ;;  %2433 = vmatmul.bf16.vlgmr.msrb.gmra.mxu1 %v8734_v41  ;;  %v5461_v61 = vor.u32 %v7703_v51, %v5458_v53  ;;  %v2227_v18 = vadd.f32 %v2226_v11, %v2214_v3  ;;  %v5962_v51 = vld [vmem:[%s8548_s27 + $0x7a8] sm:$0xf0] }
 0x13e   : > { %2477 = vmatpush.bf16.msra.mxu1 %v5749_v12  ;;  %2446 = vmatmul.bf16.vlgmr.msrb.gmra.mxu2 %v8669_v13  ;;  %v5893_v13 = vor.u32 %v7811_v33, %v5890_v35  ;;  %v5437_v12 = vor.u32 %v7697_v1, %v5434_v2  ;;  %v5794_v33 = vld [vmem:[%s8548_s27 + $0x658] sm:$0xf0] }
 0x13f   : > { %2490 = vmatpush.bf16.msra.mxu2 %v5941_v14  ;;  %2459 = vmatmul.bf16.vlgmr.msrb.gmra.mxu3 %v8676_v22  ;;  %v5485_v22 = vor.u32 %v7709_v38, %v5482_v39  ;;  %v5818_v14 = vld [vmem:[%s8548_s27 + $0x688] sm:$0xf0]  ;;  %v5986_v35 = vld [vmem:[%s8548_s27 + $0x7d8] sm:$0xf0]  ;;  %v7685_v38 = vld [vmem:[%s8548_s27 + $0x314] sm:$0xf] }
 0x140   : > { %2503 = vmatpush.bf16.msra.mxu3 %v6133_v15  ;;  %v7841_v15 = vld [vmem:[%s8548_s27 + $0x7f4] sm:$0xf]  ;;  %v5821_v27 = vor.u32 %v7793_v10, %v5818_v14  ;;  %v5386_v39 = vld [vmem:[%s8548_s27 + $0x328] sm:$0xf0] }
 0x141   : > { %2465 = vmatpush.bf16.msra.mxu0 %v5533_v19  ;;  %v5410_v19 = vld [vmem:[%s8548_s27 + $0x358] sm:$0xf0]  ;;  %v2239_v23 = vpop.f32.mrf.mxu2  ;;  %v2215_v37 = vpop.f32.mrf.mxu0  ;;  %v5389_v48 = vor.u32 %v7685_v38, %v5386_v39 }
 0x142   : > { %2478 = vmatpush.bf16.msra.mxu1 %v5725_v28  ;;  %v2240_v16 = vadd.f32 %v2239_v23, %v2227_v18  ;;  %v2252_v25 = vpop.f32.mrf.mxu3  ;;  %v6013_v28 = vor.u32 %v7841_v15, %v6010_v17  ;;  %v5413_v32 = vor.u32 %v7691_v52, %v5410_v19 }
 0x143   : > { %2491 = vmatpush.bf16.msra.mxu2 %v5917_v29  ;;  %v7739_v29 = vld [vmem:[%s8548_s27 + $0x4c4] sm:$0xf] }
 0x144   : > { %2504 = vmatpush.bf16.msra.mxu3 %v6109_v30  ;;  %v5602_v30 = vld [vmem:[%s8548_s27 + $0x4d8] sm:$0xf0]  ;;  %v2253_v36 = vadd.f32 %v2252_v25, %v2240_v16 }
 0x145   : > { %2466 = vmatpush.bf16.msra.mxu0 %v5509_v34  ;;  %v7835_v34 = vld [vmem:[%s8548_s27 + $0x7c4] sm:$0xf] }
 0x146   : > { %2479 = vmatpush.bf16.msra.mxu1 %v5701_v40  ;;  %v5605_v40 = vor.u32 %v7739_v29, %v5602_v30 }
 0x147   : > { %2492 = vmatpush.bf16.msra.mxu2 %v5893_v13  ;;  %v5797_v13 = vor.u32 %v7787_v31, %v5794_v33 }
 0x148   : > { %2505 = vmatpush.bf16.msra.mxu3 %v6085_v44  ;;  %v5989_v44 = vor.u32 %v7835_v34, %v5986_v35 }
 0x149   : > { %2467 = vmatpush.bf16.msra.mxu0 %v5485_v22  ;;  %v2228_v22 = vpop.f32.mrf.mxu1  ;;  %v2241_v53 = vpop.f32.mrf.mxu2 }
 0x14a   : > { %2480 = vmatpush.bf16.msra.mxu1 %v5677_v55  ;;  %v2254_v55 = vpop.f32.mrf.mxu3 }
 0x14b   : > { %2493 = vmatpush.bf16.msra.mxu2 %v5869_v56  ;;  %v5773_v56 = vor.u32 %v7781_v47, %v5770_v49 }
 0x14c   : > { %2506 = vmatpush.bf16.msra.mxu3 %v6061_v57  ;;  %v5965_v57 = vor.u32 %v7829_v50, %v5962_v51 }
 0x14d   : > { %2468 = vmatpush.bf16.msra.mxu0 %v5461_v61 }
 0x14e   : > { %2481 = vmatpush.bf16.msra.mxu1 %v5653_v4 }
 0x14f   : > { %2494 = vmatpush.bf16.msra.mxu2 %v5845_v5 }
 0x150   : > { %2507 = vmatpush.bf16.msra.mxu3 %v6037_v6 }
 0x151   : > { %2469 = vmatpush.bf16.msra.mxu0 %v5437_v12 }
 0x152   : > { %2482 = vmatpush.bf16.msra.mxu1 %v5629_v24 }
 0x153   : > { %2495 = vmatpush.bf16.msra.mxu2 %v5821_v27 }
 0x154   : > { %2508 = vmatpush.bf16.msra.mxu3 %v6013_v28 }
 0x155   : > { %2470 = vmatpush.bf16.msra.mxu0 %v5413_v32 }
 0x156   : > { %2483 = vmatpush.bf16.msra.mxu1 %v5605_v40 }
 0x157   : > { %2496 = vmatpush.bf16.msra.mxu2 %v5797_v13 }
 0x158   : > { %2509 = vmatpush.bf16.msra.mxu3 %v5989_v44 }
 0x159   : > { %2471 = vmatpush.bf16.msra.mxu0 %v5389_v48  ;;  %v2265_v58 = vpop.f32.mrf.mxu0 }
 0x15a   : > { %2484 = vmatpush.bf16.msra.mxu1 %v5581_v54  ;;  %v2278_v59 = vpop.f32.mrf.mxu1  ;;  %v2266_v60 = vadd.f32 %v2265_v58, %v2253_v36 }
 0x15b   : > { %2497 = vmatpush.bf16.msra.mxu2 %v5773_v56 }
 0x15c   : > { %2510 = vmatpush.bf16.msra.mxu3 %v5965_v57  ;;  %2472 = vmatmul.bf16.vlgmr.msra.gmra.mxu0 %v8674_v21  ;;  %v9229_v21 = vadd.f32 %v2278_v59, %v2266_v60  ;;  %v2526_v60 = vmax.f32 (%p9232_p0), %v9053_v20, 0.0 }
 0x15d   : > { %2485 = vmatmul.bf16.vlgmr.msra.gmra.mxu1 %v8680_v26  ;;  %v8235_v26 = vld [vmem:[%s8969_s15] sm:$0x3f] }
 0x15e   : > { %2498 = vmatmul.bf16.vlgmr.msra.gmra.mxu2 %v8736_v42  ;;  %v599_v42 = vperm.slane %v8235_v26, 3  ;;  %v600_v25 = vperm.slane %v8235_v26, 4  ;;  %v601_v45 = vperm.slane %v8235_v26, 5  ;;  %v2527_v26 = vmax.f32 (%p9232_p0), %v9139_v43, 0.0  ;;  %2532 = vst [vmem:[#allocation2 + $0x28] sm:$0xff] (%p9232_p0), %v2526_v60 }
 0x15f   : > { %2511 = vmatmul.bf16.vlgmr.msra.gmra.mxu3 %v8734_v41 }
 0x160   : > { %2533 = vst [vmem:[#allocation2 + $0x10] sm:$0xff] (%p9232_p0), %v2527_v26 }
 0x161   : > { %v2291_v41 = vpop.f32.mrf.mxu2  ;;  %v2267_v63 = vpop.f32.mrf.mxu0 }
 0x162   : > { %v2304_v61 = vpop.f32.mrf.mxu3  ;;  %v2292_v62 = vadd.f32 %v2291_v41, %v599_v42  ;;  %v2280_v0 = vpop.f32.mrf.mxu1  ;;  %v2528_v42 = vmax.f32 (%p9232_p0), %v9229_v21, 0.0 }
 0x164   : > { %v2305_v7 = vadd.f32 %v2304_v61, %v2292_v62  ;;  %2534 = vst [vmem:[#allocation2 + $0x8] sm:$0xff] (%p9232_p0), %v2528_v42 }
 0x169   : > { %v2293_v1 = vpop.f32.mrf.mxu2 }
 0x16a   : > { %v2306_v2 = vpop.f32.mrf.mxu3 }
 0x179   : > { %v2317_v3 = vpop.f32.mrf.mxu0 }
 0x17a   : > { %v2318_v4 = vadd.f32 %v2317_v3, %v2305_v7  ;;  %v2330_v5 = vpop.f32.mrf.mxu1 }
 0x17c   : > { %v2331_v6 = vadd.f32 %v2330_v5, %v2318_v4 }
 0x181   : > { %v2343_v8 = vpop.f32.mrf.mxu2  ;;  %v2319_v12 = vpop.f32.mrf.mxu0 }
 0x182   : > { %v2344_v9 = vadd.f32 %v2343_v8, %v2331_v6  ;;  %v2356_v10 = vpop.f32.mrf.mxu3  ;;  %v2332_v14 = vpop.f32.mrf.mxu1 }
 0x184   : > { %v9237_v11 = vadd.f32 %v2356_v10, %v2344_v9 }
 0x186   : > { %v2529_v41 = vmax.f32 (%p9232_p0), %v9237_v11, 0.0 }
 0x188   : > { %2535 = vst [vmem:[#allocation2] sm:$0xff] (%p9232_p0), %v2529_v41 }
 0x189   : > { %v2345_v15 = vpop.f32.mrf.mxu2 }
 0x18a   : > { %v2358_v17 = vpop.f32.mrf.mxu3 }
 0x199   : > { %v2369_v18 = vpop.f32.mrf.mxu0 }
 0x19a   : > { %v2382_v52 = vpop.f32.mrf.mxu1  ;;  %v2370_v28 = vadd.f32 %v2369_v18, %v600_v25 }
 0x19c   : > { %v2383_v30 = vadd.f32 %v2382_v52, %v2370_v28 }
 0x1a1   : > { %v2395_v19 = vpop.f32.mrf.mxu2  ;;  %v2371_v24 = vpop.f32.mrf.mxu0 }
 0x1a2   : > { %v2408_v23 = vpop.f32.mrf.mxu3  ;;  %v2384_v16 = vpop.f32.mrf.mxu1  ;;  %v2396_v31 = vadd.f32 %v2395_v19, %v2383_v30 }
 0x1a4   : > { %v2409_v32 = vadd.f32 %v2408_v23, %v2396_v31 }
 0x1a9   : > { %v2397_v27 = vpop.f32.mrf.mxu2 }
 0x1aa   : > { %v2410_v29 = vpop.f32.mrf.mxu3 }
 0x1b9   : > { %v2421_v33 = vpop.f32.mrf.mxu0 }
 0x1ba   : > { %v2422_v34 = vadd.f32 %v2421_v33, %v2409_v32  ;;  %v2434_v35 = vpop.f32.mrf.mxu1 }
 0x1bc   : > { %v2435_v36 = vadd.f32 %v2434_v35, %v2422_v34 }
 0x1be   : > { %v2530_v61 = vmax.f32 (%p9232_p0), %v2435_v36, 0.0 }
 0x1c0   : > { %2536 = vst [vmem:[#allocation2 + $0x18] sm:$0xff] (%p9232_p0), %v2530_v61 }
 0x1c1   : > { %v2447_v37 = vpop.f32.mrf.mxu2  ;;  %v2423_v39 = vpop.f32.mrf.mxu0 }
 0x1c2   : > { %v2460_v38 = vpop.f32.mrf.mxu3  ;;  %v2436_v40 = vpop.f32.mrf.mxu1  ;;  %v2448_v46 = vadd.f32 %v2447_v37, %v601_v45 }
 0x1c4   : > { %v2461_v22 = vadd.f32 %v2460_v38, %v2448_v46 }
 0x1c9   : > { %v2449_v13 = vpop.f32.mrf.mxu2 }
 0x1ca   : > { %v2462_v44 = vpop.f32.mrf.mxu3 }
 0x1d9   : > { %v2473_v47 = vpop.f32.mrf.mxu0 }
 0x1da   : > { %v2486_v48 = vpop.f32.mrf.mxu1  ;;  %v2474_v49 = vadd.f32 %v2473_v47, %v2461_v22 }
 0x1dc   : > { %v2487_v50 = vadd.f32 %v2486_v48, %v2474_v49 }
 0x1e1   : > { %v2499_v51 = vpop.f32.mrf.mxu2  ;;  %v2475_v55 = vpop.f32.mrf.mxu0 }
 0x1e2   : > { %v2512_v53 = vpop.f32.mrf.mxu3  ;;  %v2500_v54 = vadd.f32 %v2499_v51, %v2487_v50  ;;  %v2488_v56 = vpop.f32.mrf.mxu1 }
 0x1e4   : > { %v2513_v57 = vadd.f32 %v2512_v53, %v2500_v54 }
 0x1e6   : > { %2525 = sbr.rel (!%p9232_p0) target bundleno = 491 (0x1eb), region = 52  ;;  %v2531_v62 = vmax.f32 (%p9232_p0), %v2513_v57, 0.0 }
 0x1e8   : > { %2537 = vst [vmem:[#allocation2 + $0x20] sm:$0xff] (%p9232_p0), %v2531_v62 }
 0x1e9   : > { %v2501_v58 = vpop.f32.mrf.mxu2 }
 0x1ea   : > { %v2514_v59 = vpop.f32.mrf.mxu3 }
 0x1eb PF: > { %p6134_p3 = scmp.ne.s32.totalorder %s9224_s16, 16 }
 0x1ed   : > { %2540 = sbr.rel (%p6134_p3) target bundleno = 511 (0x1ff), region = 56 }
 0x1f2   : > { %8236 = vtanh.f32 %v9053_v20 }
 0x1f3   : > { %8238 = vtanh.f32 %v9139_v43 }
 0x1f4   : > { %8240 = vtanh.f32 %v9229_v21 }
 0x1f5   : > { %8242 = vtanh.f32 %v9237_v11 }
 0x1f6   : > { %8244 = vtanh.f32 %v2435_v36 }
 0x1f7   : > { %8246 = vtanh.f32 %v2513_v57 }
 0x1f8   : > { %v8237_v63 = vpop.eup %8236 }
 0x1f9   : > { %v8239_v0 = vpop.eup %8238  ;;  %2547 = vst [vmem:[#allocation2 + $0x28] sm:$0xff] %v8237_v63 }
 0x1fa   : > { %v8241_v7 = vpop.eup %8240  ;;  %2548 = vst [vmem:[#allocation2 + $0x10] sm:$0xff] %v8239_v0 }
 0x1fb   : > { %v8243_v1 = vpop.eup %8242  ;;  %2549 = vst [vmem:[#allocation2 + $0x8] sm:$0xff] %v8241_v7 }
 0x1fc   : > { %v8245_v2 = vpop.eup %8244  ;;  %2550 = vst [vmem:[#allocation2] sm:$0xff] %v8243_v1 }
 0x1fd   : > { %v8247_v3 = vpop.eup %8246  ;;  %2551 = vst [vmem:[#allocation2 + $0x18] sm:$0xff] %v8245_v2 }
 0x1fe   : > { %2552 = vst [vmem:[#allocation2 + $0x20] sm:$0xff] %v8247_v3 }
 0x1ff PF: > { %p2553_p7 = por %p2522_p2, %p9232_p0 }
 0x201   : > { %2556 = sbr.rel (%p2553_p7) target bundleno = 524 (0x20c), region = 60 }
 0x206   : > { %2557 = vst [vmem:[#allocation2 + $0x28] sm:$0xff] %v9053_v20 }
 0x207   : > { %2558 = vst [vmem:[#allocation2 + $0x10] sm:$0xff] %v9139_v43 }
 0x208   : > { %2559 = vst [vmem:[#allocation2 + $0x8] sm:$0xff] %v9229_v21 }
 0x209   : > { %2560 = vst [vmem:[#allocation2] sm:$0xff] %v9237_v11 }
 0x20a   : > { %2561 = vst [vmem:[#allocation2 + $0x18] sm:$0xff] %v2435_v36 }
 0x20b   : > { %2562 = vst [vmem:[#allocation2 + $0x20] sm:$0xff] %v2513_v57 }
 0x20c PF: > { %p6135_p8 = scmp.ne.s32.totalorder %s9224_s16, 8 }
 0x20e   : > { %2566 = sbr.rel (%p6135_p8) target bundleno = 547 (0x223), region = 64 }
 0x213   : > { %2567 = vst [vmem:[#allocation8] sm:$0xff] %v9053_v20  ;;  %v2570_v4 = vmul.f32 0.5, %v9139_v43  ;;  %v8432_v5 = vmov 0.0   ;;  %v2569_v21 = vld [vmem:[%s10003_s1] sm:$0xff] }
 0x214   : > { %2576 = vst [vmem:[#allocation2 + $0x10] sm:$0xff] %v8432_v5 }
 0x215   : > { %2577 = vst [vmem:[#allocation2 + $0x8] sm:$0xff] %v8432_v5  ;;  %v2571_v6 = vmul.f32 1.442695, %v2570_v4 }
 0x216   : > { %2578 = vst [vmem:[#allocation2] sm:$0xff] %v8432_v5 }
 0x217   : > { %2579 = vst [vmem:[#allocation2 + $0x18] sm:$0xff] %v8432_v5  ;;  %8248 = vpow2.f32 %v2571_v6 }
 0x218   : > { %2580 = vst [vmem:[#allocation2 + $0x20] sm:$0xff] %v8432_v5 }
 0x219   : > { %2568 = vst [vmem:[#allocation9] sm:$0xff] %v9139_v43 }
 0x21d   : > { %v8249_v8 = vpop.eup %8248 }
 0x21e   : > { %v2573_v9 = vmul.f32 %v8249_v8, %v2569_v21 }
 0x220   : > { %v2574_v10 = vadd.f32 %v2573_v9, %v9053_v20 }
 0x222   : > { %2581 = vst [vmem:[#allocation2 + $0x28] sm:$0xff] %v2574_v10 }
 0x223 PF: > { %v6597_v43 = vld [vmem:[%s8548_s27 + $0xa50] sm:$0xf]  ;;  %v7920_v11 = vld [vmem:[%s8548_s27 + $0xa64] sm:$0xf0]  ;;  %v6573_v16 = vld [vmem:[%s8548_s27 + $0xa20] sm:$0xf] }
 0x224   : > { %v6598_v12 = vor.u32 %v7920_v11, %v6597_v43  ;;  %v6789_v14 = vld [vmem:[%s8548_s27 + $0xbd0] sm:$0xf]  ;;  %v7968_v20 = vld [vmem:[%s8548_s27 + $0xbe4] sm:$0xf0]  ;;  %v7914_v25 = vld [vmem:[%s8548_s27 + $0xa34] sm:$0xf0] }
 0x225   : > { %v6981_v15 = vld [vmem:[%s8548_s27 + $0xd50] sm:$0xf]  ;;  %v6790_v17 = vor.u32 %v7968_v20, %v6789_v14  ;;  %v8016_v18 = vld [vmem:[%s8548_s27 + $0xd64] sm:$0xf0]  ;;  %v6765_v27 = vld [vmem:[%s8548_s27 + $0xba0] sm:$0xf]  ;;  %v6574_v28 = vor.u32 %v7914_v25, %v6573_v16 }
 0x226   : > { %v7173_v52 = vld [vmem:[%s8548_s27 + $0xed0] sm:$0xf]  ;;  %v8064_v19 = vld [vmem:[%s8548_s27 + $0xee4] sm:$0xf0]  ;;  %4340 = vmatpush.bf16.msrb.mxu0 %v6598_v12  ;;  %v6982_v23 = vor.u32 %v8016_v18, %v6981_v15  ;;  %v7962_v29 = vld [vmem:[%s8548_s27 + $0xbb4] sm:$0xf0] }
 0x227   : > { %v7174_v24 = vor.u32 %v8064_v19, %v7173_v52  ;;  %4353 = vmatpush.bf16.msrb.mxu1 %v6790_v17  ;;  %v6957_v30 = vld [vmem:[%s8548_s27 + $0xd20] sm:$0xf]  ;;  %v8010_v31 = vld [vmem:[%s8548_s27 + $0xd34] sm:$0xf0]  ;;  %v6766_v32 = vor.u32 %v7962_v29, %v6765_v27  ;;  %v6549_v36 = vld [vmem:[%s8548_s27 + $0x9f0] sm:$0xf] }
 0x228   : > { %4366 = vmatpush.bf16.msrb.mxu2 %v6982_v23  ;;  %v6958_v33 = vor.u32 %v8010_v31, %v6957_v30  ;;  %v7149_v34 = vld [vmem:[%s8548_s27 + $0xea0] sm:$0xf]  ;;  %v8058_v35 = vld [vmem:[%s8548_s27 + $0xeb4] sm:$0xf0]  ;;  %v7908_v38 = vld [vmem:[%s8548_s27 + $0xa04] sm:$0xf0] }
 0x229   : > { %4379 = vmatpush.bf16.msrb.mxu3 %v7174_v24  ;;  %v7150_v37 = vor.u32 %v8058_v35, %v7149_v34  ;;  %v6741_v39 = vld [vmem:[%s8548_s27 + $0xb70] sm:$0xf]  ;;  %v7956_v40 = vld [vmem:[%s8548_s27 + $0xb84] sm:$0xf0]  ;;  %v6550_v13 = vor.u32 %v7908_v38, %v6549_v36  ;;  %v6525_v48 = vld [vmem:[%s8548_s27 + $0x9c0] sm:$0xf] }
 0x22a   : > { %4341 = vmatpush.bf16.msrb.mxu0 %v6574_v28  ;;  %v6933_v44 = vld [vmem:[%s8548_s27 + $0xcf0] sm:$0xf]  ;;  %v8004_v45 = vld [vmem:[%s8548_s27 + $0xd04] sm:$0xf0]  ;;  %v6742_v47 = vor.u32 %v7956_v40, %v6741_v39  ;;  %v7902_v49 = vld [vmem:[%s8548_s27 + $0x9d4] sm:$0xf0] }
 0x22b   : > { %v7125_v46 = vld [vmem:[%s8548_s27 + $0xe70] sm:$0xf]  ;;  %4354 = vmatpush.bf16.msrb.mxu1 %v6766_v32  ;;  %v8052_v22 = vld [vmem:[%s8548_s27 + $0xe84] sm:$0xf0]  ;;  %v6934_v50 = vor.u32 %v8004_v45, %v6933_v44  ;;  %v6717_v53 = vld [vmem:[%s8548_s27 + $0xb40] sm:$0xf]  ;;  %v6526_v59 = vor.u32 %v7902_v49, %v6525_v48 }
 0x22c   : > { %4367 = vmatpush.bf16.msrb.mxu2 %v6958_v33  ;;  %v7126_v51 = vor.u32 %v8052_v22, %v7125_v46  ;;  %v7950_v54 = vld [vmem:[%s8548_s27 + $0xb54] sm:$0xf0]  ;;  %v6909_v55 = vld [vmem:[%s8548_s27 + $0xcc0] sm:$0xf]  ;;  %v6501_v26 = vld [vmem:[%s8548_s27 + $0x990] sm:$0xf] }
 0x22d   : > { %4380 = vmatpush.bf16.msrb.mxu3 %v7150_v37  ;;  %v7998_v56 = vld [vmem:[%s8548_s27 + $0xcd4] sm:$0xf0]  ;;  %v7101_v57 = vld [vmem:[%s8548_s27 + $0xe40] sm:$0xf]  ;;  %v6718_v60 = vor.u32 %v7950_v54, %v6717_v53  ;;  %v7896_v42 = vld [vmem:[%s8548_s27 + $0x9a4] sm:$0xf0] }
 0x22e   : > { %v8046_v58 = vld [vmem:[%s8548_s27 + $0xe54] sm:$0xf0]  ;;  %4342 = vmatpush.bf16.msrb.mxu0 %v6550_v13  ;;  %v6910_v41 = vor.u32 %v7998_v56, %v6909_v55  ;;  %v6693_v62 = vld [vmem:[%s8548_s27 + $0xb10] sm:$0xf]  ;;  %v7944_v63 = vld [vmem:[%s8548_s27 + $0xb24] sm:$0xf0]  ;;  %v6502_v3 = vor.u32 %v7896_v42, %v6501_v26 }
 0x22f   : > { %4355 = vmatpush.bf16.msrb.mxu1 %v6742_v47  ;;  %v7102_v61 = vor.u32 %v8046_v58, %v7101_v57  ;;  %v6885_v0 = vld [vmem:[%s8548_s27 + $0xc90] sm:$0xf]  ;;  %v7992_v7 = vld [vmem:[%s8548_s27 + $0xca4] sm:$0xf0]  ;;  %v6694_v4 = vor.u32 %v7944_v63, %v6693_v62  ;;  %v6477_v5 = vld [vmem:[%s8548_s27 + $0x960] sm:$0xf] }
 0x230   : > { %4368 = vmatpush.bf16.msrb.mxu2 %v6934_v50  ;;  %v7077_v1 = vld [vmem:[%s8548_s27 + $0xe10] sm:$0xf]  ;;  %v8040_v2 = vld [vmem:[%s8548_s27 + $0xe24] sm:$0xf0]  ;;  %v7890_v6 = vld [vmem:[%s8548_s27 + $0x974] sm:$0xf0]  ;;  %v6886_v21 = vor.u32 %v7992_v7, %v6885_v0 }
 0x231   : > { %4381 = vmatpush.bf16.msrb.mxu3 %v7126_v51  ;;  %v7078_v8 = vor.u32 %v8040_v2, %v7077_v1  ;;  %v6669_v9 = vld [vmem:[%s8548_s27 + $0xae0] sm:$0xf]  ;;  %v7938_v10 = vld [vmem:[%s8548_s27 + $0xaf4] sm:$0xf0]  ;;  %v6478_v20 = vor.u32 %v7890_v6, %v6477_v5  ;;  %v6453_v17 = vld [vmem:[%s8548_s27 + $0x930] sm:$0xf] }
 0x232   : > { %4343 = vmatpush.bf16.msrb.mxu0 %v6526_v59  ;;  %v6861_v43 = vld [vmem:[%s8548_s27 + $0xc60] sm:$0xf]  ;;  %v7986_v11 = vld [vmem:[%s8548_s27 + $0xc74] sm:$0xf0]  ;;  %v6670_v15 = vor.u32 %v7938_v10, %v6669_v9  ;;  %v7884_v18 = vld [vmem:[%s8548_s27 + $0x944] sm:$0xf0] }
 0x233   : > { %4356 = vmatpush.bf16.msrb.mxu1 %v6718_v60  ;;  %v7053_v12 = vld [vmem:[%s8548_s27 + $0xde0] sm:$0xf]  ;;  %v8034_v14 = vld [vmem:[%s8548_s27 + $0xdf4] sm:$0xf0]  ;;  %v6862_v52 = vor.u32 %v7986_v11, %v6861_v43  ;;  %v6645_v23 = vld [vmem:[%s8548_s27 + $0xab0] sm:$0xf]  ;;  %v6454_v29 = vor.u32 %v7884_v18, %v6453_v17 }
 0x234   : > { %4369 = vmatpush.bf16.msrb.mxu2 %v6910_v41  ;;  %v7054_v19 = vor.u32 %v8034_v14, %v7053_v12  ;;  %v7932_v24 = vld [vmem:[%s8548_s27 + $0xac4] sm:$0xf0]  ;;  %v6837_v16 = vld [vmem:[%s8548_s27 + $0xc30] sm:$0xf]  ;;  %v6429_v30 = vld [vmem:[%s8548_s27 + $0x900] sm:$0xf] }
 0x235   : > { %4382 = vmatpush.bf16.msrb.mxu3 %v7102_v61  ;;  %v7980_v25 = vld [vmem:[%s8548_s27 + $0xc44] sm:$0xf0]  ;;  %v7029_v27 = vld [vmem:[%s8548_s27 + $0xdb0] sm:$0xf]  ;;  %v7878_v31 = vld [vmem:[%s8548_s27 + $0x914] sm:$0xf0]  ;;  %v6646_v32 = vor.u32 %v7932_v24, %v6645_v23 }
 0x236   : > { %4344 = vmatpush.bf16.msrb.mxu0 %v6502_v3  ;;  %v8028_v28 = vld [vmem:[%s8548_s27 + $0xdc4] sm:$0xf0]  ;;  %v6621_v33 = vld [vmem:[%s8548_s27 + $0xa80] sm:$0xf]  ;;  %v7926_v34 = vld [vmem:[%s8548_s27 + $0xa94] sm:$0xf0]  ;;  %v6838_v36 = vor.u32 %v7980_v25, %v6837_v16  ;;  %v6430_v46 = vor.u32 %v7878_v31, %v6429_v30 }
 0x237   : > { %4357 = vmatpush.bf16.msrb.mxu1 %v6694_v4  ;;  %v6813_v35 = vld [vmem:[%s8548_s27 + $0xc00] sm:$0xf]  ;;  %v7030_v37 = vor.u32 %v8028_v28, %v7029_v27  ;;  %v7974_v38 = vld [vmem:[%s8548_s27 + $0xc14] sm:$0xf0]  ;;  %v7365_v39 = vld [vmem:[%s8548_s27 + $0x1050] sm:$0xf]  ;;  %v6622_v49 = vor.u32 %v7926_v34, %v6621_v33 }
 0x238   : > { %4370 = vmatpush.bf16.msrb.mxu2 %v6886_v21  ;;  %v8112_v40 = vld [vmem:[%s8548_s27 + $0x1064] sm:$0xf0]  ;;  %v7005_v13 = vld [vmem:[%s8548_s27 + $0xd80] sm:$0xf]  ;;  %v8022_v44 = vld [vmem:[%s8548_s27 + $0xd94] sm:$0xf0]  ;;  %v6814_v54 = vor.u32 %v7974_v38, %v6813_v35 }
 0x239   : > { %4383 = vmatpush.bf16.msrb.mxu3 %v7078_v8  ;;  %v7557_v45 = vld [vmem:[%s8548_s27 + $0x11d0] sm:$0xf]  ;;  %v8160_v47 = vld [vmem:[%s8548_s27 + $0x11e4] sm:$0xf0]  ;;  %v7917_v22 = vld [vmem:[%s8548_s27 + $0xa54] sm:$0xf]  ;;  %v7366_v50 = vor.u32 %v8112_v40, %v7365_v39  ;;  %v7006_v55 = vor.u32 %v8022_v44, %v7005_v13 }
 0x23a   : > { %4345 = vmatpush.bf16.msrb.mxu0 %v6478_v20  ;;  %v6599_v48 = vld [vmem:[%s8548_s27 + $0xa68] sm:$0xf0]  ;;  %v7965_v51 = vld [vmem:[%s8548_s27 + $0xbd4] sm:$0xf]  ;;  %v7341_v56 = vld [vmem:[%s8548_s27 + $0x1020] sm:$0xf]  ;;  %v7558_v58 = vor.u32 %v8160_v47, %v7557_v45 }
 0x23b   : > { %4358 = vmatpush.bf16.msrb.mxu1 %v6670_v15  ;;  %v6791_v53 = vld [vmem:[%s8548_s27 + $0xbe8] sm:$0xf0]  ;;  %v8106_v57 = vld [vmem:[%s8548_s27 + $0x1034] sm:$0xf0]  ;;  %v6602_v59 = vor.u32 %v7917_v22, %v6599_v48  ;;  %v7533_v60 = vld [vmem:[%s8548_s27 + $0x11a0] sm:$0xf] }
 0x23c   : > { %4371 = vmatpush.bf16.msrb.mxu2 %v6862_v52  ;;  %v6794_v26 = vor.u32 %v7965_v51, %v6791_v53  ;;  %v8154_v42 = vld [vmem:[%s8548_s27 + $0x11b4] sm:$0xf0]  ;;  %v7911_v41 = vld [vmem:[%s8548_s27 + $0xa24] sm:$0xf]  ;;  %v6575_v61 = vld [vmem:[%s8548_s27 + $0xa38] sm:$0xf0]  ;;  %v7342_v62 = vor.u32 %v8106_v57, %v7341_v56 }
 0x23d   : > { %4384 = vmatpush.bf16.msrb.mxu3 %v7054_v19  ;;  %v7959_v63 = vld [vmem:[%s8548_s27 + $0xba4] sm:$0xf]  ;;  %v6767_v0 = vld [vmem:[%s8548_s27 + $0xbb8] sm:$0xf0]  ;;  %v7317_v7 = vld [vmem:[%s8548_s27 + $0xff0] sm:$0xf]  ;;  %v7534_v2 = vor.u32 %v8154_v42, %v7533_v60  ;;  %v6578_v3 = vor.u32 %v7911_v41, %v6575_v61 }
 0x23e   : > { %4346 = vmatpush.bf16.msrb.mxu0 %v6454_v29  ;;  %v8100_v1 = vld [vmem:[%s8548_s27 + $0x1004] sm:$0xf0]  ;;  %v7509_v4 = vld [vmem:[%s8548_s27 + $0x1170] sm:$0xf]  ;;  %v6770_v5 = vor.u32 %v7959_v63, %v6767_v0  ;;  %v7905_v21 = vld [vmem:[%s8548_s27 + $0x9f4] sm:$0xf] }
 0x23f   : > { %4359 = vmatpush.bf16.msrb.mxu1 %v6646_v32  ;;  %v8148_v6 = vld [vmem:[%s8548_s27 + $0x1184] sm:$0xf0]  ;;  %v6551_v8 = vld [vmem:[%s8548_s27 + $0xa08] sm:$0xf0]  ;;  %v7318_v9 = vor.u32 %v8100_v1, %v7317_v7  ;;  %v7953_v10 = vld [vmem:[%s8548_s27 + $0xb74] sm:$0xf] }
 0x240   : > { %4372 = vmatpush.bf16.msrb.mxu2 %v6838_v36  ;;  %v6743_v43 = vld [vmem:[%s8548_s27 + $0xb88] sm:$0xf0]  ;;  %v7293_v11 = vld [vmem:[%s8548_s27 + $0xfc0] sm:$0xf]  ;;  %v8094_v12 = vld [vmem:[%s8548_s27 + $0xfd4] sm:$0xf0]  ;;  %v7510_v15 = vor.u32 %v8148_v6, %v7509_v4  ;;  %v6554_v17 = vor.u32 %v7905_v21, %v6551_v8 }
 0x241   : > { %4385 = vmatpush.bf16.msrb.mxu3 %v7030_v37  ;;  %v7485_v14 = vld [vmem:[%s8548_s27 + $0x1140] sm:$0xf]  ;;  %v2583_v20 = vld [vmem:[#allocation2 + $0x28] sm:$0xff]  ;;  %v2586_v19 = vld [vmem:[#allocation2] sm:$0xff]  ;;  %v6746_v24 = vor.u32 %v7953_v10, %v6743_v43  ;;  %v7294_v30 = vor.u32 %v8094_v12, %v7293_v11 }
 0x242   : > { %4347 = vmatpush.bf16.msrb.mxu0 %v6430_v46  ;;  %v9357_v18 = vpack.c.bf16 %v2583_v20, %v2583_v20  ;;  %v2585_v52 = vld [vmem:[#allocation2 + $0x8] sm:$0xff]  ;;  %v2584_v23 = vld [vmem:[#allocation2 + $0x10] sm:$0xff]  ;;  %v9368_v33 = vpack.c.bf16 %v2586_v19, %v2586_v19  ;;  %v7269_v34 = vld [vmem:[%s8548_s27 + $0xf90] sm:$0xf] }
 0x243   : > { %4360 = vmatpush.bf16.msrb.mxu1 %v6622_v49  ;;  %v8142_v16 = vld [vmem:[%s8548_s27 + $0x1154] sm:$0xf0]  ;;  %v7899_v25 = vld [vmem:[%s8548_s27 + $0x9c4] sm:$0xf]  ;;  %v6527_v27 = vld [vmem:[%s8548_s27 + $0x9d8] sm:$0xf0]  ;;  %v9362_v28 = vpack.c.bf16 %v2585_v52, %v2585_v52  ;;  %v9364_v29 = vpack.c.bf16 %v2584_v23, %v2584_v23 }
 0x244   : > { %4373 = vmatpush.bf16.msrb.mxu2 %v6814_v54  ;;  %v7947_v31 = vld [vmem:[%s8548_s27 + $0xb44] sm:$0xf]  ;;  %v6719_v32 = vld [vmem:[%s8548_s27 + $0xb58] sm:$0xf0]  ;;  %v8088_v35 = vld [vmem:[%s8548_s27 + $0xfa4] sm:$0xf0]  ;;  %v7486_v36 = vor.u32 %v8142_v16, %v7485_v14  ;;  %v6530_v37 = vor.u32 %v7899_v25, %v6527_v27 }
 0x245   : > { %4386 = vmatpush.bf16.msrb.mxu3 %v7006_v55  ;;  %4348 = vmatmul.bf16.vlgmr.msrb.gmra.mxu0 %v9357_v18  ;;  %v7461_v38 = vld [vmem:[%s8548_s27 + $0x1110] sm:$0xf]  ;;  %v6722_v39 = vor.u32 %v7947_v31, %v6719_v32  ;;  %v8136_v40 = vld [vmem:[%s8548_s27 + $0x1124] sm:$0xf0]  ;;  %v7893_v13 = vld [vmem:[%s8548_s27 + $0x994] sm:$0xf]  ;;  %v7270_v45 = vor.u32 %v8088_v35, %v7269_v34 }
 0x246   : > { %4392 = vmatpush.bf16.msra.mxu0 %v7366_v50  ;;  %v6503_v44 = vld [vmem:[%s8548_s27 + $0x9a8] sm:$0xf0]  ;;  %4361 = vmatmul.bf16.vlgmr.msrb.gmra.mxu1 %v9364_v29  ;;  %v7941_v46 = vld [vmem:[%s8548_s27 + $0xb14] sm:$0xf]  ;;  %v7245_v22 = vld [vmem:[%s8548_s27 + $0xf60] sm:$0xf]  ;;  %v7462_v49 = vor.u32 %v8136_v40, %v7461_v38 }
 0x247   : > { %4405 = vmatpush.bf16.msra.mxu1 %v7558_v58  ;;  %4374 = vmatmul.bf16.vlgmr.msrb.gmra.mxu2 %v9362_v28  ;;  %v6695_v47 = vld [vmem:[%s8548_s27 + $0xb28] sm:$0xf0]  ;;  %v8082_v48 = vld [vmem:[%s8548_s27 + $0xf74] sm:$0xf0]  ;;  %v6506_v50 = vor.u32 %v7893_v13, %v6503_v44  ;;  %v7437_v51 = vld [vmem:[%s8548_s27 + $0x10e0] sm:$0xf] }
 0x248   : > { %4418 = vmatpush.bf16.msra.mxu2 %v6602_v59  ;;  %4387 = vmatmul.bf16.vlgmr.msrb.gmra.mxu3 %v9368_v33  ;;  %v6698_v53 = vor.u32 %v7941_v46, %v6695_v47  ;;  %v8130_v54 = vld [vmem:[%s8548_s27 + $0x10f4] sm:$0xf0]  ;;  %v7887_v55 = vld [vmem:[%s8548_s27 + $0x964] sm:$0xf]  ;;  %v6479_v56 = vld [vmem:[%s8548_s27 + $0x978] sm:$0xf0]  ;;  %v7246_v57 = vor.u32 %v8082_v48, %v7245_v22 }
 0x249   : > { %4431 = vmatpush.bf16.msra.mxu3 %v6794_v26  ;;  %v7935_v58 = vld [vmem:[%s8548_s27 + $0xae4] sm:$0xf]  ;;  %v6671_v59 = vld [vmem:[%s8548_s27 + $0xaf8] sm:$0xf0]  ;;  %v7221_v60 = vld [vmem:[%s8548_s27 + $0xf30] sm:$0xf]  ;;  %v7438_v42 = vor.u32 %v8130_v54, %v7437_v51  ;;  %v6482_v41 = vor.u32 %v7887_v55, %v6479_v56 }
 0x24a   : > { %4393 = vmatpush.bf16.msra.mxu0 %v7342_v62  ;;  %v8076_v26 = vld [vmem:[%s8548_s27 + $0xf44] sm:$0xf0]  ;;  %v7413_v61 = vld [vmem:[%s8548_s27 + $0x10b0] sm:$0xf]  ;;  %v6674_v62 = vor.u32 %v7935_v58, %v6671_v59  ;;  %v7881_v0 = vld [vmem:[%s8548_s27 + $0x934] sm:$0xf] }
 0x24b   : > { %4406 = vmatpush.bf16.msra.mxu1 %v7534_v2  ;;  %v8124_v63 = vld [vmem:[%s8548_s27 + $0x10c4] sm:$0xf0]  ;;  %v6455_v7 = vld [vmem:[%s8548_s27 + $0x948] sm:$0xf0]  ;;  %v7222_v1 = vor.u32 %v8076_v26, %v7221_v60  ;;  %v7929_v2 = vld [vmem:[%s8548_s27 + $0xab4] sm:$0xf] }
 0x24c   : > { %4419 = vmatpush.bf16.msra.mxu2 %v6578_v3  ;;  %v6647_v3 = vld [vmem:[%s8548_s27 + $0xac8] sm:$0xf0]  ;;  %v7197_v4 = vld [vmem:[%s8548_s27 + $0xf00] sm:$0xf]  ;;  %v8118_v21 = vld [vmem:[%s8548_s27 + $0x1094] sm:$0xf0]  ;;  %v7414_v8 = vor.u32 %v8124_v63, %v7413_v61 }
 0x24d   : > { %4432 = vmatpush.bf16.msra.mxu3 %v6770_v5  ;;  %v8070_v5 = vld [vmem:[%s8548_s27 + $0xf14] sm:$0xf0]  ;;  %v7389_v6 = vld [vmem:[%s8548_s27 + $0x1080] sm:$0xf]  ;;  %v7875_v10 = vld [vmem:[%s8548_s27 + $0x904] sm:$0xf]  ;;  %v6650_v12 = vor.u32 %v7929_v2, %v6647_v3 }
 0x24e   : > { %4394 = vmatpush.bf16.msra.mxu0 %v7318_v9  ;;  %v6458_v9 = vor.u32 %v7881_v0, %v6455_v7  ;;  %v8013_v43 = vld [vmem:[%s8548_s27 + $0xd54] sm:$0xf]  ;;  %v6983_v11 = vld [vmem:[%s8548_s27 + $0xd68] sm:$0xf0]  ;;  %v6431_v14 = vld [vmem:[%s8548_s27 + $0x918] sm:$0xf0] }
 0x24f   : > { %4407 = vmatpush.bf16.msra.mxu1 %v7510_v15  ;;  %v7923_v20 = vld [vmem:[%s8548_s27 + $0xa84] sm:$0xf]  ;;  %v6623_v15 = vld [vmem:[%s8548_s27 + $0xa98] sm:$0xf0]  ;;  %v8061_v52 = vld [vmem:[%s8548_s27 + $0xed4] sm:$0xf]  ;;  %v6434_v31 = vor.u32 %v7875_v10, %v6431_v14 }
 0x250   : > { %4420 = vmatpush.bf16.msra.mxu2 %v6554_v17  ;;  %v7198_v17 = vor.u32 %v8070_v5, %v7197_v4  ;;  %v7175_v19 = vld [vmem:[%s8548_s27 + $0xee8] sm:$0xf0]  ;;  %v8109_v23 = vld [vmem:[%s8548_s27 + $0x1054] sm:$0xf]  ;;  %v8007_v32 = vld [vmem:[%s8548_s27 + $0xd24] sm:$0xf] }
 0x251   : > { %4433 = vmatpush.bf16.msra.mxu3 %v6746_v24  ;;  %v6986_v24 = vor.u32 %v8013_v43, %v6983_v11  ;;  %v7367_v16 = vld [vmem:[%s8548_s27 + $0x1068] sm:$0xf0]  ;;  %v8157_v25 = vld [vmem:[%s8548_s27 + $0x11d4] sm:$0xf]  ;;  %v6959_v34 = vld [vmem:[%s8548_s27 + $0xd38] sm:$0xf0] }
 0x252   : > { %4395 = vmatpush.bf16.msra.mxu0 %v7294_v30  ;;  %v7559_v27 = vld [vmem:[%s8548_s27 + $0x11e8] sm:$0xf0]  ;;  %v7390_v30 = vor.u32 %v8118_v21, %v7389_v6  ;;  %v2588_v35 = vld [vmem:[#allocation2 + $0x20] sm:$0xff]  ;;  %v8055_v13 = vld [vmem:[%s8548_s27 + $0xea4] sm:$0xf]  ;;  %v6962_v46 = vor.u32 %v8007_v32, %v6959_v34 }
 0x253   : > { %4408 = vmatpush.bf16.msra.mxu1 %v7486_v36  ;;  %v6626_v36 = vor.u32 %v7923_v20, %v6623_v15  ;;  %v2587_v38 = vld [vmem:[#allocation2 + $0x18] sm:$0xff]  ;;  %v7562_v40 = vor.u32 %v8157_v25, %v7559_v27  ;;  %v7151_v44 = vld [vmem:[%s8548_s27 + $0xeb8] sm:$0xf0]  ;;  %v8151_v22 = vld [vmem:[%s8548_s27 + $0x11a4] sm:$0xf] }
 0x254   : > { %4421 = vmatpush.bf16.msra.mxu2 %v6530_v37  ;;  %v7178_v37 = vor.u32 %v8061_v52, %v7175_v19  ;;  %v7343_v47 = vld [vmem:[%s8548_s27 + $0x1038] sm:$0xf0]  ;;  %v8001_v51 = vld [vmem:[%s8548_s27 + $0xcf4] sm:$0xf]  ;;  %v7154_v54 = vor.u32 %v8055_v13, %v7151_v44  ;;  %v7127_v58 = vld [vmem:[%s8548_s27 + $0xe88] sm:$0xf0] }
 0x255   : > { %4434 = vmatpush.bf16.msra.mxu3 %v6722_v39  ;;  %v7370_v39 = vor.u32 %v8109_v23, %v7367_v16  ;;  %v7535_v48 = vld [vmem:[%s8548_s27 + $0x11b8] sm:$0xf0]  ;;  %v8097_v59 = vld [vmem:[%s8548_s27 + $0xff4] sm:$0xf]  ;;  %v7319_v26 = vld [vmem:[%s8548_s27 + $0x1008] sm:$0xf0] }
 0x256   : > { %4396 = vmatpush.bf16.msra.mxu0 %v7270_v45  ;;  %v8103_v45 = vld [vmem:[%s8548_s27 + $0x1024] sm:$0xf]  ;;  %v7538_v56 = vor.u32 %v8151_v22, %v7535_v48  ;;  %v7322_v0 = vor.u32 %v8097_v59, %v7319_v26  ;;  %v7103_v2 = vld [vmem:[%s8548_s27 + $0xe58] sm:$0xf0]  ;;  %v7079_v14 = vld [vmem:[%s8548_s27 + $0xe28] sm:$0xf0] }
 0x257   : > { %4409 = vmatpush.bf16.msra.mxu1 %v7462_v49  ;;  %v9422_v49 = vpack.c.bf16 %v2588_v35, %v2588_v35  ;;  %v7346_v55 = vor.u32 %v8103_v45, %v7343_v47  ;;  %v7995_v61 = vld [vmem:[%s8548_s27 + $0xcc4] sm:$0xf]  ;;  %v7295_v5 = vld [vmem:[%s8548_s27 + $0xfd8] sm:$0xf0]  ;;  %v8085_v20 = vld [vmem:[%s8548_s27 + $0xf94] sm:$0xf] }
 0x258   : > { %4422 = vmatpush.bf16.msra.mxu2 %v6506_v50  ;;  %v9424_v50 = vpack.c.bf16 %v2587_v38, %v2587_v38  ;;  %v8091_v3 = vld [vmem:[%s8548_s27 + $0xfc4] sm:$0xf]  ;;  %v7487_v21 = vld [vmem:[%s8548_s27 + $0x1158] sm:$0xf0]  ;;  %v8133_v52 = vld [vmem:[%s8548_s27 + $0x1114] sm:$0xf] }
 0x259   : > { %4435 = vmatpush.bf16.msra.mxu3 %v6698_v53  ;;  %v6935_v53 = vld [vmem:[%s8548_s27 + $0xd08] sm:$0xf0]  ;;  %v8139_v6 = vld [vmem:[%s8548_s27 + $0x1144] sm:$0xf]  ;;  %v7298_v43 = vor.u32 %v8091_v3, %v7295_v5  ;;  %v7247_v35 = vld [vmem:[%s8548_s27 + $0xf78] sm:$0xf0] }
 0x25a   : > { %4397 = vmatpush.bf16.msra.mxu0 %v7246_v57  ;;  %v8049_v57 = vld [vmem:[%s8548_s27 + $0xe74] sm:$0xf]  ;;  %v6938_v60 = vor.u32 %v8001_v51, %v6935_v53  ;;  %v7490_v11 = vor.u32 %v8139_v6, %v7487_v21  ;;  %v7463_v19 = vld [vmem:[%s8548_s27 + $0x1128] sm:$0xf0]  ;;  %v7983_v23 = vld [vmem:[%s8548_s27 + $0xc64] sm:$0xf] }
 0x25b   : > { %4410 = vmatpush.bf16.msra.mxu1 %v7438_v42  ;;  %v8145_v42 = vld [vmem:[%s8548_s27 + $0x1174] sm:$0xf]  ;;  %v7130_v63 = vor.u32 %v8049_v57, %v7127_v58  ;;  %v7466_v27 = vor.u32 %v8133_v52, %v7463_v19  ;;  %v8079_v32 = vld [vmem:[%s8548_s27 + $0xf64] sm:$0xf]  ;;  %v7223_v48 = vld [vmem:[%s8548_s27 + $0xf48] sm:$0xf0] }
 0x25c   : > { %4423 = vmatpush.bf16.msra.mxu2 %v6482_v41  ;;  %v7511_v41 = vld [vmem:[%s8548_s27 + $0x1188] sm:$0xf0]  ;;  %v7977_v38 = vld [vmem:[%s8548_s27 + $0xc34] sm:$0xf]  ;;  %v7250_v13 = vor.u32 %v8079_v32, %v7247_v35  ;;  %v7007_v58 = vld [vmem:[%s8548_s27 + $0xd98] sm:$0xf0] }
 0x25d   : > { %4436 = vmatpush.bf16.msra.mxu3 %v6674_v62  ;;  %v6911_v62 = vld [vmem:[%s8548_s27 + $0xcd8] sm:$0xf0]  ;;  %v7514_v7 = vor.u32 %v8145_v42, %v7511_v41  ;;  %v8025_v45 = vld [vmem:[%s8548_s27 + $0xdb4] sm:$0xf]  ;;  %v7415_v53 = vld [vmem:[%s8548_s27 + $0x10c8] sm:$0xf0] }
 0x25e   : > { %4398 = vmatpush.bf16.msra.mxu0 %v7222_v1  ;;  %v8043_v1 = vld [vmem:[%s8548_s27 + $0xe44] sm:$0xf]  ;;  %v6914_v4 = vor.u32 %v7995_v61, %v6911_v62  ;;  %v8073_v47 = vld [vmem:[%s8548_s27 + $0xf34] sm:$0xf]  ;;  %v6605_v59 = vld [vmem:[%s8548_s27 + $0xa58] sm:$0xf] }
 0x25f   : > { %4411 = vmatpush.bf16.msra.mxu1 %v7414_v8  ;;  %v7989_v8 = vld [vmem:[%s8548_s27 + $0xc94] sm:$0xf]  ;;  %v7106_v10 = vor.u32 %v8043_v1, %v7103_v2  ;;  %v7226_v26 = vor.u32 %v8073_v47, %v7223_v48  ;;  %v8067_v41 = vld [vmem:[%s8548_s27 + $0xf04] sm:$0xf]  ;;  %v7199_v61 = vld [vmem:[%s8548_s27 + $0xf18] sm:$0xf0] }
 0x260   : > { %4424 = vmatpush.bf16.msra.mxu2 %v6458_v9  ;;  %v6887_v9 = vld [vmem:[%s8548_s27 + $0xca8] sm:$0xf0]  ;;  %v8121_v51 = vld [vmem:[%s8548_s27 + $0x10b4] sm:$0xf]  ;;  %v8115_v62 = vld [vmem:[%s8548_s27 + $0x1084] sm:$0xf] }
 0x261   : > { %4437 = vmatpush.bf16.msra.mxu3 %v6650_v12  ;;  %v8037_v12 = vld [vmem:[%s8548_s27 + $0xe14] sm:$0xf]  ;;  %v6890_v15 = vor.u32 %v7989_v8, %v6887_v9  ;;  %v7418_v42 = vor.u32 %v8121_v51, %v7415_v53  ;;  %v7969_v1 = vld [vmem:[%s8548_s27 + $0xbec] sm:$0xf0]  ;;  %v6989_v3 = vld [vmem:[%s8548_s27 + $0xd58] sm:$0xf] }
 0x262   : > { %4399 = vmatpush.bf16.msra.mxu0 %v7198_v17  ;;  %v7271_v17 = vld [vmem:[%s8548_s27 + $0xfa8] sm:$0xf0]  ;;  %v7082_v16 = vor.u32 %v8037_v12, %v7079_v14  ;;  %v7181_v5 = vld [vmem:[%s8548_s27 + $0xed8] sm:$0xf]  ;;  %v8065_v21 = vld [vmem:[%s8548_s27 + $0xeec] sm:$0xf0] }
 0x263   : > { %4412 = vmatpush.bf16.msra.mxu1 %v7390_v30  ;;  %v7274_v25 = vor.u32 %v8085_v20, %v7271_v17  ;;  %v8031_v30 = vld [vmem:[%s8548_s27 + $0xde4] sm:$0xf]  ;;  %v6581_v8 = vld [vmem:[%s8548_s27 + $0xa28] sm:$0xf]  ;;  %v7915_v9 = vld [vmem:[%s8548_s27 + $0xa3c] sm:$0xf0] }
 0x264   : > { %4425 = vmatpush.bf16.msra.mxu2 %v6434_v31  ;;  %v7055_v31 = vld [vmem:[%s8548_s27 + $0xdf8] sm:$0xf0]  ;;  %v6773_v14 = vld [vmem:[%s8548_s27 + $0xba8] sm:$0xf]  ;;  %v7963_v20 = vld [vmem:[%s8548_s27 + $0xbbc] sm:$0xf0]  ;;  %v6582_v17 = vor.u32 %v7915_v9, %v6581_v8 }
 0x265   : > { %4438 = vmatpush.bf16.msra.mxu3 %v6626_v36  ;;  %4400 = vmatmul.bf16.vlgmr.msra.gmra.mxu0 %v9424_v50  ;;  %v8127_v36 = vld [vmem:[%s8548_s27 + $0x10e4] sm:$0xf]  ;;  %v6965_v52 = vld [vmem:[%s8548_s27 + $0xd28] sm:$0xf]  ;;  %v8011_v19 = vld [vmem:[%s8548_s27 + $0xd3c] sm:$0xf0] }
 0x266   : > { %4444 = vmatpush.bf16.msrb.mxu0 %v6986_v24  ;;  %4413 = vmatmul.bf16.vlgmr.msra.gmra.mxu1 %v9422_v49  ;;  %v6863_v24 = vld [vmem:[%s8548_s27 + $0xc78] sm:$0xf0]  ;;  %v7957_v32 = vld [vmem:[%s8548_s27 + $0xb8c] sm:$0xf0]  ;;  %v7951_v47 = vld [vmem:[%s8548_s27 + $0xb5c] sm:$0xf0] }
 0x267   : > { %4457 = vmatpush.bf16.msrb.mxu1 %v7178_v37  ;;  %4426 = vmatmul.bf16.vlgmr.msra.gmra.mxu2 %v9357_v18  ;;  %v6866_v34 = vor.u32 %v7983_v23, %v6863_v24  ;;  %v7439_v37 = vld [vmem:[%s8548_s27 + $0x10f8] sm:$0xf0]  ;;  %v7157_v23 = vld [vmem:[%s8548_s27 + $0xea8] sm:$0xf]  ;;  %v8059_v24 = vld [vmem:[%s8548_s27 + $0xebc] sm:$0xf0] }
 0x268   : > { %4470 = vmatpush.bf16.msrb.mxu2 %v7370_v39  ;;  %4439 = vmatmul.bf16.vlgmr.msra.gmra.mxu3 %v9364_v29  ;;  %v6839_v39 = vld [vmem:[%s8548_s27 + $0xc48] sm:$0xf0]  ;;  %v7442_v44 = vor.u32 %v8127_v36, %v7439_v37  ;;  %v6941_v36 = vld [vmem:[%s8548_s27 + $0xcf8] sm:$0xf]  ;;  %v8005_v37 = vld [vmem:[%s8548_s27 + $0xd0c] sm:$0xf0] }
 0x269   : > { %4483 = vmatpush.bf16.msrb.mxu3 %v7562_v40  ;;  %v7058_v40 = vor.u32 %v8031_v30, %v7055_v31  ;;  %v6842_v22 = vor.u32 %v7977_v38, %v6839_v39  ;;  %v6966_v30 = vor.u32 %v8011_v19, %v6965_v52  ;;  %v6749_v31 = vld [vmem:[%s8548_s27 + $0xb78] sm:$0xf]  ;;  %v8053_v39 = vld [vmem:[%s8548_s27 + $0xe8c] sm:$0xf0]  ;;  %v6917_v51 = vld [vmem:[%s8548_s27 + $0xcc8] sm:$0xf] }
 0x26a   : > { %4445 = vmatpush.bf16.msrb.mxu0 %v6962_v46  ;;  %v7031_v46 = vld [vmem:[%s8548_s27 + $0xdc8] sm:$0xf0]  ;;  %v7133_v38 = vld [vmem:[%s8548_s27 + $0xe78] sm:$0xf]  ;;  %v7999_v53 = vld [vmem:[%s8548_s27 + $0xcdc] sm:$0xf0] }
 0x26b   : > { %4458 = vmatpush.bf16.msrb.mxu1 %v7154_v54  ;;  %v7971_v54 = vld [vmem:[%s8548_s27 + $0xc04] sm:$0xf]  ;;  %v7034_v57 = vor.u32 %v8025_v45, %v7031_v46  ;;  %v6942_v45 = vor.u32 %v8005_v37, %v6941_v36  ;;  %v6725_v46 = vld [vmem:[%s8548_s27 + $0xb48] sm:$0xf]  ;;  %v7987_v9 = vld [vmem:[%s8548_s27 + $0xc7c] sm:$0xf0] }
 0x26c   : > { %4471 = vmatpush.bf16.msrb.mxu2 %v7346_v55  ;;  %v6815_v55 = vld [vmem:[%s8548_s27 + $0xc18] sm:$0xf0]  ;;  %v6869_v8 = vld [vmem:[%s8548_s27 + $0xc68] sm:$0xf]  ;;  %v7927_v37 = vld [vmem:[%s8548_s27 + $0xa9c] sm:$0xf0] }
 0x26d   : > { %4484 = vmatpush.bf16.msrb.mxu3 %v7538_v56  ;;  %v8019_v56 = vld [vmem:[%s8548_s27 + $0xd84] sm:$0xf]  ;;  %v6629_v36 = vld [vmem:[%s8548_s27 + $0xa88] sm:$0xf] }
 0x26e   : > { %4446 = vmatpush.bf16.msrb.mxu0 %v6938_v60  ;;  %v7921_v60 = vld [vmem:[%s8548_s27 + $0xa6c] sm:$0xf0]  ;;  %v7010_v6 = vor.u32 %v8019_v56, %v7007_v58  ;;  %v6509_v56 = vld [vmem:[%s8548_s27 + $0x998] sm:$0xf]  ;;  %v6726_v58 = vor.u32 %v7951_v47, %v6725_v46 }
 0x26f   : > { %4459 = vmatpush.bf16.msrb.mxu1 %v7130_v63  ;;  %v6818_v63 = vor.u32 %v7971_v54, %v6815_v55  ;;  %v6606_v2 = vor.u32 %v7921_v60, %v6605_v59  ;;  %v7109_v54 = vld [vmem:[%s8548_s27 + $0xe48] sm:$0xf]  ;;  %v8047_v55 = vld [vmem:[%s8548_s27 + $0xe5c] sm:$0xf0]  ;;  %v6918_v59 = vor.u32 %v7999_v53, %v6917_v51  ;;  %v6701_v60 = vld [vmem:[%s8548_s27 + $0xb18] sm:$0xf] }
 0x270   : > { %4472 = vmatpush.bf16.msrb.mxu2 %v7322_v0  ;;  %v7391_v0 = vld [vmem:[%s8548_s27 + $0x1098] sm:$0xf0]  ;;  %v7565_v47 = vld [vmem:[%s8548_s27 + $0x11d8] sm:$0xf]  ;;  %v6607_v51 = vld [vmem:[%s8548_s27 + $0xa70] sm:$0xf0] }
 0x271   : > { %4485 = vmatpush.bf16.msrb.mxu3 %v7514_v7  ;;  %v6797_v7 = vld [vmem:[%s8548_s27 + $0xbd8] sm:$0xf]  ;;  %v7966_v53 = vld [vmem:[%s8548_s27 + $0xbdc] sm:$0xf] }
 0x272   : > { %4447 = vmatpush.bf16.msrb.mxu0 %v6914_v4  ;;  %v8017_v4 = vld [vmem:[%s8548_s27 + $0xd6c] sm:$0xf0] }
 0x273   : > { %4460 = vmatpush.bf16.msrb.mxu1 %v7106_v10  ;;  %v7202_v10 = vor.u32 %v8067_v41, %v7199_v61  ;;  %v6990_v12 = vor.u32 %v8017_v4, %v6989_v3  ;;  %v6893_v61 = vld [vmem:[%s8548_s27 + $0xc98] sm:$0xf]  ;;  %v6677_v4 = vld [vmem:[%s8548_s27 + $0xae8] sm:$0xf] }
 0x274   : > { %4473 = vmatpush.bf16.msrb.mxu2 %v7298_v43  ;;  %v7394_v43 = vor.u32 %v8115_v62, %v7391_v0  ;;  %v7993_v62 = vld [vmem:[%s8548_s27 + $0xcac] sm:$0xf0] }
 0x275   : > { %4486 = vmatpush.bf16.msrb.mxu3 %v7490_v11  ;;  %v6798_v11 = vor.u32 %v7969_v1, %v6797_v7  ;;  %v8041_v0 = vld [vmem:[%s8548_s27 + $0xe2c] sm:$0xf0]  ;;  %v6485_v7 = vld [vmem:[%s8548_s27 + $0x968] sm:$0xf]  ;;  %v7891_v1 = vld [vmem:[%s8548_s27 + $0x97c] sm:$0xf0]  ;;  %v6894_v3 = vor.u32 %v7993_v62, %v6893_v61 }
 0x276   : > { %4448 = vmatpush.bf16.msrb.mxu0 %v6890_v15  ;;  %v7182_v15 = vor.u32 %v8065_v21, %v7181_v5  ;;  %v7939_v5 = vld [vmem:[%s8548_s27 + $0xafc] sm:$0xf0]  ;;  %v6486_v21 = vor.u32 %v7891_v1, %v6485_v7  ;;  %v7912_v62 = vld [vmem:[%s8548_s27 + $0xa2c] sm:$0xf]  ;;  %v6775_v1 = vld [vmem:[%s8548_s27 + $0xbc0] sm:$0xf0] }
 0x277   : > { %4461 = vmatpush.bf16.msrb.mxu1 %v7082_v16  ;;  %v6557_v16 = vld [vmem:[%s8548_s27 + $0x9f8] sm:$0xf]  ;;  %v8155_v61 = vld [vmem:[%s8548_s27 + $0x11bc] sm:$0xf0]  ;;  %v7960_v7 = vld [vmem:[%s8548_s27 + $0xbac] sm:$0xf] }
 0x278   : > { %4474 = vmatpush.bf16.msrb.mxu2 %v7274_v25  ;;  %v7909_v25 = vld [vmem:[%s8548_s27 + $0xa0c] sm:$0xf0] }
 0x279   : > { %4487 = vmatpush.bf16.msrb.mxu3 %v7466_v27  ;;  %v6774_v27 = vor.u32 %v7963_v20, %v6773_v14  ;;  %v6558_v35 = vor.u32 %v7909_v25, %v6557_v16  ;;  %v6678_v14 = vor.u32 %v7939_v5, %v6677_v4  ;;  %v6870_v20 = vor.u32 %v7987_v9, %v6869_v8  ;;  %v7037_v16 = vld [vmem:[%s8548_s27 + $0xdb8] sm:$0xf]  ;;  %v8029_v25 = vld [vmem:[%s8548_s27 + $0xdcc] sm:$0xf0]  ;;  %v7906_v9 = vld [vmem:[%s8548_s27 + $0x9fc] sm:$0xf] }
 0x27a   : > { %4449 = vmatpush.bf16.msrb.mxu0 %v6866_v34  ;;  %v7158_v34 = vor.u32 %v8059_v24, %v7157_v23  ;;  %v6845_v23 = vld [vmem:[%s8548_s27 + $0xc38] sm:$0xf]  ;;  %v7981_v24 = vld [vmem:[%s8548_s27 + $0xc4c] sm:$0xf0] }
 0x27b   : > { %4462 = vmatpush.bf16.msrb.mxu1 %v7058_v40  ;;  %v6533_v40 = vld [vmem:[%s8548_s27 + $0x9c8] sm:$0xf]  ;;  %v8149_v8 = vld [vmem:[%s8548_s27 + $0x118c] sm:$0xf0] }
 0x27c   : > { %4475 = vmatpush.bf16.msrb.mxu2 %v7250_v13  ;;  %v7903_v13 = vld [vmem:[%s8548_s27 + $0x9dc] sm:$0xf0] }
 0x27d   : > { %4488 = vmatpush.bf16.msrb.mxu3 %v7442_v44  ;;  %v6750_v44 = vor.u32 %v7957_v32, %v6749_v31  ;;  %v6534_v48 = vor.u32 %v7903_v13, %v6533_v40  ;;  %v7373_v31 = vld [vmem:[%s8548_s27 + $0x1058] sm:$0xf]  ;;  %v8113_v32 = vld [vmem:[%s8548_s27 + $0x106c] sm:$0xf0]  ;;  %v7975_v13 = vld [vmem:[%s8548_s27 + $0xc1c] sm:$0xf0] }
 0x27e   : > { %4450 = vmatpush.bf16.msrb.mxu0 %v6842_v22  ;;  %v7134_v22 = vor.u32 %v8053_v39, %v7133_v38  ;;  %v6821_v38 = vld [vmem:[%s8548_s27 + $0xc08] sm:$0xf]  ;;  %v7038_v39 = vor.u32 %v8029_v25, %v7037_v16  ;;  %v7374_v46 = vor.u32 %v8113_v32, %v7373_v31  ;;  %v6535_v25 = vld [vmem:[%s8548_s27 + $0x9e0] sm:$0xf0]  ;;  %v7277_v31 = vld [vmem:[%s8548_s27 + $0xf98] sm:$0xf] }
 0x27f   : > { %4463 = vmatpush.bf16.msrb.mxu1 %v7034_v57  ;;  %v7897_v57 = vld [vmem:[%s8548_s27 + $0x9ac] sm:$0xf0] }
 0x280   : > { %4476 = vmatpush.bf16.msrb.mxu2 %v7226_v26  ;;  %v7945_v26 = vld [vmem:[%s8548_s27 + $0xb2c] sm:$0xf0]  ;;  %v6510_v41 = vor.u32 %v7897_v57, %v6509_v56  ;;  %v6822_v56 = vor.u32 %v7975_v13, %v6821_v38  ;;  %v7349_v57 = vld [vmem:[%s8548_s27 + $0x1028] sm:$0xf]  ;;  %v6511_v13 = vld [vmem:[%s8548_s27 + $0x9b0] sm:$0xf0] }
 0x281   : > { %4489 = vmatpush.bf16.msrb.mxu3 %v7418_v42  ;;  %v7110_v42 = vor.u32 %v8047_v55, %v7109_v54  ;;  %v6799_v54 = vld [vmem:[%s8548_s27 + $0xbf0] sm:$0xf0]  ;;  %v6630_v55 = vor.u32 %v7927_v37, %v6629_v36  ;;  %v8089_v32 = vld [vmem:[%s8548_s27 + $0xfac] sm:$0xf0]  ;;  %v7469_v37 = vld [vmem:[%s8548_s27 + $0x1118] sm:$0xf] }
 0x282   : > { %4451 = vmatpush.bf16.msrb.mxu0 %v6818_v63  ;;  %v7085_v63 = vld [vmem:[%s8548_s27 + $0xe18] sm:$0xf]  ;;  %v8137_v38 = vld [vmem:[%s8548_s27 + $0x112c] sm:$0xf0] }
 0x283   : > { %4464 = vmatpush.bf16.msrb.mxu1 %v7010_v6  ;;  %v7086_v6 = vor.u32 %v8041_v0, %v7085_v63  ;;  %v6583_v0 = vld [vmem:[%s8548_s27 + $0xa40] sm:$0xf0] }
 0x284   : > { %4477 = vmatpush.bf16.msrb.mxu2 %v7202_v10  ;;  %v7061_v10 = vld [vmem:[%s8548_s27 + $0xde8] sm:$0xf]  ;;  %v6586_v5 = vor.u32 %v7912_v62, %v6583_v0  ;;  %v7421_v62 = vld [vmem:[%s8548_s27 + $0x10b8] sm:$0xf]  ;;  %v7882_v0 = vld [vmem:[%s8548_s27 + $0x93c] sm:$0xf] }
 0x285   : > { %4490 = vmatpush.bf16.msrb.mxu3 %v7394_v43  ;;  %4452 = vmatmul.bf16.vlgmr.msrb.gmra.mxu0 %v9362_v28  ;;  %v8035_v43 = vld [vmem:[%s8548_s27 + $0xdfc] sm:$0xf0] }
 0x286   : > { %4496 = vmatpush.bf16.msra.mxu0 %v6606_v2  ;;  %4465 = vmatmul.bf16.vlgmr.msrb.gmra.mxu1 %v9368_v33  ;;  %v6702_v2 = vor.u32 %v7945_v26, %v6701_v60  ;;  %v7062_v52 = vor.u32 %v8035_v43, %v7061_v10  ;;  %v6559_v43 = vld [vmem:[%s8548_s27 + $0xa10] sm:$0xf0] }
 0x287   : > { %4509 = vmatpush.bf16.msra.mxu1 %v6798_v11  ;;  %4478 = vmatmul.bf16.vlgmr.msrb.gmra.mxu2 %v9424_v50  ;;  %v6461_v11 = vld [vmem:[%s8548_s27 + $0x938] sm:$0xf] }
 0x288   : > { %4522 = vmatpush.bf16.msra.mxu2 %v6990_v12  ;;  %4491 = vmatmul.bf16.vlgmr.msrb.gmra.mxu3 %v9422_v49  ;;  %v7885_v12 = vld [vmem:[%s8548_s27 + $0x94c] sm:$0xf0] }
 0x289   : > { %4535 = vmatpush.bf16.msra.mxu3 %v7182_v15  ;;  %v6653_v15 = vld [vmem:[%s8548_s27 + $0xab8] sm:$0xf]  ;;  %v6462_v19 = vor.u32 %v7885_v12, %v6461_v11  ;;  %v7954_v11 = vld [vmem:[%s8548_s27 + $0xb7c] sm:$0xf]  ;;  %v6751_v12 = vld [vmem:[%s8548_s27 + $0xb90] sm:$0xf0] }
 0x28a   : > { %4497 = vmatpush.bf16.msra.mxu0 %v6582_v17  ;;  %v7933_v17 = vld [vmem:[%s8548_s27 + $0xacc] sm:$0xf0] }
 0x28b   : > { %4510 = vmatpush.bf16.msra.mxu1 %v6774_v27  ;;  %v6437_v27 = vld [vmem:[%s8548_s27 + $0x908] sm:$0xf] }
 0x28c   : > { %4523 = vmatpush.bf16.msra.mxu2 %v6966_v30  ;;  %v7879_v30 = vld [vmem:[%s8548_s27 + $0x91c] sm:$0xf0] }
 0x28d   : > { %4536 = vmatpush.bf16.msra.mxu3 %v7158_v34  ;;  %v6654_v34 = vor.u32 %v7933_v17, %v6653_v15  ;;  %v6438_v40 = vor.u32 %v7879_v30, %v6437_v27  ;;  %v6562_v17 = vor.u32 %v7906_v9, %v6559_v43  ;;  %v7948_v27 = vld [vmem:[%s8548_s27 + $0xb4c] sm:$0xf]  ;;  %v6727_v30 = vld [vmem:[%s8548_s27 + $0xb60] sm:$0xf0]  ;;  %v8014_v9 = vld [vmem:[%s8548_s27 + $0xd5c] sm:$0xf] }
 0x28e   : > { %4498 = vmatpush.bf16.msra.mxu0 %v6558_v35  ;;  %v6846_v35 = vor.u32 %v7981_v24, %v6845_v23  ;;  %v8143_v23 = vld [vmem:[%s8548_s27 + $0x115c] sm:$0xf0]  ;;  %v7900_v24 = vld [vmem:[%s8548_s27 + $0x9cc] sm:$0xf]  ;;  %v6730_v36 = vor.u32 %v7948_v27, %v6727_v30  ;;  %v7567_v30 = vld [vmem:[%s8548_s27 + $0x11f0] sm:$0xf0] }
 0x28f   : > { %4511 = vmatpush.bf16.msra.mxu1 %v6750_v44  ;;  %v7013_v44 = vld [vmem:[%s8548_s27 + $0xd88] sm:$0xf] }
 0x290   : > { %4524 = vmatpush.bf16.msra.mxu2 %v6942_v45  ;;  %v8023_v45 = vld [vmem:[%s8548_s27 + $0xd9c] sm:$0xf0] }
 0x291   : > { %4537 = vmatpush.bf16.msra.mxu3 %v7134_v22  ;;  %v8161_v22 = vld [vmem:[%s8548_s27 + $0x11ec] sm:$0xf0] }
 0x292   : > { %4499 = vmatpush.bf16.msra.mxu0 %v6534_v48  ;;  %v7918_v48 = vld [vmem:[%s8548_s27 + $0xa5c] sm:$0xf]  ;;  %v7566_v60 = vor.u32 %v8161_v22, %v7565_v47  ;;  %v8083_v47 = vld [vmem:[%s8548_s27 + $0xf7c] sm:$0xf0]  ;;  %v7470_v22 = vor.u32 %v8137_v38, %v7469_v37  ;;  %v8056_v38 = vld [vmem:[%s8548_s27 + $0xeac] sm:$0xf] }
 0x293   : > { %4512 = vmatpush.bf16.msra.mxu1 %v6726_v58  ;;  %v8107_v58 = vld [vmem:[%s8548_s27 + $0x103c] sm:$0xf0]  ;;  %v6610_v26 = vor.u32 %v7918_v48, %v6607_v51 }
 0x294   : > { %4525 = vmatpush.bf16.msra.mxu2 %v6918_v59  ;;  %v7014_v59 = vor.u32 %v8023_v45, %v7013_v44  ;;  %v7350_v63 = vor.u32 %v8107_v58, %v7349_v57  ;;  %v7942_v44 = vld [vmem:[%s8548_s27 + $0xb1c] sm:$0xf]  ;;  %v6703_v45 = vld [vmem:[%s8548_s27 + $0xb30] sm:$0xf0]  ;;  %v6487_v57 = vld [vmem:[%s8548_s27 + $0x980] sm:$0xf0] }
 0x295   : > { %4538 = vmatpush.bf16.msra.mxu3 %v7110_v42  ;;  %v6802_v42 = vor.u32 %v7966_v53, %v6799_v54  ;;  %v6706_v51 = vor.u32 %v7942_v44, %v6703_v45  ;;  %v7445_v53 = vld [vmem:[%s8548_s27 + $0x10e8] sm:$0xf]  ;;  %v8131_v54 = vld [vmem:[%s8548_s27 + $0x10fc] sm:$0xf0]  ;;  %v7936_v58 = vld [vmem:[%s8548_s27 + $0xaec] sm:$0xf] }
 0x296   : > { %4500 = vmatpush.bf16.msra.mxu0 %v6510_v41  ;;  %v7541_v41 = vld [vmem:[%s8548_s27 + $0x11a8] sm:$0xf]  ;;  %v8104_v44 = vld [vmem:[%s8548_s27 + $0x102c] sm:$0xf]  ;;  %v7351_v45 = vld [vmem:[%s8548_s27 + $0x1040] sm:$0xf0] }
 0x297   : > { %4513 = vmatpush.bf16.msra.mxu1 %v6702_v2  ;;  %v7325_v2 = vld [vmem:[%s8548_s27 + $0xff8] sm:$0xf]  ;;  %v7542_v4 = vor.u32 %v8155_v61, %v7541_v41 }
 0x298   : > { %4526 = vmatpush.bf16.msra.mxu2 %v6894_v3  ;;  %v8101_v3 = vld [vmem:[%s8548_s27 + $0x100c] sm:$0xf0] }
 0x299   : > { %4539 = vmatpush.bf16.msra.mxu3 %v7086_v6  ;;  %v6778_v6 = vor.u32 %v7960_v7, %v6775_v1  ;;  %v7326_v10 = vor.u32 %v8101_v3, %v7325_v2  ;;  %v6463_v1 = vld [vmem:[%s8548_s27 + $0x950] sm:$0xf0]  ;;  %v7930_v2 = vld [vmem:[%s8548_s27 + $0xabc] sm:$0xf] }
 0x29a   : > { %4501 = vmatpush.bf16.msra.mxu0 %v6486_v21  ;;  %v7517_v21 = vld [vmem:[%s8548_s27 + $0x1178] sm:$0xf]  ;;  %v6655_v3 = vld [vmem:[%s8548_s27 + $0xad0] sm:$0xf0]  ;;  %v6466_v43 = vor.u32 %v7882_v0, %v6463_v1  ;;  %v7111_v0 = vld [vmem:[%s8548_s27 + $0xe60] sm:$0xf0] }
 0x29b   : > { %4514 = vmatpush.bf16.msra.mxu1 %v6678_v14  ;;  %v7301_v14 = vld [vmem:[%s8548_s27 + $0xfc8] sm:$0xf]  ;;  %v7518_v15 = vor.u32 %v8149_v8, %v7517_v21  ;;  %v8119_v8 = vld [vmem:[%s8548_s27 + $0x109c] sm:$0xf0] }
 0x29c   : > { %4527 = vmatpush.bf16.msra.mxu2 %v6870_v20  ;;  %v8095_v20 = vld [vmem:[%s8548_s27 + $0xfdc] sm:$0xf0] }
 0x29d   : > { %4540 = vmatpush.bf16.msra.mxu3 %v7062_v52  ;;  %v6754_v52 = vor.u32 %v7954_v11, %v6751_v12  ;;  %v7302_v16 = vor.u32 %v8095_v20, %v7301_v14  ;;  %v6658_v11 = vor.u32 %v7930_v2, %v6655_v3  ;;  %v7876_v12 = vld [vmem:[%s8548_s27 + $0x90c] sm:$0xf]  ;;  %v6439_v14 = vld [vmem:[%s8548_s27 + $0x920] sm:$0xf0] }
 0x29e   : > { %4502 = vmatpush.bf16.msra.mxu0 %v6462_v19  ;;  %v7493_v19 = vld [vmem:[%s8548_s27 + $0x1148] sm:$0xf]  ;;  %v7924_v20 = vld [vmem:[%s8548_s27 + $0xa8c] sm:$0xf]  ;;  %v7303_v3 = vld [vmem:[%s8548_s27 + $0xfe0] sm:$0xf0] }
 0x29f   : > { %4515 = vmatpush.bf16.msra.mxu1 %v6654_v34  ;;  %v7494_v34 = vor.u32 %v8143_v23, %v7493_v19  ;;  %v7183_v19 = vld [vmem:[%s8548_s27 + $0xef0] sm:$0xf0]  ;;  %v8092_v2 = vld [vmem:[%s8548_s27 + $0xfcc] sm:$0xf] }
 0x2a0   : > { %4528 = vmatpush.bf16.msra.mxu2 %v6846_v35  ;;  %v6538_v35 = vor.u32 %v7900_v24, %v6535_v25  ;;  %v8110_v24 = vld [vmem:[%s8548_s27 + $0x105c] sm:$0xf] }
 0x2a1   : > { %4541 = vmatpush.bf16.msra.mxu3 %v7038_v39  ;;  %v7894_v39 = vld [vmem:[%s8548_s27 + $0x99c] sm:$0xf] }
 0x2a2   : > { %4503 = vmatpush.bf16.msra.mxu0 %v6438_v40  ;;  %v7278_v40 = vor.u32 %v8089_v32, %v7277_v31  ;;  %v6514_v48 = vor.u32 %v7894_v39, %v6511_v13  ;;  %v8158_v25 = vld [vmem:[%s8548_s27 + $0x11dc] sm:$0xf]  ;;  %v8008_v31 = vld [vmem:[%s8548_s27 + $0xd2c] sm:$0xf]  ;;  %v6967_v32 = vld [vmem:[%s8548_s27 + $0xd40] sm:$0xf0] }
 0x2a3   : > { %4516 = vmatpush.bf16.msra.mxu1 %v6630_v55  ;;  %v7888_v55 = vld [vmem:[%s8548_s27 + $0x96c] sm:$0xf]  ;;  %v7159_v39 = vld [vmem:[%s8548_s27 + $0xec0] sm:$0xf0]  ;;  %v6970_v13 = vor.u32 %v8008_v31, %v6967_v32 }
 0x2a4   : > { %4529 = vmatpush.bf16.msra.mxu2 %v6822_v56  ;;  %v6490_v41 = vor.u32 %v7888_v55, %v6487_v57  ;;  %v7135_v55 = vld [vmem:[%s8548_s27 + $0xe90] sm:$0xf0] }
 0x2a5   : > { %4542 = vmatpush.bf16.msra.mxu3 %v7014_v59  ;;  %4504 = vmatmul.bf16.vlgmr.msra.gmra.mxu0 %v9357_v18  ;;  %v6679_v59 = vld [vmem:[%s8548_s27 + $0xb00] sm:$0xf0] }
 0x2a6   : > { %4548 = vmatpush.bf16.msrb.mxu0 %v7374_v46  ;;  %4517 = vmatmul.bf16.vlgmr.msra.gmra.mxu1 %v9364_v29  ;;  %v7253_v46 = vld [vmem:[%s8548_s27 + $0xf68] sm:$0xf]  ;;  %v6682_v61 = vor.u32 %v7936_v58, %v6679_v59  ;;  %v8098_v58 = vld [vmem:[%s8548_s27 + $0xffc] sm:$0xf]  ;;  %v7327_v59 = vld [vmem:[%s8548_s27 + $0x1010] sm:$0xf0] }
 0x2a7   : > { %4561 = vmatpush.bf16.msrb.mxu1 %v7566_v60  ;;  %4530 = vmatmul.bf16.vlgmr.msra.gmra.mxu2 %v9362_v28  ;;  %v7254_v56 = vor.u32 %v8083_v47, %v7253_v46  ;;  %v7229_v60 = vld [vmem:[%s8548_s27 + $0xf38] sm:$0xf]  ;;  %v8152_v46 = vld [vmem:[%s8548_s27 + $0x11ac] sm:$0xf]  ;;  %v7543_v47 = vld [vmem:[%s8548_s27 + $0x11c0] sm:$0xf0] }
 0x2a8   : > { %4574 = vmatpush.bf16.msrb.mxu2 %v6610_v26  ;;  %4543 = vmatmul.bf16.vlgmr.msra.gmra.mxu3 %v9368_v33  ;;  %v8077_v26 = vld [vmem:[%s8548_s27 + $0xf4c] sm:$0xf0] }
 0x2a9   : > { %4587 = vmatpush.bf16.msrb.mxu3 %v6802_v42  ;;  %v7446_v42 = vor.u32 %v8131_v54, %v7445_v53  ;;  %v7230_v7 = vor.u32 %v8077_v26, %v7229_v60  ;;  %v7354_v53 = vor.u32 %v8104_v44, %v7351_v45  ;;  %v8050_v54 = vld [vmem:[%s8548_s27 + $0xe7c] sm:$0xf]  ;;  %v7519_v26 = vld [vmem:[%s8548_s27 + $0x1190] sm:$0xf0] }
 0x2aa   : > { %4549 = vmatpush.bf16.msrb.mxu0 %v7350_v63  ;;  %v8125_v63 = vld [vmem:[%s8548_s27 + $0x10cc] sm:$0xf0]  ;;  %v8146_v60 = vld [vmem:[%s8548_s27 + $0x117c] sm:$0xf] }
 0x2ab   : > { %4562 = vmatpush.bf16.msrb.mxu1 %v7542_v4  ;;  %v7205_v4 = vld [vmem:[%s8548_s27 + $0xf08] sm:$0xf]  ;;  %v7422_v21 = vor.u32 %v8125_v63, %v7421_v62  ;;  %v7330_v62 = vor.u32 %v8098_v58, %v7327_v59  ;;  %v8044_v63 = vld [vmem:[%s8548_s27 + $0xe4c] sm:$0xf]  ;;  %v6823_v59 = vld [vmem:[%s8548_s27 + $0xc20] sm:$0xf0] }
 0x2ac   : > { %4575 = vmatpush.bf16.msrb.mxu2 %v6586_v5  ;;  %v8071_v5 = vld [vmem:[%s8548_s27 + $0xf1c] sm:$0xf0]  ;;  %v7972_v58 = vld [vmem:[%s8548_s27 + $0xc0c] sm:$0xf] }
 0x2ad   : > { %4588 = vmatpush.bf16.msrb.mxu3 %v6778_v6  ;;  %v7397_v6 = vld [vmem:[%s8548_s27 + $0x1088] sm:$0xf] }
 0x2ae   : > { %4550 = vmatpush.bf16.msrb.mxu0 %v7326_v10  ;;  %v6991_v10 = vld [vmem:[%s8548_s27 + $0xd70] sm:$0xf0]  ;;  %v7398_v27 = vor.u32 %v8119_v8, %v7397_v6  ;;  %v7990_v6 = vld [vmem:[%s8548_s27 + $0xc9c] sm:$0xf]  ;;  %v7114_v8 = vor.u32 %v8044_v63, %v7111_v0  ;;  %v8068_v63 = vld [vmem:[%s8548_s27 + $0xf0c] sm:$0xf] }
 0x2af   : > { %4563 = vmatpush.bf16.msrb.mxu1 %v7518_v15  ;;  %v7206_v15 = vor.u32 %v8071_v5, %v7205_v4  ;;  %v6994_v23 = vor.u32 %v8014_v9, %v6991_v10  ;;  %v8140_v4 = vld [vmem:[%s8548_s27 + $0x114c] sm:$0xf]  ;;  %v7495_v5 = vld [vmem:[%s8548_s27 + $0x1160] sm:$0xf0]  ;;  %v7306_v9 = vor.u32 %v8092_v2, %v7303_v3  ;;  %v8038_v10 = vld [vmem:[%s8548_s27 + $0xe1c] sm:$0xf] }
 0x2b0   : > { %4576 = vmatpush.bf16.msrb.mxu2 %v6562_v17  ;;  %v6631_v17 = vld [vmem:[%s8548_s27 + $0xaa0] sm:$0xf0]  ;;  %v8116_v3 = vld [vmem:[%s8548_s27 + $0x108c] sm:$0xf] }
 0x2b1   : > { %4589 = vmatpush.bf16.msrb.mxu3 %v6754_v52  ;;  %v8062_v52 = vld [vmem:[%s8548_s27 + $0xedc] sm:$0xf]  ;;  %v7207_v2 = vld [vmem:[%s8548_s27 + $0xf20] sm:$0xf0] }
 0x2b2   : > { %4551 = vmatpush.bf16.msrb.mxu0 %v7302_v16  ;;  %v7375_v16 = vld [vmem:[%s8548_s27 + $0x1070] sm:$0xf0] }
 0x2b3   : > { %4564 = vmatpush.bf16.msrb.mxu1 %v7494_v34  ;;  %v6442_v34 = vor.u32 %v7876_v12, %v6439_v14  ;;  %v7378_v37 = vor.u32 %v8110_v24, %v7375_v16  ;;  %v7498_v12 = vor.u32 %v8140_v4, %v7495_v5  ;;  %v7399_v4 = vld [vmem:[%s8548_s27 + $0x10a0] sm:$0xf0] }
 0x2b4   : > { %4577 = vmatpush.bf16.msrb.mxu2 %v6538_v35  ;;  %v6634_v35 = vor.u32 %v7924_v20, %v6631_v17  ;;  %v8086_v20 = vld [vmem:[%s8548_s27 + $0xf9c] sm:$0xf] }
 0x2b5   : > { %4590 = vmatpush.bf16.msrb.mxu3 %v6730_v36  ;;  %v7186_v36 = vor.u32 %v8062_v52, %v7183_v19  ;;  %v8134_v17 = vld [vmem:[%s8548_s27 + $0x111c] sm:$0xf]  ;;  %v7471_v52 = vld [vmem:[%s8548_s27 + $0x1130] sm:$0xf0]  ;;  %v7984_v19 = vld [vmem:[%s8548_s27 + $0xc6c] sm:$0xf] }
 0x2b6   : > { %4552 = vmatpush.bf16.msrb.mxu0 %v7278_v40  ;;  %v7570_v40 = vor.u32 %v8158_v25, %v7567_v30  ;;  %v7063_v30 = vld [vmem:[%s8548_s27 + $0xe00] sm:$0xf0]  ;;  %v7474_v31 = vor.u32 %v8134_v17, %v7471_v52  ;;  %v7210_v17 = vor.u32 %v8068_v63, %v7207_v2  ;;  %v6589_v52 = vld [vmem:[%s8548_s27 + $0xa30] sm:$0xf]  ;;  %v8000_v63 = vld [vmem:[%s8548_s27 + $0xce4] sm:$0xf0] }
 0x2b7   : > { %4565 = vmatpush.bf16.msrb.mxu1 %v7470_v22  ;;  %v8002_v22 = vld [vmem:[%s8548_s27 + $0xcfc] sm:$0xf]  ;;  %v7898_v2 = vld [vmem:[%s8548_s27 + $0x9b4] sm:$0xf0] }
 0x2b8   : > { %4578 = vmatpush.bf16.msrb.mxu2 %v6514_v48  ;;  %v6943_v48 = vld [vmem:[%s8548_s27 + $0xd10] sm:$0xf0] }
 0x2b9   : > { %4591 = vmatpush.bf16.msrb.mxu3 %v6706_v51  ;;  %v7162_v51 = vor.u32 %v8056_v38, %v7159_v39  ;;  %v6946_v57 = vor.u32 %v8002_v22, %v6943_v48  ;;  %v7978_v38 = vld [vmem:[%s8548_s27 + $0xc3c] sm:$0xf]  ;;  %v6847_v39 = vld [vmem:[%s8548_s27 + $0xc50] sm:$0xf0] }
 0x2ba   : > { %4553 = vmatpush.bf16.msrb.mxu0 %v7254_v56  ;;  %v7546_v56 = vor.u32 %v8152_v46, %v7543_v47  ;;  %v8026_v46 = vld [vmem:[%s8548_s27 + $0xdbc] sm:$0xf]  ;;  %v7039_v47 = vld [vmem:[%s8548_s27 + $0xdd0] sm:$0xf0] }
 0x2bb   : > { %4566 = vmatpush.bf16.msrb.mxu1 %v7446_v42  ;;  %v7996_v42 = vld [vmem:[%s8548_s27 + $0xccc] sm:$0xf] }
 0x2bc   : > { %4579 = vmatpush.bf16.msrb.mxu2 %v6490_v41  ;;  %v6919_v41 = vld [vmem:[%s8548_s27 + $0xce0] sm:$0xf0] }
 0x2bd   : > { %4592 = vmatpush.bf16.msrb.mxu3 %v6682_v61  ;;  %v7138_v61 = vor.u32 %v8050_v54, %v7135_v55  ;;  %v6922_v1 = vor.u32 %v7996_v42, %v6919_v41  ;;  %v7231_v54 = vld [vmem:[%s8548_s27 + $0xf50] sm:$0xf0]  ;;  %v8122_v55 = vld [vmem:[%s8548_s27 + $0x10bc] sm:$0xf]  ;;  %v7042_v42 = vor.u32 %v8026_v46, %v7039_v47  ;;  %v6757_v47 = vld [vmem:[%s8548_s27 + $0xb80] sm:$0xf] }
 0x2be   : > { %4554 = vmatpush.bf16.msrb.mxu0 %v7230_v7  ;;  %v7522_v7 = vor.u32 %v8146_v60, %v7519_v26  ;;  %v6613_v60 = vld [vmem:[%s8548_s27 + $0xa60] sm:$0xf]  ;;  %v7922_v26 = vld [vmem:[%s8548_s27 + $0xa74] sm:$0xf0] }
 0x2bf   : > { %4567 = vmatpush.bf16.msrb.mxu1 %v7422_v21  ;;  %v6895_v21 = vld [vmem:[%s8548_s27 + $0xcb0] sm:$0xf0] }
 0x2c0   : > { %4580 = vmatpush.bf16.msrb.mxu2 %v6466_v43  ;;  %v7087_v43 = vld [vmem:[%s8548_s27 + $0xe30] sm:$0xf0]  ;;  %v6898_v14 = vor.u32 %v7990_v6, %v6895_v21  ;;  %v6614_v6 = vor.u32 %v7922_v26, %v6613_v60  ;;  %v6805_v21 = vld [vmem:[%s8548_s27 + $0xbe0] sm:$0xf] }
 0x2c1   : > { %4593 = vmatpush.bf16.msrb.mxu3 %v6658_v11  ;;  %v9655_v11 = vld [vmem:[%s8969_s15 + $0x6] sm:$0x3f]  ;;  %v7090_v16 = vor.u32 %v8038_v10, %v7087_v43 }
 0x2c2   : > { %4555 = vmatpush.bf16.msrb.mxu0 %v7206_v15  ;;  %v7279_v15 = vld [vmem:[%s8548_s27 + $0xfb0] sm:$0xf0]  ;;  %v2888_v24 = vperm.slane %v9655_v11, 0  ;;  %v8018_v43 = vld [vmem:[%s8548_s27 + $0xd74] sm:$0xf0] }
 0x2c3   : > { %4568 = vmatpush.bf16.msrb.mxu1 %v7398_v27  ;;  %v7282_v25 = vor.u32 %v8086_v20, %v7279_v15  ;;  %v8032_v27 = vld [vmem:[%s8548_s27 + $0xdec] sm:$0xf]  ;;  %v4362_v22 = vpop.f32.mrf.mxu1 }
 0x2c4   : > { %4581 = vmatpush.bf16.msrb.mxu2 %v6442_v34  ;;  %v8080_v34 = vld [vmem:[%s8548_s27 + $0xf6c] sm:$0xf]  ;;  %v7066_v44 = vor.u32 %v8032_v27, %v7063_v30 }
 0x2c5   : > { %4594 = vmatpush.bf16.msrb.mxu3 %v6634_v35  ;;  %4556 = vmatmul.bf16.vlgmr.msrb.gmra.mxu0 %v9424_v50  ;;  %v7255_v35 = vld [vmem:[%s8548_s27 + $0xf80] sm:$0xf0] }
 0x2c6   : > { %4600 = vmatpush.bf16.msra.mxu0 %v6994_v23  ;;  %4569 = vmatmul.bf16.vlgmr.msrb.gmra.mxu1 %v9422_v49  ;;  %v6871_v23 = vld [vmem:[%s8548_s27 + $0xc80] sm:$0xf0]  ;;  %v7258_v45 = vor.u32 %v8080_v34, %v7255_v35  ;;  %v6973_v34 = vld [vmem:[%s8548_s27 + $0xd30] sm:$0xf] }
 0x2c7   : > { %4613 = vmatpush.bf16.msra.mxu1 %v7186_v36  ;;  %4582 = vmatmul.bf16.vlgmr.msrb.gmra.mxu2 %v9357_v18  ;;  %v6874_v32 = vor.u32 %v7984_v19, %v6871_v23  ;;  %v8128_v36 = vld [vmem:[%s8548_s27 + $0x10ec] sm:$0xf]  ;;  %v7916_v19 = vld [vmem:[%s8548_s27 + $0xa44] sm:$0xf0] }
 0x2c8   : > { %4626 = vmatpush.bf16.msra.mxu2 %v7378_v37  ;;  %4595 = vmatmul.bf16.vlgmr.msrb.gmra.mxu3 %v9364_v29  ;;  %v7447_v37 = vld [vmem:[%s8548_s27 + $0x1100] sm:$0xf0]  ;;  %v6590_v35 = vor.u32 %v7916_v19, %v6589_v52  ;;  %v7892_v52 = vld [vmem:[%s8548_s27 + $0x984] sm:$0xf0] }
 0x2c9   : > { %4639 = vmatpush.bf16.msra.mxu3 %v7570_v40  ;;  %v4349_v40 = vpop.f32.mrf.mxu0  ;;  %v7450_v48 = vor.u32 %v8128_v36, %v7447_v37  ;;  %v8012_v36 = vld [vmem:[%s8548_s27 + $0xd44] sm:$0xf0]  ;;  %v7165_v37 = vld [vmem:[%s8548_s27 + $0xeb0] sm:$0xf] }
 0x2ca   : > { %4601 = vmatpush.bf16.msra.mxu0 %v6970_v13  ;;  %v4350_v13 = vadd.f32 %v4349_v40, %v2888_v24  ;;  %v4375_v0 = vpop.f32.mrf.mxu2  ;;  %v7910_v40 = vld [vmem:[%s8548_s27 + $0xa14] sm:$0xf0] }
 0x2cb   : > { %4614 = vmatpush.bf16.msra.mxu1 %v7162_v51  ;;  %v6850_v51 = vor.u32 %v7978_v38, %v6847_v39  ;;  %v4388_v20 = vpop.f32.mrf.mxu3  ;;  %v4364_v24 = vpop.f32.mrf.mxu1  ;;  %v8060_v38 = vld [vmem:[%s8548_s27 + $0xec4] sm:$0xf0]  ;;  %v6565_v39 = vld [vmem:[%s8548_s27 + $0xa00] sm:$0xf] }
 0x2cc   : > { %4627 = vmatpush.bf16.msra.mxu2 %v7354_v53  ;;  %v8074_v53 = vld [vmem:[%s8548_s27 + $0xf3c] sm:$0xf]  ;;  %v7166_v46 = vor.u32 %v8060_v38, %v7165_v37  ;;  %v6685_v24 = vld [vmem:[%s8548_s27 + $0xaf0] sm:$0xf]  ;;  %v6469_v37 = vld [vmem:[%s8548_s27 + $0x940] sm:$0xf] }
 0x2cd   : > { %4640 = vmatpush.bf16.msra.mxu3 %v7546_v56  ;;  %v4363_v56 = vadd.f32 %v4362_v22, %v4350_v13  ;;  %v7234_v41 = vor.u32 %v8074_v53, %v7231_v54  ;;  %v7958_v22 = vld [vmem:[%s8548_s27 + $0xb94] sm:$0xf0]  ;;  %v7141_v54 = vld [vmem:[%s8548_s27 + $0xe80] sm:$0xf] }
 0x2ce   : > { %4602 = vmatpush.bf16.msra.mxu0 %v6946_v57  ;;  %v7423_v57 = vld [vmem:[%s8548_s27 + $0x10d0] sm:$0xf0]  ;;  %v8006_v53 = vld [vmem:[%s8548_s27 + $0xd14] sm:$0xf0] }
 0x2cf   : > { %4615 = vmatpush.bf16.msra.mxu1 %v7138_v61  ;;  %v8020_v61 = vld [vmem:[%s8548_s27 + $0xd8c] sm:$0xf]  ;;  %v4376_v5 = vadd.f32 %v4375_v0, %v4363_v56  ;;  %v7117_v0 = vld [vmem:[%s8548_s27 + $0xe50] sm:$0xf]  ;;  %v7886_v38 = vld [vmem:[%s8548_s27 + $0x954] sm:$0xf0] }
 0x2d0   : > { %4628 = vmatpush.bf16.msra.mxu2 %v7330_v62  ;;  %v7015_v62 = vld [vmem:[%s8548_s27 + $0xda0] sm:$0xf0] }
 0x2d1   : > { %4641 = vmatpush.bf16.msra.mxu3 %v7522_v7  ;;  %v7426_v7 = vor.u32 %v8122_v55, %v7423_v57  ;;  %v4351_v10 = vpop.f32.mrf.mxu0  ;;  %v7018_v15 = vor.u32 %v8020_v61, %v7015_v62  ;;  %v9696_v23 = vadd.f32 %v4388_v20, %v4376_v5  ;;  %v8054_v55 = vld [vmem:[%s8548_s27 + $0xe94] sm:$0xf0]  ;;  %v6541_v57 = vld [vmem:[%s8548_s27 + $0x9d0] sm:$0xf] }
 0x2d2   : > { %4603 = vmatpush.bf16.msra.mxu0 %v6922_v1  ;;  %v6826_v1 = vor.u32 %v7972_v58, %v6823_v59  ;;  %v4377_v13 = vpop.f32.mrf.mxu2  ;;  %v7904_v58 = vld [vmem:[%s8548_s27 + $0x9e4] sm:$0xf0]  ;;  %v6758_v59 = vor.u32 %v7958_v22, %v6757_v47  ;;  %v7142_v26 = vor.u32 %v8054_v55, %v7141_v54  ;;  %v6925_v61 = vld [vmem:[%s8548_s27 + $0xcd0] sm:$0xf]  ;;  %v6853_v47 = vld [vmem:[%s8548_s27 + $0xc40] sm:$0xf] }
 0x2d3   : > { %4616 = vmatpush.bf16.msra.mxu1 %v7114_v8  ;;  %v7970_v8 = vld [vmem:[%s8548_s27 + $0xbf4] sm:$0xf0]  ;;  %v4390_v56 = vpop.f32.mrf.mxu3  ;;  %v6542_v62 = vor.u32 %v7904_v58, %v6541_v57  ;;  %v7045_v55 = vld [vmem:[%s8548_s27 + $0xdc0] sm:$0xf]  ;;  %v6445_v58 = vld [vmem:[%s8548_s27 + $0x910] sm:$0xf] }
 0x2d4   : > { %4629 = vmatpush.bf16.msra.mxu2 %v7306_v9  ;;  %v6997_v9 = vld [vmem:[%s8548_s27 + $0xd60] sm:$0xf]  ;;  %v7982_v54 = vld [vmem:[%s8548_s27 + $0xc54] sm:$0xf0] }
 0x2d5   : > { %4642 = vmatpush.bf16.msra.mxu3 %v7498_v12  ;;  %v7189_v12 = vld [vmem:[%s8548_s27 + $0xee0] sm:$0xf]  ;;  %v6998_v27 = vor.u32 %v8018_v43, %v6997_v9  ;;  %v7994_v43 = vld [vmem:[%s8548_s27 + $0xcb4] sm:$0xf0] }
 0x2d6   : > { %4604 = vmatpush.bf16.msra.mxu0 %v6898_v14  ;;  %v8066_v14 = vld [vmem:[%s8548_s27 + $0xef4] sm:$0xf0] }
 0x2d7   : > { %4617 = vmatpush.bf16.msra.mxu1 %v7090_v16  ;;  %v7402_v16 = vor.u32 %v8116_v3, %v7399_v4  ;;  %v7190_v30 = vor.u32 %v8066_v14, %v7189_v12  ;;  %v6926_v4 = vor.u32 %v8000_v63, %v6925_v61  ;;  %v7093_v12 = vld [vmem:[%s8548_s27 + $0xe20] sm:$0xf]  ;;  %v8042_v14 = vld [vmem:[%s8548_s27 + $0xe34] sm:$0xf0]  ;;  %v6854_v63 = vor.u32 %v7982_v54, %v6853_v47  ;;  %v7907_v47 = vld [vmem:[%s8548_s27 + $0xa04] sm:$0xf] }
 0x2d8   : > { %4630 = vmatpush.bf16.msra.mxu2 %v7282_v25  ;;  %v6806_v25 = vor.u32 %v7970_v8, %v6805_v21  ;;  %v7946_v21 = vld [vmem:[%s8548_s27 + $0xb34] sm:$0xf0]  ;;  %v6901_v8 = vld [vmem:[%s8548_s27 + $0xca0] sm:$0xf]  ;;  %v8096_v54 = vld [vmem:[%s8548_s27 + $0xfe4] sm:$0xf0] }
 0x2d9   : > { %4643 = vmatpush.bf16.msra.mxu3 %v7474_v31  ;;  %v6781_v31 = vld [vmem:[%s8548_s27 + $0xbb0] sm:$0xf]  ;;  %v8030_v56 = vld [vmem:[%s8548_s27 + $0xdd4] sm:$0xf0]  ;;  %v7381_v61 = vld [vmem:[%s8548_s27 + $0x1060] sm:$0xf] }
 0x2da   : > { %4605 = vmatpush.bf16.msra.mxu0 %v6874_v32  ;;  %v7964_v32 = vld [vmem:[%s8548_s27 + $0xbc4] sm:$0xf0] }
 0x2db   : > { %4618 = vmatpush.bf16.msra.mxu1 %v7066_v44  ;;  %v6782_v44 = vor.u32 %v7964_v32, %v6781_v31  ;;  %v6877_v31 = vld [vmem:[%s8548_s27 + $0xc70] sm:$0xf] }
 0x2dc   : > { %4631 = vmatpush.bf16.msra.mxu2 %v7258_v45  ;;  %v6974_v45 = vor.u32 %v8012_v36, %v6973_v34  ;;  %v7988_v34 = vld [vmem:[%s8548_s27 + $0xc84] sm:$0xf0] }
 0x2dd   : > { %4644 = vmatpush.bf16.msra.mxu3 %v7450_v48  ;;  %v6949_v48 = vld [vmem:[%s8548_s27 + $0xd00] sm:$0xf]  ;;  %v8036_v36 = vld [vmem:[%s8548_s27 + $0xe04] sm:$0xf0]  ;;  %v6878_v13 = vor.u32 %v7988_v34, %v6877_v31  ;;  %v6591_v34 = vld [vmem:[%s8548_s27 + $0xa48] sm:$0xf0] }
 0x2de   : > { %4606 = vmatpush.bf16.msra.mxu0 %v6850_v51  ;;  %v6566_v51 = vor.u32 %v7910_v40, %v6565_v39  ;;  %v6950_v60 = vor.u32 %v8006_v53, %v6949_v48  ;;  %v6470_v53 = vor.u32 %v7886_v38, %v6469_v37  ;;  %v7333_v37 = vld [vmem:[%s8548_s27 + $0x1000] sm:$0xf]  ;;  %v8102_v38 = vld [vmem:[%s8548_s27 + $0x1014] sm:$0xf0] }
 0x2df   : > { %4619 = vmatpush.bf16.msra.mxu1 %v7042_v42  ;;  %v6733_v42 = vld [vmem:[%s8548_s27 + $0xb50] sm:$0xf] }
 0x2e0   : > { %4632 = vmatpush.bf16.msra.mxu2 %v7234_v41  ;;  %v7952_v41 = vld [vmem:[%s8548_s27 + $0xb64] sm:$0xf0] }
 0x2e1   : > { %4645 = vmatpush.bf16.msra.mxu3 %v7426_v7  ;;  %v8048_v7 = vld [vmem:[%s8548_s27 + $0xe64] sm:$0xf0]  ;;  %v6734_v3 = vor.u32 %v7952_v41, %v6733_v42 }
 0x2e2   : > { %4607 = vmatpush.bf16.msra.mxu0 %v6826_v1  ;;  %v6517_v1 = vld [vmem:[%s8548_s27 + $0x9a0] sm:$0xf]  ;;  %v7118_v5 = vor.u32 %v8048_v7, %v7117_v0  ;;  %v4401_v20 = vpop.f32.mrf.mxu0  ;;  %v7928_v41 = vld [vmem:[%s8548_s27 + $0xaa4] sm:$0xf0]  ;;  %v7046_v0 = vor.u32 %v8030_v56, %v7045_v55  ;;  %v6829_v7 = vld [vmem:[%s8548_s27 + $0xc10] sm:$0xf] }
 0x2e3   : > { %4620 = vmatpush.bf16.msra.mxu1 %v7018_v15  ;;  %v4414_v9 = vpop.f32.mrf.mxu1  ;;  %v6518_v10 = vor.u32 %v7898_v2, %v6517_v1  ;;  %v4402_v15 = vadd.f32 %v4401_v20, %v9696_v23  ;;  %v2889_v23 = vperm.slane %v9655_v11, 1  ;;  %v7976_v1 = vld [vmem:[%s8548_s27 + $0xc24] sm:$0xf0]  ;;  %v7021_v2 = vld [vmem:[%s8548_s27 + $0xd90] sm:$0xf] }
 0x2e4   : > { %4633 = vmatpush.bf16.msra.mxu2 %v7210_v17  ;;  %v6493_v17 = vld [vmem:[%s8548_s27 + $0x970] sm:$0xf]  ;;  %v8108_v20 = vld [vmem:[%s8548_s27 + $0x1044] sm:$0xf0] }
 0x2e5   : > { %4646 = vmatpush.bf16.msra.mxu3 %v7402_v16  ;;  %4608 = vmatmul.bf16.vlgmr.msra.gmra.mxu0 %v9362_v28  ;;  %v6902_v16 = vor.u32 %v7994_v43, %v6901_v8  ;;  %v6494_v32 = vor.u32 %v7892_v52, %v6493_v17  ;;  %v7919_v8 = vld [vmem:[%s8548_s27 + $0xa64] sm:$0xf]  ;;  %v6830_v17 = vor.u32 %v7976_v1, %v6829_v7 }
 0x2e6   : > { %4652 = vmatpush.bf16.msrb.mxu0 %v6614_v6  ;;  %4621 = vmatmul.bf16.vlgmr.msra.gmra.mxu1 %v9368_v33  ;;  %v6709_v6 = vld [vmem:[%s8548_s27 + $0xb20] sm:$0xf] }
 0x2e7   : > { %4665 = vmatpush.bf16.msrb.mxu1 %v6806_v25  ;;  %4634 = vmatmul.bf16.vlgmr.msra.gmra.mxu2 %v9424_v50  ;;  %v6710_v19 = vor.u32 %v7946_v21, %v6709_v6  ;;  %v7094_v25 = vor.u32 %v8042_v14, %v7093_v12  ;;  %v8162_v6 = vld [vmem:[%s8548_s27 + $0x11f4] sm:$0xf0]  ;;  %v6807_v12 = vld [vmem:[%s8548_s27 + $0xbf8] sm:$0xf0]  ;;  %v7357_v14 = vld [vmem:[%s8548_s27 + $0x1030] sm:$0xf] }
 0x2e8   : > { %4678 = vmatpush.bf16.msrb.mxu2 %v6998_v27  ;;  %4647 = vmatmul.bf16.vlgmr.msra.gmra.mxu3 %v9422_v49  ;;  %v9736_v27 = vadd.f32 %v4414_v9, %v4402_v15  ;;  %v6615_v9 = vld [vmem:[%s8548_s27 + $0xa78] sm:$0xf0] }
 0x2e9   : > { %4691 = vmatpush.bf16.msrb.mxu3 %v7190_v30  ;;  %v7940_v30 = vld [vmem:[%s8548_s27 + $0xb04] sm:$0xf0] }
 0x2ea   : > { %4653 = vmatpush.bf16.msrb.mxu0 %v6590_v35  ;;  %v7069_v35 = vld [vmem:[%s8548_s27 + $0xdf0] sm:$0xf]  ;;  %v6686_v39 = vor.u32 %v7940_v30, %v6685_v24  ;;  %v4427_v40 = vpop.f32.mrf.mxu2  ;;  %v4403_v57 = vpop.f32.mrf.mxu0  ;;  %v8156_v30 = vld [vmem:[%s8548_s27 + $0x11c4] sm:$0xf0] }
 0x2eb   : > { %4666 = vmatpush.bf16.msrb.mxu1 %v6782_v44  ;;  %v7070_v44 = vor.u32 %v8036_v36, %v7069_v35  ;;  %v4428_v22 = vadd.f32 %v4427_v40, %v2889_v23  ;;  %v4440_v48 = vpop.f32.mrf.mxu3  ;;  %v7358_v23 = vor.u32 %v8108_v20, %v7357_v14  ;;  %v7961_v35 = vld [vmem:[%s8548_s27 + $0xbb4] sm:$0xf]  ;;  %v6783_v36 = vld [vmem:[%s8548_s27 + $0xbc8] sm:$0xf0]  ;;  %v7501_v57 = vld [vmem:[%s8548_s27 + $0x1150] sm:$0xf] }
 0x2ec   : > { %4679 = vmatpush.bf16.msrb.mxu2 %v6974_v45  ;;  %v6661_v45 = vld [vmem:[%s8548_s27 + $0xac0] sm:$0xf]  ;;  %v7261_v14 = vld [vmem:[%s8548_s27 + $0xf70] sm:$0xf]  ;;  %v8084_v20 = vld [vmem:[%s8548_s27 + $0xf84] sm:$0xf0] }
 0x2ed   : > { %4692 = vmatpush.bf16.msrb.mxu3 %v7166_v46  ;;  %v7934_v46 = vld [vmem:[%s8548_s27 + $0xad4] sm:$0xf0] }
 0x2ee   : > { %4654 = vmatpush.bf16.msrb.mxu0 %v6566_v51  ;;  %v4416_v51 = vpop.f32.mrf.mxu1  ;;  %v6662_v42 = vor.u32 %v7934_v46, %v6661_v45  ;;  %v6786_v45 = vor.u32 %v7961_v35, %v6783_v36  ;;  %v7334_v46 = vor.u32 %v8102_v38, %v7333_v37 }
 0x2ef   : > { %4667 = vmatpush.bf16.msrb.mxu1 %v6758_v59  ;;  %v7880_v59 = vld [vmem:[%s8548_s27 + $0x924] sm:$0xf0]  ;;  %v6759_v51 = vld [vmem:[%s8548_s27 + $0xb98] sm:$0xf0] }
 0x2f0   : > { %4680 = vmatpush.bf16.msrb.mxu2 %v6950_v60  ;;  %v6637_v60 = vld [vmem:[%s8548_s27 + $0xa90] sm:$0xf] }
 0x2f1   : > { %4693 = vmatpush.bf16.msrb.mxu3 %v7142_v26  ;;  %v9755_v26 = vadd.f32 %v4440_v48, %v4428_v22  ;;  %v6638_v43 = vor.u32 %v7928_v41, %v6637_v60  ;;  %v6567_v22 = vld [vmem:[%s8548_s27 + $0xa18] sm:$0xf0]  ;;  %v7955_v48 = vld [vmem:[%s8548_s27 + $0xb84] sm:$0xf]  ;;  %v6543_v41 = vld [vmem:[%s8548_s27 + $0x9e8] sm:$0xf0] }
 0x2f2   : > { %4655 = vmatpush.bf16.msrb.mxu0 %v6542_v62  ;;  %v8114_v62 = vld [vmem:[%s8548_s27 + $0x1074] sm:$0xf0]  ;;  %v4429_v15 = vpop.f32.mrf.mxu2  ;;  %v6570_v56 = vor.u32 %v7907_v47, %v6567_v22  ;;  %v6471_v47 = vld [vmem:[%s8548_s27 + $0x958] sm:$0xf0]  ;;  %v7931_v22 = vld [vmem:[%s8548_s27 + $0xac4] sm:$0xf] }
 0x2f3   : > { %4668 = vmatpush.bf16.msrb.mxu1 %v6734_v3  ;;  %v6446_v3 = vor.u32 %v7880_v59, %v6445_v58  ;;  %v7382_v21 = vor.u32 %v8114_v62, %v7381_v61  ;;  %v8144_v58 = vld [vmem:[%s8548_s27 + $0x1164] sm:$0xf0]  ;;  %v6762_v59 = vor.u32 %v7955_v48, %v6759_v51  ;;  %v7949_v61 = vld [vmem:[%s8548_s27 + $0xb54] sm:$0xf]  ;;  %v6735_v62 = vld [vmem:[%s8548_s27 + $0xb68] sm:$0xf0] }
 0x2f4   : > { %4681 = vmatpush.bf16.msrb.mxu2 %v6926_v4  ;;  %v8024_v4 = vld [vmem:[%s8548_s27 + $0xda4] sm:$0xf0]  ;;  %v7502_v7 = vor.u32 %v8144_v58, %v7501_v57  ;;  %v8015_v57 = vld [vmem:[%s8548_s27 + $0xd64] sm:$0xf]  ;;  %v6999_v58 = vld [vmem:[%s8548_s27 + $0xd78] sm:$0xf0] }
 0x2f5   : > { %4694 = vmatpush.bf16.msrb.mxu3 %v7118_v5  ;;  %v7573_v5 = vld [vmem:[%s8548_s27 + $0x11e0] sm:$0xf]  ;;  %v7022_v52 = vor.u32 %v8024_v4, %v7021_v2  ;;  %v6738_v4 = vor.u32 %v7949_v61, %v6735_v62  ;;  %v7877_v61 = vld [vmem:[%s8548_s27 + $0x914] sm:$0xf] }
 0x2f6   : > { %4656 = vmatpush.bf16.msrb.mxu0 %v6518_v10  ;;  %v7967_v10 = vld [vmem:[%s8548_s27 + $0xbe4] sm:$0xf]  ;;  %v7574_v24 = vor.u32 %v8162_v6, %v7573_v5  ;;  %v7477_v2 = vld [vmem:[%s8548_s27 + $0x1120] sm:$0xf] }
 0x2f7   : > { %4669 = vmatpush.bf16.msrb.mxu1 %v6710_v19  ;;  %v4442_v19 = vpop.f32.mrf.mxu3  ;;  %v6810_v31 = vor.u32 %v7967_v10, %v6807_v12  ;;  %v7895_v6 = vld [vmem:[%s8548_s27 + $0x9a4] sm:$0xf]  ;;  %v6711_v10 = vld [vmem:[%s8548_s27 + $0xb38] sm:$0xf0] }
 0x2f8   : > { %4682 = vmatpush.bf16.msrb.mxu2 %v6902_v16  ;;  %v6618_v16 = vor.u32 %v7919_v8, %v6615_v9  ;;  %v7943_v8 = vld [vmem:[%s8548_s27 + $0xb24] sm:$0xf]  ;;  %v7453_v19 = vld [vmem:[%s8548_s27 + $0x10f0] sm:$0xf] }
 0x2f9   : > { %4695 = vmatpush.bf16.msrb.mxu3 %v7094_v25  ;;  %v7549_v25 = vld [vmem:[%s8548_s27 + $0x11b0] sm:$0xf] }
 0x2fa   : > { %4657 = vmatpush.bf16.msrb.mxu0 %v6494_v32  ;;  %v7913_v32 = vld [vmem:[%s8548_s27 + $0xa34] sm:$0xf] }
 0x2fb   : > { %4670 = vmatpush.bf16.msrb.mxu1 %v6686_v39  ;;  %v7550_v39 = vor.u32 %v8156_v30, %v7549_v25  ;;  %v6594_v40 = vor.u32 %v7913_v32, %v6591_v34  ;;  %v7889_v25 = vld [vmem:[%s8548_s27 + $0x974] sm:$0xf]  ;;  %v6495_v30 = vld [vmem:[%s8548_s27 + $0x988] sm:$0xf0]  ;;  %v7237_v32 = vld [vmem:[%s8548_s27 + $0xf40] sm:$0xf] }
 0x2fc   : > { %4683 = vmatpush.bf16.msrb.mxu2 %v6878_v13  ;;  %v7525_v13 = vld [vmem:[%s8548_s27 + $0x1180] sm:$0xf]  ;;  %v8078_v34 = vld [vmem:[%s8548_s27 + $0xf54] sm:$0xf0]  ;;  %v6498_v37 = vor.u32 %v7889_v25, %v6495_v30  ;;  %v7359_v30 = vld [vmem:[%s8548_s27 + $0x1048] sm:$0xf0] }
 0x2fd   : > { %4696 = vmatpush.bf16.msrb.mxu3 %v7070_v44  ;;  %v8150_v44 = vld [vmem:[%s8548_s27 + $0x1194] sm:$0xf0] }
 0x2fe   : > { %4658 = vmatpush.bf16.msrb.mxu0 %v6470_v53  ;;  %v7309_v53 = vld [vmem:[%s8548_s27 + $0xfd0] sm:$0xf]  ;;  %v7526_v55 = vor.u32 %v8150_v44, %v7525_v13  ;;  %v8126_v13 = vld [vmem:[%s8548_s27 + $0x10d4] sm:$0xf0] }
 0x2ff   : > { %4671 = vmatpush.bf16.msrb.mxu1 %v6662_v42  ;;  %v7310_v60 = vor.u32 %v8096_v54, %v7309_v53  ;;  %v7901_v42 = vld [vmem:[%s8548_s27 + $0x9d4] sm:$0xf]  ;;  %v6663_v53 = vld [vmem:[%s8548_s27 + $0xad8] sm:$0xf0]  ;;  %v7213_v54 = vld [vmem:[%s8548_s27 + $0xf10] sm:$0xf] }
 0x300   : > { %4684 = vmatpush.bf16.msrb.mxu2 %v6854_v63  ;;  %v7285_v63 = vld [vmem:[%s8548_s27 + $0xfa0] sm:$0xf]  ;;  %v6546_v1 = vor.u32 %v7901_v42, %v6543_v41  ;;  %v7405_v42 = vld [vmem:[%s8548_s27 + $0x1090] sm:$0xf]  ;;  %v8120_v41 = vld [vmem:[%s8548_s27 + $0x10a4] sm:$0xf0]  ;;  %v6666_v62 = vor.u32 %v7931_v22, %v6663_v53 }
 0x301   : > { %4697 = vmatpush.bf16.msrb.mxu3 %v7046_v0  ;;  %v8090_v0 = vld [vmem:[%s8548_s27 + $0xfb4] sm:$0xf0]  ;;  %v6927_v22 = vld [vmem:[%s8548_s27 + $0xce8] sm:$0xf0] }
 0x302   : > { %4659 = vmatpush.bf16.msrb.mxu0 %v6446_v3  ;;  %v8138_v3 = vld [vmem:[%s8548_s27 + $0x1134] sm:$0xf0]  ;;  %v7286_v5 = vor.u32 %v8090_v0, %v7285_v63  ;;  %v4453_v9 = vpop.f32.mrf.mxu0  ;;  %v6447_v0 = vld [vmem:[%s8548_s27 + $0x928] sm:$0xf0] }
 0x303   : > { %4672 = vmatpush.bf16.msrb.mxu1 %v6638_v43  ;;  %v4454_v43 = vadd.f32 %v4453_v9, %v9755_v26  ;;  %v4466_v12 = vpop.f32.mrf.mxu1  ;;  %v7478_v15 = vor.u32 %v8138_v3, %v7477_v2  ;;  %v7262_v26 = vor.u32 %v8084_v20, %v7261_v14  ;;  %v7002_v2 = vor.u32 %v8015_v57, %v6999_v58  ;;  %v8063_v3 = vld [vmem:[%s8548_s27 + $0xee4] sm:$0xf]  ;;  %v6975_v14 = vld [vmem:[%s8548_s27 + $0xd48] sm:$0xf0]  ;;  %v8141_v58 = vld [vmem:[%s8548_s27 + $0x1154] sm:$0xf] }
 0x304   : > { %4685 = vmatpush.bf16.msrb.mxu2 %v6830_v17  ;;  %v7311_v57 = vld [vmem:[%s8548_s27 + $0xfe8] sm:$0xf0] }
 0x305   : > { %4698 = vmatpush.bf16.msrb.mxu3 %v7022_v52  ;;  %4660 = vmatmul.bf16.vlgmr.msrb.gmra.mxu0 %v9357_v18  ;;  %v4467_v52 = vadd.f32 %v4466_v12, %v4454_v43  ;;  %v6450_v43 = vor.u32 %v7877_v61, %v6447_v0  ;;  %v8009_v12 = vld [vmem:[%s8548_s27 + $0xd34] sm:$0xf]  ;;  %v8039_v0 = vld [vmem:[%s8548_s27 + $0xe24] sm:$0xf] }
 0x306   : > { %4704 = vmatpush.bf16.msra.mxu0 %v7382_v21  ;;  %4673 = vmatmul.bf16.vlgmr.msrb.gmra.mxu1 %v9364_v29  ;;  %v6519_v21 = vld [vmem:[%s8548_s27 + $0x9b8] sm:$0xf0]  ;;  %v6978_v25 = vor.u32 %v8009_v12, %v6975_v14  ;;  %v8033_v12 = vld [vmem:[%s8548_s27 + $0xdf4] sm:$0xf]  ;;  %v7071_v14 = vld [vmem:[%s8548_s27 + $0xe08] sm:$0xf0] }
 0x307   : > { %4717 = vmatpush.bf16.msra.mxu1 %v7574_v24  ;;  %4686 = vmatmul.bf16.vlgmr.msrb.gmra.mxu2 %v9362_v28  ;;  %v6522_v17 = vor.u32 %v7895_v6, %v6519_v21  ;;  %v8132_v24 = vld [vmem:[%s8548_s27 + $0x1104] sm:$0xf0]  ;;  %v7383_v6 = vld [vmem:[%s8548_s27 + $0x1078] sm:$0xf0]  ;;  %v8159_v21 = vld [vmem:[%s8548_s27 + $0x11e4] sm:$0xf] }
 0x308   : > { %4730 = vmatpush.bf16.msra.mxu2 %v6618_v16  ;;  %4699 = vmatmul.bf16.vlgmr.msrb.gmra.mxu3 %v9368_v33  ;;  %v6714_v16 = vor.u32 %v7943_v8, %v6711_v10  ;;  %v7454_v36 = vor.u32 %v8132_v24, %v7453_v19  ;;  %v7575_v8 = vld [vmem:[%s8548_s27 + $0x11f8] sm:$0xf0]  ;;  %v7406_v10 = vor.u32 %v8120_v41, %v7405_v42  ;;  %v8057_v24 = vld [vmem:[%s8548_s27 + $0xeb4] sm:$0xf]  ;;  %v2890_v41 = vperm.slane %v9655_v11, 2 }
 0x309   : > { %4743 = vmatpush.bf16.msra.mxu3 %v6810_v31  ;;  %v7937_v31 = vld [vmem:[%s8548_s27 + $0xaf4] sm:$0xf]  ;;  %v7578_v19 = vor.u32 %v8159_v21, %v7575_v8  ;;  %v6903_v42 = vld [vmem:[%s8548_s27 + $0xcb8] sm:$0xf0]  ;;  %v6879_v21 = vld [vmem:[%s8548_s27 + $0xc88] sm:$0xf0] }
 0x30a   : > { %4705 = vmatpush.bf16.msra.mxu0 %v7358_v23  ;;  %v6687_v23 = vld [vmem:[%s8548_s27 + $0xb08] sm:$0xf0]  ;;  %v4479_v35 = vpop.f32.mrf.mxu2  ;;  %v4455_v48 = vpop.f32.mrf.mxu0 }
 0x30b   : > { %4718 = vmatpush.bf16.msra.mxu1 %v7550_v39  ;;  %v4480_v38 = vadd.f32 %v4479_v35, %v4467_v52  ;;  %v4492_v39 = vpop.f32.mrf.mxu3  ;;  %v6690_v44 = vor.u32 %v7937_v31, %v6687_v23  ;;  %v8153_v31 = vld [vmem:[%s8548_s27 + $0x11b4] sm:$0xf]  ;;  %v7551_v23 = vld [vmem:[%s8548_s27 + $0x11c8] sm:$0xf0] }
 0x30c   : > { %4731 = vmatpush.bf16.msra.mxu2 %v6594_v40  ;;  %v7429_v40 = vld [vmem:[%s8548_s27 + $0x10c0] sm:$0xf] }
 0x30d   : > { %4744 = vmatpush.bf16.msra.mxu3 %v6786_v45  ;;  %v7238_v45 = vor.u32 %v8078_v34, %v7237_v32  ;;  %v9822_v51 = vadd.f32 %v4492_v39, %v4480_v38  ;;  %v8003_v32 = vld [vmem:[%s8548_s27 + $0xd04] sm:$0xf]  ;;  %v6951_v34 = vld [vmem:[%s8548_s27 + $0xd18] sm:$0xf0] }
 0x30e   : > { %4706 = vmatpush.bf16.msra.mxu0 %v7334_v46  ;;  %v7883_v46 = vld [vmem:[%s8548_s27 + $0x944] sm:$0xf]  ;;  %v7143_v39 = vld [vmem:[%s8548_s27 + $0xe98] sm:$0xf0] }
 0x30f   : > { %4719 = vmatpush.bf16.msra.mxu1 %v7526_v55  ;;  %v8072_v55 = vld [vmem:[%s8548_s27 + $0xf24] sm:$0xf0]  ;;  %v8051_v38 = vld [vmem:[%s8548_s27 + $0xe84] sm:$0xf] }
 0x310   : > { %4732 = vmatpush.bf16.msra.mxu2 %v6570_v56  ;;  %v4468_v56 = vpop.f32.mrf.mxu1  ;;  %v7214_v63 = vor.u32 %v8072_v55, %v7213_v54  ;;  %v7146_v48 = vor.u32 %v8051_v38, %v7143_v39  ;;  %v8045_v54 = vld [vmem:[%s8548_s27 + $0xe54] sm:$0xf]  ;;  %v7119_v55 = vld [vmem:[%s8548_s27 + $0xe68] sm:$0xf0]  ;;  %v8075_v38 = vld [vmem:[%s8548_s27 + $0xf44] sm:$0xf] }
 0x311   : > { %4745 = vmatpush.bf16.msra.mxu3 %v6762_v59  ;;  %v7430_v59 = vor.u32 %v8126_v13, %v7429_v40  ;;  %v8099_v40 = vld [vmem:[%s8548_s27 + $0x1004] sm:$0xf]  ;;  %v6954_v13 = vor.u32 %v8003_v32, %v6951_v34  ;;  %v8093_v56 = vld [vmem:[%s8548_s27 + $0xfd4] sm:$0xf]  ;;  %v7122_v61 = vor.u32 %v8045_v54, %v7119_v55  ;;  %v7023_v55 = vld [vmem:[%s8548_s27 + $0xda8] sm:$0xf0] }
 0x312   : > { %4707 = vmatpush.bf16.msra.mxu0 %v7310_v60  ;;  %v6474_v60 = vor.u32 %v7883_v46, %v6471_v47  ;;  %v4481_v9 = vpop.f32.mrf.mxu2  ;;  %v7527_v46 = vld [vmem:[%s8548_s27 + $0x1198] sm:$0xf0]  ;;  %v7997_v47 = vld [vmem:[%s8548_s27 + $0xcd4] sm:$0xf] }
 0x313   : > { %4720 = vmatpush.bf16.msra.mxu1 %v7502_v7  ;;  %v7925_v7 = vld [vmem:[%s8548_s27 + $0xa94] sm:$0xf]  ;;  %v4494_v20 = vpop.f32.mrf.mxu3 }
 0x314   : > { %4733 = vmatpush.bf16.msra.mxu2 %v6546_v1  ;;  %v6639_v1 = vld [vmem:[%s8548_s27 + $0xaa8] sm:$0xf0]  ;;  %v8081_v20 = vld [vmem:[%s8548_s27 + $0xf74] sm:$0xf] }
 0x315   : > { %4746 = vmatpush.bf16.msra.mxu3 %v6738_v4  ;;  %v7191_v4 = vld [vmem:[%s8548_s27 + $0xef8] sm:$0xf0]  ;;  %v8021_v54 = vld [vmem:[%s8548_s27 + $0xd94] sm:$0xf] }
 0x316   : > { %4708 = vmatpush.bf16.msra.mxu0 %v7286_v5  ;;  %v8111_v5 = vld [vmem:[%s8548_s27 + $0x1064] sm:$0xf] }
 0x317   : > { %4721 = vmatpush.bf16.msra.mxu1 %v7478_v15  ;;  %v6642_v15 = vor.u32 %v7925_v7, %v6639_v1  ;;  %v7386_v52 = vor.u32 %v8111_v5, %v7383_v6  ;;  %v7095_v7 = vld [vmem:[%s8548_s27 + $0xe38] sm:$0xf0]  ;;  %v8087_v1 = vld [vmem:[%s8548_s27 + $0xfa4] sm:$0xf]  ;;  %v7985_v6 = vld [vmem:[%s8548_s27 + $0xc74] sm:$0xf] }
 0x318   : > { %4734 = vmatpush.bf16.msra.mxu2 %v6522_v17  ;;  %v7194_v17 = vor.u32 %v8063_v3, %v7191_v4  ;;  %v7287_v3 = vld [vmem:[%s8548_s27 + $0xfb8] sm:$0xf0]  ;;  %v8135_v4 = vld [vmem:[%s8548_s27 + $0x1124] sm:$0xf]  ;;  %v7098_v9 = vor.u32 %v8039_v0, %v7095_v7 }
 0x319   : > { %4747 = vmatpush.bf16.msra.mxu3 %v6714_v16  ;;  %v7167_v16 = vld [vmem:[%s8548_s27 + $0xec8] sm:$0xf0]  ;;  %v7479_v5 = vld [vmem:[%s8548_s27 + $0x1138] sm:$0xf0] }
 0x31a   : > { %4709 = vmatpush.bf16.msra.mxu0 %v7262_v26  ;;  %v8105_v26 = vld [vmem:[%s8548_s27 + $0x1034] sm:$0xf]  ;;  %v7170_v35 = vor.u32 %v8057_v24, %v7167_v16  ;;  %v7455_v24 = vld [vmem:[%s8548_s27 + $0x1108] sm:$0xf0] }
 0x31b   : > { %4722 = vmatpush.bf16.msra.mxu1 %v7454_v36  ;;  %v7362_v36 = vor.u32 %v8105_v26, %v7359_v30  ;;  %v7979_v26 = vld [vmem:[%s8548_s27 + $0xc44] sm:$0xf] }
 0x31c   : > { %4735 = vmatpush.bf16.msra.mxu2 %v6498_v37  ;;  %v7554_v37 = vor.u32 %v8153_v31, %v7551_v23  ;;  %v7074_v31 = vor.u32 %v8033_v12, %v7071_v14 }
 0x31d   : > { %4748 = vmatpush.bf16.msra.mxu3 %v6690_v44  ;;  %v7335_v44 = vld [vmem:[%s8548_s27 + $0x1018] sm:$0xf0] }
 0x31e   : > { %4710 = vmatpush.bf16.msra.mxu0 %v7238_v45  ;;  %v8147_v45 = vld [vmem:[%s8548_s27 + $0x1184] sm:$0xf] }
 0x31f   : > { %4723 = vmatpush.bf16.msra.mxu1 %v7430_v59  ;;  %v7530_v53 = vor.u32 %v8147_v45, %v7527_v46  ;;  %v7503_v59 = vld [vmem:[%s8548_s27 + $0x1168] sm:$0xf0] }
 0x320   : > { %4736 = vmatpush.bf16.msra.mxu2 %v6474_v60  ;;  %v7991_v60 = vld [vmem:[%s8548_s27 + $0xca4] sm:$0xf] }
 0x321   : > { %4749 = vmatpush.bf16.msra.mxu3 %v6666_v62  ;;  %v7314_v62 = vor.u32 %v8093_v56, %v7311_v57  ;;  %v8069_v56 = vld [vmem:[%s8548_s27 + $0xf14] sm:$0xf] }
 0x322   : > { %4711 = vmatpush.bf16.msra.mxu0 %v7214_v63  ;;  %v7506_v63 = vor.u32 %v8141_v58, %v7503_v59  ;;  %v4505_v11 = vpop.f32.mrf.mxu0  ;;  %v7215_v58 = vld [vmem:[%s8548_s27 + $0xf28] sm:$0xf0]  ;;  %v8117_v59 = vld [vmem:[%s8548_s27 + $0x1094] sm:$0xf] }
 0x323   : > { %4724 = vmatpush.bf16.msra.mxu1 %v7406_v10  ;;  %v4506_v8 = vadd.f32 %v4505_v11, %v2890_v41  ;;  %v7290_v10 = vor.u32 %v8087_v1, %v7287_v3  ;;  %v7026_v41 = vor.u32 %v8021_v54, %v7023_v55 }
 0x324   : > { %4737 = vmatpush.bf16.msra.mxu2 %v6450_v43  ;;  %v7482_v43 = vor.u32 %v8135_v4, %v7479_v5 }
 0x325   : > { %4750 = vmatpush.bf16.msra.mxu3 %v6642_v15  ;;  %4712 = vmatmul.bf16.vlgmr.msra.gmra.mxu0 %v9424_v50  ;;  %v4518_v15 = vpop.f32.mrf.mxu1 }
 0x326   : > { %4756 = vmatpush.bf16.msrb.mxu0 %v7002_v2  ;;  %4725 = vmatmul.bf16.vlgmr.msra.gmra.mxu1 %v9422_v49  ;;  %v6906_v2 = vor.u32 %v7991_v60, %v6903_v42  ;;  %v4519_v16 = vadd.f32 %v4518_v15, %v4506_v8  ;;  %v7407_v60 = vld [vmem:[%s8548_s27 + $0x10a8] sm:$0xf0] }
 0x327   : > { %4769 = vmatpush.bf16.msrb.mxu1 %v7194_v17  ;;  %4738 = vmatmul.bf16.vlgmr.msra.gmra.mxu2 %v9357_v18  ;;  %v7338_v18 = vor.u32 %v8099_v40, %v7335_v44  ;;  %v6882_v17 = vor.u32 %v7985_v6, %v6879_v21  ;;  %v7239_v40 = vld [vmem:[%s8548_s27 + $0xf58] sm:$0xf0] }
 0x328   : > { %4782 = vmatpush.bf16.msrb.mxu2 %v7386_v52  ;;  %4751 = vmatmul.bf16.vlgmr.msra.gmra.mxu3 %v9364_v29  ;;  %v6930_v29 = vor.u32 %v7997_v47, %v6927_v22  ;;  %v7263_v52 = vld [vmem:[%s8548_s27 + $0xf88] sm:$0xf0]  ;;  %v7431_v44 = vld [vmem:[%s8548_s27 + $0x10d8] sm:$0xf0]  ;;  %v7973_v47 = vld [vmem:[%s8548_s27 + $0xc14] sm:$0xf] }
 0x329   : > { %4795 = vmatpush.bf16.msrb.mxu3 %v7578_v19  ;;  %v8129_v19 = vld [vmem:[%s8548_s27 + $0x10f4] sm:$0xf]  ;;  %v7266_v34 = vor.u32 %v8081_v20, %v7263_v52  ;;  %v6831_v22 = vld [vmem:[%s8548_s27 + $0xc28] sm:$0xf0] }
 0x32a   : > { %4757 = vmatpush.bf16.msrb.mxu0 %v6978_v25  ;;  %v6855_v25 = vld [vmem:[%s8548_s27 + $0xc58] sm:$0xf0]  ;;  %v4531_v30 = vpop.f32.mrf.mxu2  ;;  %v4507_v46 = vpop.f32.mrf.mxu0  ;;  %v6834_v57 = vor.u32 %v7973_v47, %v6831_v22 }
 0x32b   : > { %4770 = vmatpush.bf16.msrb.mxu1 %v7170_v35  ;;  %v4532_v23 = vadd.f32 %v4531_v30, %v4519_v16  ;;  %v4544_v32 = vpop.f32.mrf.mxu3  ;;  %v7458_v35 = vor.u32 %v8129_v19, %v7455_v24  ;;  %v6858_v39 = vor.u32 %v7979_v26, %v6855_v25 }
 0x32c   : > { %4783 = vmatpush.bf16.msrb.mxu2 %v7362_v36  ;;  %v8027_v36 = vld [vmem:[%s8548_s27 + $0xdc4] sm:$0xf] }
 0x32d   : > { %4796 = vmatpush.bf16.msrb.mxu3 %v7554_v37  ;;  %v7047_v37 = vld [vmem:[%s8548_s27 + $0xdd8] sm:$0xf0]  ;;  %v4545_v45 = vadd.f32 %v4544_v32, %v4532_v23 }
 0x32e   : > { %4758 = vmatpush.bf16.msrb.mxu0 %v6954_v13  ;;  %v8123_v13 = vld [vmem:[%s8548_s27 + $0x10c4] sm:$0xf]  ;;  %s9907_s27 = sadd.s32 1, %s9224_s16 }
 0x32f   : > { %4771 = vmatpush.bf16.msrb.mxu1 %v7146_v48  ;;  %v7050_v48 = vor.u32 %v8027_v36, %v7047_v37  ;;  %p4809_p9 = scmp.gt.s32.totalorder %s9907_s27, 8  ;;  %p4810_p10 = scmp.lt.s32.totalorder %s9907_s27, 16 }
 0x330   : > { %4784 = vmatpush.bf16.msrb.mxu2 %v7338_v18  ;;  %v7242_v18 = vor.u32 %v8075_v38, %v7239_v40  ;;  %p4808_p12 = scmp.lt.s32.totalorder %s9907_s27, 7  ;;  %p4814_p5 = scmp.eq.s32.totalorder %s9907_s27, 16 }
 0x331   : > { %4797 = vmatpush.bf16.msrb.mxu3 %v7530_v53  ;;  %v7434_v53 = vor.u32 %v8123_v13, %v7431_v44  ;;  %p4811_p11 = pnand %p4810_p10, %p4809_p9 }
 0x332   : > { %4759 = vmatpush.bf16.msrb.mxu0 %v6930_v29  ;;  %v4520_v29 = vpop.f32.mrf.mxu1  ;;  %v4533_v42 = vpop.f32.mrf.mxu2 }
 0x333   : > { %4772 = vmatpush.bf16.msrb.mxu1 %v7122_v61  ;;  %v4546_v61 = vpop.f32.mrf.mxu3  ;;  %p4812_p1 = pneg %p4811_p11 }
 0x334   : > { %4785 = vmatpush.bf16.msrb.mxu2 %v7314_v62  ;;  %v7218_v62 = vor.u32 %v8069_v56, %v7215_v58 }
 0x335   : > { %4798 = vmatpush.bf16.msrb.mxu3 %v7506_v63  ;;  %v7410_v63 = vor.u32 %v8117_v59, %v7407_v60  ;;  %p9915_p4 = por %p4812_p1, %p4808_p12 }
 0x336   : > { %4760 = vmatpush.bf16.msrb.mxu0 %v6906_v2 }
 0x337   : > { %4773 = vmatpush.bf16.msrb.mxu1 %v7098_v9 }
 0x338   : > { %4786 = vmatpush.bf16.msrb.mxu2 %v7290_v10 }
 0x339   : > { %4799 = vmatpush.bf16.msrb.mxu3 %v7482_v43 }
 0x33a   : > { %4761 = vmatpush.bf16.msrb.mxu0 %v6882_v17 }
 0x33b   : > { %4774 = vmatpush.bf16.msrb.mxu1 %v7074_v31 }
 0x33c   : > { %4787 = vmatpush.bf16.msrb.mxu2 %v7266_v34 }
 0x33d   : > { %4800 = vmatpush.bf16.msrb.mxu3 %v7458_v35 }
 0x33e   : > { %4762 = vmatpush.bf16.msrb.mxu0 %v6858_v39 }
 0x33f   : > { %4775 = vmatpush.bf16.msrb.mxu1 %v7050_v48 }
 0x340   : > { %4788 = vmatpush.bf16.msrb.mxu2 %v7242_v18 }
 0x341   : > { %4801 = vmatpush.bf16.msrb.mxu3 %v7434_v53 }
 0x342   : > { %4763 = vmatpush.bf16.msrb.mxu0 %v6834_v57  ;;  %v4557_v0 = vpop.f32.mrf.mxu0 }
 0x343   : > { %4776 = vmatpush.bf16.msrb.mxu1 %v7026_v41  ;;  %v4570_v7 = vpop.f32.mrf.mxu1  ;;  %v4558_v1 = vadd.f32 %v4557_v0, %v4545_v45 }
 0x344   : > { %4789 = vmatpush.bf16.msrb.mxu2 %v7218_v62 }
 0x345   : > { %4802 = vmatpush.bf16.msrb.mxu3 %v7410_v63  ;;  %4764 = vmatmul.bf16.vlgmr.msrb.gmra.mxu0 %v9362_v28  ;;  %v9912_v28 = vadd.f32 %v4570_v7, %v4558_v1  ;;  %v4818_v1 = vmax.f32 (%p9915_p4), %v9736_v27, 0.0 }
 0x346   : > { %4777 = vmatmul.bf16.vlgmr.msrb.gmra.mxu1 %v9368_v33  ;;  %v8250_v33 = vld [vmem:[%s8969_s15 + $0x6] sm:$0x3f] }
 0x347   : > { %4790 = vmatmul.bf16.vlgmr.msrb.gmra.mxu2 %v9424_v50  ;;  %v2891_v50 = vperm.slane %v8250_v33, 3  ;;  %v2892_v32 = vperm.slane %v8250_v33, 4  ;;  %v2893_v54 = vperm.slane %v8250_v33, 5  ;;  %v4819_v33 = vmax.f32 (%p9915_p4), %v9822_v51, 0.0  ;;  %4824 = vst [vmem:[#allocation2 + $0x28] sm:$0xff] (%p9915_p4), %v4818_v1 }
 0x348   : > { %4803 = vmatmul.bf16.vlgmr.msrb.gmra.mxu3 %v9422_v49 }
 0x349   : > { %4825 = vst [vmem:[#allocation2 + $0x10] sm:$0xff] (%p9915_p4), %v4819_v33 }
 0x34a   : > { %v4583_v49 = vpop.f32.mrf.mxu2  ;;  %v4559_v4 = vpop.f32.mrf.mxu0 }
 0x34b   : > { %v4596_v2 = vpop.f32.mrf.mxu3  ;;  %v4584_v3 = vadd.f32 %v4583_v49, %v2891_v50  ;;  %v4572_v5 = vpop.f32.mrf.mxu1  ;;  %v4820_v50 = vmax.f32 (%p9915_p4), %v9912_v28, 0.0 }
 0x34d   : > { %v4597_v11 = vadd.f32 %v4596_v2, %v4584_v3  ;;  %4826 = vst [vmem:[#allocation2 + $0x8] sm:$0xff] (%p9915_p4), %v4820_v50 }
 0x352   : > { %v4585_v6 = vpop.f32.mrf.mxu2 }
 0x353   : > { %v4598_v21 = vpop.f32.mrf.mxu3 }
 0x362   : > { %v4609_v8 = vpop.f32.mrf.mxu0 }
 0x363   : > { %v4610_v9 = vadd.f32 %v4609_v8, %v4597_v11  ;;  %v4622_v10 = vpop.f32.mrf.mxu1 }
 0x365   : > { %v4623_v43 = vadd.f32 %v4622_v10, %v4610_v9 }
 0x36a   : > { %v4635_v12 = vpop.f32.mrf.mxu2  ;;  %v4611_v17 = vpop.f32.mrf.mxu0 }
 0x36b   : > { %v4636_v14 = vadd.f32 %v4635_v12, %v4623_v43  ;;  %v4648_v20 = vpop.f32.mrf.mxu3  ;;  %v4624_v52 = vpop.f32.mrf.mxu1 }
 0x36d   : > { %v9920_v15 = vadd.f32 %v4648_v20, %v4636_v14 }
 0x36f   : > { %v4821_v49 = vmax.f32 (%p9915_p4), %v9920_v15, 0.0 }
 0x371   : > { %4827 = vst [vmem:[#allocation2] sm:$0xff] (%p9915_p4), %v4821_v49 }
 0x372   : > { %v4637_v19 = vpop.f32.mrf.mxu2 }
 0x373   : > { %v4650_v24 = vpop.f32.mrf.mxu3 }
 0x382   : > { %v4661_v16 = vpop.f32.mrf.mxu0 }
 0x383   : > { %v4674_v26 = vpop.f32.mrf.mxu1  ;;  %v4662_v35 = vadd.f32 %v4661_v16, %v2892_v32 }
 0x385   : > { %v4675_v37 = vadd.f32 %v4674_v26, %v4662_v35 }
 0x38a   : > { %v4687_v25 = vpop.f32.mrf.mxu2  ;;  %v4663_v31 = vpop.f32.mrf.mxu0 }
 0x38b   : > { %v4700_v30 = vpop.f32.mrf.mxu3  ;;  %v4676_v23 = vpop.f32.mrf.mxu1  ;;  %v4688_v38 = vadd.f32 %v4687_v25, %v4675_v37 }
 0x38d   : > { %v4701_v39 = vadd.f32 %v4700_v30, %v4688_v38 }
 0x392   : > { %v4689_v34 = vpop.f32.mrf.mxu2 }
 0x393   : > { %v4702_v36 = vpop.f32.mrf.mxu3 }
 0x3a2   : > { %v4713_v40 = vpop.f32.mrf.mxu0 }
 0x3a3   : > { %v4714_v13 = vadd.f32 %v4713_v40, %v4701_v39  ;;  %v4726_v44 = vpop.f32.mrf.mxu1 }
 0x3a5   : > { %v9922_v45 = vadd.f32 %v4726_v44, %v4714_v13 }
 0x3a7   : > { %v4822_v2 = vmax.f32 (%p9915_p4), %v9922_v45, 0.0 }
 0x3a9   : > { %4828 = vst [vmem:[#allocation2 + $0x18] sm:$0xff] (%p9915_p4), %v4822_v2 }
 0x3aa   : > { %v4739_v46 = vpop.f32.mrf.mxu2  ;;  %v4715_v22 = vpop.f32.mrf.mxu0 }
 0x3ab   : > { %v4752_v47 = vpop.f32.mrf.mxu3  ;;  %v4728_v48 = vpop.f32.mrf.mxu1  ;;  %v4740_v55 = vadd.f32 %v4739_v46, %v2893_v54 }
 0x3ad   : > { %v4753_v29 = vadd.f32 %v4752_v47, %v4740_v55 }
 0x3b2   : > { %v4741_v18 = vpop.f32.mrf.mxu2 }
 0x3b3   : > { %v4754_v53 = vpop.f32.mrf.mxu3 }
 0x3c2   : > { %v4765_v56 = vpop.f32.mrf.mxu0 }
 0x3c3   : > { %v4778_v57 = vpop.f32.mrf.mxu1  ;;  %v4766_v58 = vadd.f32 %v4765_v56, %v4753_v29 }
 0x3c5   : > { %v4779_v59 = vadd.f32 %v4778_v57, %v4766_v58 }
 0x3ca   : > { %v4791_v60 = vpop.f32.mrf.mxu2  ;;  %v4767_v61 = vpop.f32.mrf.mxu0 }
 0x3cb   : > { %v4804_v42 = vpop.f32.mrf.mxu3  ;;  %v4792_v41 = vadd.f32 %v4791_v60, %v4779_v59  ;;  %v4780_v62 = vpop.f32.mrf.mxu1 }
 0x3cd   : > { %v4805_v63 = vadd.f32 %v4804_v42, %v4792_v41 }
 0x3cf   : > { %4817 = sbr.rel (!%p9915_p4) target bundleno = 980 (0x3d4), region = 68  ;;  %v4823_v3 = vmax.f32 (%p9915_p4), %v4805_v63, 0.0 }
 0x3d1   : > { %4829 = vst [vmem:[#allocation2 + $0x20] sm:$0xff] (%p9915_p4), %v4823_v3 }
 0x3d2   : > { %v4793_v0 = vpop.f32.mrf.mxu2 }
 0x3d3   : > { %v4806_v7 = vpop.f32.mrf.mxu3 }
 0x3d4 PF: > { %p7579_p6 = scmp.ne.s32.totalorder %s9907_s27, 16 }
 0x3d6   : > { %4832 = sbr.rel (%p7579_p6) target bundleno = 1000 (0x3e8), region = 72 }
 0x3db   : > { %8251 = vtanh.f32 %v9736_v27 }
 0x3dc   : > { %8253 = vtanh.f32 %v9822_v51 }
 0x3dd   : > { %8255 = vtanh.f32 %v9912_v28 }
 0x3de   : > { %8257 = vtanh.f32 %v9920_v15 }
 0x3df   : > { %8259 = vtanh.f32 %v9922_v45 }
 0x3e0   : > { %8261 = vtanh.f32 %v4805_v63 }
 0x3e1   : > { %v8252_v4 = vpop.eup %8251 }
 0x3e2   : > { %v8254_v5 = vpop.eup %8253  ;;  %4839 = vst [vmem:[#allocation2 + $0x28] sm:$0xff] %v8252_v4 }
 0x3e3   : > { %v8256_v11 = vpop.eup %8255  ;;  %4840 = vst [vmem:[#allocation2 + $0x10] sm:$0xff] %v8254_v5 }
 0x3e4   : > { %v8258_v6 = vpop.eup %8257  ;;  %4841 = vst [vmem:[#allocation2 + $0x8] sm:$0xff] %v8256_v11 }
 0x3e5   : > { %v8260_v21 = vpop.eup %8259  ;;  %4842 = vst [vmem:[#allocation2] sm:$0xff] %v8258_v6 }
 0x3e6   : > { %v8262_v8 = vpop.eup %8261  ;;  %4843 = vst [vmem:[#allocation2 + $0x18] sm:$0xff] %v8260_v21 }
 0x3e7   : > { %4844 = vst [vmem:[#allocation2 + $0x20] sm:$0xff] %v8262_v8 }
 0x3e8 PF: > { %p4845_p13 = por %p4814_p5, %p9915_p4 }
 0x3ea   : > { %4848 = sbr.rel (%p4845_p13) target bundleno = 1013 (0x3f5), region = 76 }
 0x3ef   : > { %4849 = vst [vmem:[#allocation2 + $0x28] sm:$0xff] %v9736_v27 }
 0x3f0   : > { %4850 = vst [vmem:[#allocation2 + $0x10] sm:$0xff] %v9822_v51 }
 0x3f1   : > { %4851 = vst [vmem:[#allocation2 + $0x8] sm:$0xff] %v9912_v28 }
 0x3f2   : > { %4852 = vst [vmem:[#allocation2] sm:$0xff] %v9920_v15 }
 0x3f3   : > { %4853 = vst [vmem:[#allocation2 + $0x18] sm:$0xff] %v9922_v45 }
 0x3f4   : > { %4854 = vst [vmem:[#allocation2 + $0x20] sm:$0xff] %v4805_v63 }
 0x3f5 PF: > { %p7580_p0 = scmp.ne.s32.totalorder %s9907_s27, 17 }
 0x3f7   : > { %4858 = sbr.rel (%p7580_p0) target bundleno = 1026 (0x402), region = 80 }
 0x3fc   : > { %4859 = vst [vmem:[%s10006_s4] sm:$0xff] %v9736_v27 }
 0x3fd   : > { %4860 = vst [vmem:[%s10006_s4 + $0x8] sm:$0xff] %v9822_v51 }
 0x3fe   : > { %4861 = vst [vmem:[%s10006_s4 + $0x10] sm:$0xff] %v9912_v28 }
 0x3ff   : > { %4862 = vst [vmem:[%s10006_s4 + $0x18] sm:$0xff] %v9920_v15 }
 0x400   : > { %4863 = vst [vmem:[%s10006_s4 + $0x20] sm:$0xff] %v9922_v45 }
 0x401   : > { %4864 = vst [vmem:[%s10006_s4 + $0x28] sm:$0xff] %v4805_v63 }
 0x402 PF: > { %p8191_p2 = scmp.eq.s32.totalorder %s8489_s25, 8  ;;  %s4876_s19 = sshll.u32 %s10007_s5, 4  ;;  %s4877_s19 = int_to_ptr.hbm [resolvable:$true] %s4876_s19 }
 0x403   : > { %s8433_s20 = smov [#allocation8]   ;;  %s8434_s27 = smov [#allocation9]  }
 0x404   : > { %s4874_s21 = sshll.u32 %s8433_s20, 4  ;;  %s4886_s30 = sshll.u32 %s8434_s27, 4  ;;  %s4875_s21 = int_to_ptr.vmem [resolvable:$true] %s4874_s21  ;;  %s4887_s30 = int_to_ptr.vmem [resolvable:$true] %s4886_s30 }
 0x405   : > { %8173 = dma.vmem_to_hbm [thread:$0]  (%p8191_p2), %s4875_s21, 128, %s4877_s19, [#allocation5]  }
 0x406   : > { %s4888_s29 = sshll.u32 %s10008_s6, 4  ;;  %s4889_s29 = int_to_ptr.hbm [resolvable:$true] %s4888_s29 }
 0x407   : > { %8175 = dma.vmem_to_hbm [thread:$0]  (%p8191_p2), %s4887_s30, 128, %s4889_s29, [#allocation10]  }
 0x408   : > { %8404 = dma.done.wait (%p8191_p2), [#allocation5], 128  }
 0x409   : > { %8406 = vsyncadd (%p8191_p2), [#allocation5], 4294967168 }
 0x40a   : > { %8408 = dma.done.wait (%p8191_p2), [#allocation10], 128  }
 0x40b   : > { %8410 = vsyncadd (%p8191_p2), [#allocation10], 4294967168 }
 0x40c PF: > { %p20_p3 = scmp.ge.s32.totalorder %s8514_s9, 11   ;;  %s10014_s21 = smov %s8417_s22 }
 0x40d   : > { %s10015_s22 = smov %s8421_s23  ;;  %s10016_s23 = smov %s8524_s14 }
 0x40e   : > { %s10017_s24 = smov %s8514_s9  ;;  %22 = sbr.rel (!%p20_p3) target bundleno = 6 (0x6), region = 132 }
 0x413   :  { %4910 = vsyncpa [#allocation4], 1 }
 0x414   :  { %4912 = vsyncpa [#allocation4 + $0x1], 1 }
 0x415   :  { %4913 = vsyncpa [#allocation7], 1 }
 0x416   :  { %4914 = vsyncpa [#allocation5], 1 }
 0x417   :  { %4916 = vsyncpa [#allocation5 + $0x1], 1 }
 0x418   :  { %4917 = vsyncpa [#allocation10], 1 }

</bundles_post_ra>
